<compile_context>
chip_gen: v6e
topology: v6e:2x2x1
jax: 0.10.0
libtpu: 0.0.40
codegen_flags: <defaults>
</compile_context>

<pallas_src>
import numpy as np

import jax
import jax.numpy as jnp
from jax.experimental import pallas as pl
from jax.experimental.pallas import tpu as pltpu


# ---------------------------------------------------------------------------
# Host-side constant builders
# ---------------------------------------------------------------------------
def _scatter_combined(H, W):
    """Scomb[k*P + p, q] = 1 iff q == (2i+di)*(2W) + (2j+dj), p = i*W+j,
    k = di*2+dj.  Turns the ConvTranspose(2, s=2) pixel interleave of all 4
    phases into ONE matmul with K = 4*H*W."""
    P = H * W
    s = np.zeros((4, P, 4 * P), np.float32)
    for di in range(2):
        for dj in range(2):
            k = di * 2 + dj
            for i in range(H):
                for j in range(W):
                    s[k, i * W + j, (2 * i + di) * (2 * W) + (2 * j + dj)] = 1.0
    return s.reshape(4 * P, 4 * P)


def _shift_masks(H, W):
    """mask[k, 0, p] = 1 iff 3x3 tap k = ky*3+kx reads an in-bounds pixel when
    producing output pixel p (zero padding elsewhere)."""
    P = H * W
    m = np.zeros((9, 1, P), np.float32)
    for ky in range(3):
        for kx in range(3):
            k = ky * 3 + kx
            for i in range(H):
                for j in range(W):
                    if 0 <= i + ky - 1 < H and 0 <= j + kx - 1 < W:
                        m[k, 0, i * W + j] = 1.0
    return m


# ---------------------------------------------------------------------------
# In-kernel building blocks (activations in (C, H*W) layout: channels on
# sublanes, flattened spatial on lanes)
# ---------------------------------------------------------------------------
def _shift_lanes(x, off):
    """y[:, p] = x[:, p + off] with zero fill outside; `off` is static.
    Pure lane data movement (VPU/XLU), no MXU, no roll-direction ambiguity."""
    if off == 0:
        return x
    c, p = x.shape
    z = jnp.zeros((c, abs(off)), x.dtype)
    if off > 0:
        return jnp.concatenate([x[:, off:], z], axis=1)
    return jnp.concatenate([z, x[:, :p + off]], axis=1)


def _deconv2x2(x, ws_ref, sc_ref, b_ref, cout):
    """ConvTranspose2d(k=2, s=2) as 2 matmuls.
    x: (Cin, P) f32; ws_ref: (4*Cout, Cin) bf16 (phase-stacked weights);
    sc_ref: (4P, 4P) f32 combined 0/1 pixel scatter; b_ref: (Cout, 1) f32.
    Returns (Cout, 4P) f32."""
    ys = jnp.dot(ws_ref[...], x.astype(jnp.bfloat16),
                 preferred_element_type=jnp.float32)                 # (4Cout, P)
    ycat = jnp.concatenate(
        [ys[k * cout:(k + 1) * cout, :] for k in range(4)], axis=1)  # (Cout, 4P)
    out = jnp.dot(ycat, sc_ref[...], preferred_element_type=jnp.float32)
    return out + b_ref[...]


def _ladder_conv3x3(xd, xs, wl_ref, m_ref, b_ref, H, W):
    """Conv2d(3x3, pad=1) over the channel concat [xd, xs] (no explicit concat
    against the weight): 9 shifted/masked input copies built on the VPU, then
    ONE channel matmul with K = 9*2C.
    xd/xs: (C, P) f32; wl_ref: (Cout, 9*2C) bf16; m_ref: (9, 1, P) bf16;
    b_ref: (Cout, 1) f32.  Returns (Cout, P) f32."""
    xcat = jnp.concatenate([xd, xs], axis=0).astype(jnp.bfloat16)    # (2C, P)
    shifted = []
    for ky in range(3):
        for kx in range(3):
            k = ky * 3 + kx
            off = (ky - 1) * W + (kx - 1)
            shifted.append(_shift_lanes(xcat, off) * m_ref[k])       # (2C, P)
    xsh = jnp.concatenate(shifted, axis=0)                           # (9*2C, P)
    out = jnp.dot(wl_ref[...], xsh, preferred_element_type=jnp.float32)
    return out + b_ref[...]


# ---------------------------------------------------------------------------
# The fused decoder kernel (one grid step = Bt batch elements, unrolled)
# ---------------------------------------------------------------------------
def _decoder_kernel(e3_ref, e2_ref, e1_ref,
                    w1_ref, b1_ref, sc1_ref,
                    wl1_ref, bl1_ref, m1_ref,
                    w2_ref, b2_ref, sc2_ref,
                    wl2_ref, bl2_ref, m2_ref,
                    w3_ref, b3_ref,
                    o_ref):
    bt = e3_ref.shape[0]
    for t in range(bt):            # unrolled: independent chains interleave
        x3 = e3_ref[t]             # (128, 16)   4x4 spatial
        e2 = e2_ref[t]             # (64, 64)    8x8
        e1 = e1_ref[t]             # (16, 256)   16x16

        # scalar_decoder_1: ConvT(128->64, 2, s2) + ReLU      -> (64, 64)
        h = jnp.maximum(_deconv2x2(x3, w1_ref, sc1_ref, b1_ref, 64), 0.0)
        # ladder_block_1: Conv3x3(cat[h, enc2]: 128->64) + ReLU
        h = jnp.maximum(_ladder_conv3x3(h, e2, wl1_ref, m1_ref, bl1_ref, 8, 8),
                        0.0)
        # scalar_decoder_2: ConvT(64->16, 2, s2) + ReLU       -> (16, 256)
        h = jnp.maximum(_deconv2x2(h, w2_ref, sc2_ref, b2_ref, 16), 0.0)
        # ladder_block_2: Conv3x3(cat[h, enc1]: 32->16) + ReLU
        h = jnp.maximum(_ladder_conv3x3(h, e1, wl2_ref, m2_ref, bl2_ref, 16, 16),
                        0.0)

        # scalar_output_conv: ConvT(16->1, 2, s2), no activation.  Emitted in
        # phase-separated layout (rows 0..3 = (di,dj) phases, rows 4..7 zero
        # M-padding); the 2x2 pixel interleave happens outside the kernel.
        y = jnp.dot(w3_ref[...], h.astype(jnp.bfloat16),
                    preferred_element_type=jnp.float32)              # (8, 256)
        o_ref[t] = y + b3_ref[...]


# ---------------------------------------------------------------------------
# Parameter handling
# ---------------------------------------------------------------------------
def init_params(key):
    """PyTorch-layout parameters (same layouts as the nn.Module)."""
    ks = jax.random.split(key, 10)
    s = 0.05
    return {
        # DecoderBlock(128 -> 64): ConvTranspose2d weight (Cin, Cout, 2, 2)
        "dec1_w": s * jax.random.normal(ks[0], (128, 64, 2, 2), jnp.float32),
        "dec1_b": s * jax.random.normal(ks[1], (64,), jnp.float32),
        # LadderBlock(64): Conv2d(128 -> 64, 3) weight (Cout, Cin, 3, 3)
        "lad1_w": s * jax.random.normal(ks[2], (64, 128, 3, 3), jnp.float32),
        "lad1_b": s * jax.random.normal(ks[3], (64,), jnp.float32),
        # DecoderBlock(64 -> 16)
        "dec2_w": s * jax.random.normal(ks[4], (64, 16, 2, 2), jnp.float32),
        "dec2_b": s * jax.random.normal(ks[5], (16,), jnp.float32),
        # LadderBlock(16): Conv2d(32 -> 16, 3)
        "lad2_w": s * jax.random.normal(ks[6], (16, 32, 3, 3), jnp.float32),
        "lad2_b": s * jax.random.normal(ks[7], (16,), jnp.float32),
        # scalar_output_conv: ConvTranspose2d(16 -> 1, 2, stride=2)
        "out_w": s * jax.random.normal(ks[8], (16, 1, 2, 2), jnp.float32),
        "out_b": s * jax.random.normal(ks[9], (1,), jnp.float32),
    }


def prepare_params(p):
    """One-time conversion of PyTorch-layout params to kernel layouts."""
    bf16 = jnp.bfloat16

    def deconv_w_stacked(w):       # (Cin, Cout, 2, 2) -> (4*Cout, Cin), k=di*2+dj
        cin, cout = w.shape[0], w.shape[1]
        return jnp.transpose(w, (2, 3, 1, 0)).reshape(4 * cout, cin).astype(bf16)

    def ladder_w_fused(w):         # (Cout, 2C, 3, 3) -> (Cout, 9*2C), col=k*2C+c
        cout, cin = w.shape[0], w.shape[1]
        return jnp.transpose(w, (0, 2, 3, 1)).reshape(cout, 9 * cin).astype(bf16)

    def bias(b):
        return b.reshape(-1, 1).astype(jnp.float32)

    w3 = deconv_w_stacked(p["out_w"])                               # (4, 16)
    w3 = jnp.concatenate([w3, jnp.zeros((4, 16), bf16)], axis=0)    # pad M 4->8

    return {
        "w1": deconv_w_stacked(p["dec1_w"]),                        # (256, 128)
        "b1": bias(p["dec1_b"]),
        "sc1": jnp.asarray(_scatter_combined(4, 4), jnp.float32),   # (64, 64)
        "wl1": ladder_w_fused(p["lad1_w"]),                         # (64, 1152)
        "bl1": bias(p["lad1_b"]),
        "m1": jnp.asarray(_shift_masks(8, 8), bf16),                # (9, 1, 64)
        "w2": deconv_w_stacked(p["dec2_w"]),                        # (64, 64)
        "b2": bias(p["dec2_b"]),
        "sc2": jnp.asarray(_scatter_combined(8, 8), jnp.float32),   # (256, 256)
        "wl2": ladder_w_fused(p["lad2_w"]),                         # (16, 288)
        "bl2": bias(p["lad2_b"]),
        "m2": jnp.asarray(_shift_masks(16, 16), bf16),              # (9, 1, 256)
        "w3": w3,                                                   # (8, 16)
        "b3": bias(p["out_b"]),                                     # (1, 1)
    }


# ---------------------------------------------------------------------------
# Forward pass: NCHW in -> NCHW out
# ---------------------------------------------------------------------------
_BT = 2   # images per grid step (unrolled in-kernel so their chains interleave)


@jax.jit
def decoder_forward(kp, enc1, enc2, enc3):
    B = enc3.shape[0]
    bt = _BT if B % _BT == 0 else 1
    e3 = enc3.reshape(B, 128, 16)    # 4x4   -> (C, H*W), free reshape
    e2 = enc2.reshape(B, 64, 64)     # 8x8
    e1 = enc1.reshape(B, 16, 256)    # 16x16

    def act_spec(shape):
        return pl.BlockSpec((bt,) + shape, lambda b: (b, 0, 0))

    def const_spec(x):
        nd = x.ndim
        return pl.BlockSpec(x.shape, lambda b: (0,) * nd)

    consts = (kp["w1"], kp["b1"], kp["sc1"],
              kp["wl1"], kp["bl1"], kp["m1"],
              kp["w2"], kp["b2"], kp["sc2"],
              kp["wl2"], kp["bl2"], kp["m2"],
              kp["w3"], kp["b3"])

    in_specs = [act_spec((128, 16)), act_spec((64, 64)), act_spec((16, 256))]
    in_specs += [const_spec(c) for c in consts]

    phases = pl.pallas_call(
        _decoder_kernel,
        out_shape=jax.ShapeDtypeStruct((B, 8, 256), jnp.float32),
        grid=(B // bt,),
        in_specs=in_specs,
        out_specs=pl.BlockSpec((bt, 8, 256), lambda b: (b, 0, 0)),
        compiler_params=pltpu.CompilerParams(
            dimension_semantics=("parallel",)),
        cost_estimate=pl.CostEstimate(
            flops=int(1.62e7) * B,            # ~8.1e6 MAC / image
            transcendentals=0,
            bytes_accessed=int(4.5e4) * B + 520_000),
    )(e3, e2, e1, *consts)

    # Phase-separated (di, dj) output -> NCHW 32x32 (tiny XLA epilogue):
    # phases[n, di*2+dj, i*16+j] -> out[n, 0, 2i+di, 2j+dj]
    ph = phases[:, :4, :].reshape(B, 2, 2, 16, 16)            # (n, di, dj, i, j)
    out = ph.transpose(0, 3, 1, 4, 2).reshape(B, 1, 32, 32)
    return out


# ---------------------------------------------------------------------------
# Pure NumPy f32 reference of the same forward pass (for verification)
# ---------------------------------------------------------------------------
def _reference_decoder(p, enc1, enc2, enc3):
    p = {k: np.asarray(v) for k, v in p.items()}
    enc1, enc2, enc3 = np.asarray(enc1), np.asarray(enc2), np.asarray(enc3)

    def convT(x, w, b):                      # w: (Cin, Cout, 2, 2), stride 2
        y = np.einsum('ncij,cokl->noikjl', x, w)
        n, co, h, _, wd, _ = y.shape
        return y.reshape(n, co, 2 * h, 2 * wd) + b.reshape(1, -1, 1, 1)

    def conv3(x, w, b):                      # w: (Cout, Cin, 3, 3), pad 1
        n, c, h, wd = x.shape
        xp = np.pad(x, ((0, 0), (0, 0), (1, 1), (1, 1)))
        out = np.zeros((n, w.shape[0], h, wd), np.float32)
        for ky in range(3):
            for kx in range(3):
                out += np.einsum('ncij,oc->noij',
                                 xp[:, :, ky:ky + h, kx:kx + wd],
                                 w[:, :, ky, kx])
        return out + b.reshape(1, -1, 1, 1)

    relu = lambda v: np.maximum(v, 0.0)
    x = relu(convT(enc3, p["dec1_w"], p["dec1_b"]))
    x = relu(conv3(np.concatenate([x, enc2], 1), p["lad1_w"], p["lad1_b"]))
    x = relu(convT(x, p["dec2_w"], p["dec2_b"]))
    x = relu(conv3(np.concatenate([x, enc1], 1), p["lad2_w"], p["lad2_b"]))
    return convT(x, p["out_w"], p["out_b"])


if __name__ == "__main__":
    key = jax.random.PRNGKey(0)
    kp_key, k1, k2, k3 = jax.random.split(key, 4)
    params = init_params(kp_key)
    kparams = prepare_params(params)   # one-time weight layout conversion

    B = 8
    enc3 = jax.random.normal(k3, (B, 128, 4, 4), jnp.float32)    # deepest
    enc2 = jax.random.normal(k2, (B, 64, 8, 8), jnp.float32)
    enc1 = jax.random.normal(k1, (B, 16, 16, 16), jnp.float32)

    out = decoder_forward(kparams, enc1, enc2, enc3)
    out = jax.block_until_ready(out)
    assert out.shape == (B, 1, 32, 32), out.shape
    assert bool(jnp.all(jnp.isfinite(out)))

    # Verify against an f32 reference (bf16 channel matmuls -> loose tolerance).
    ref = _reference_decoder(params, enc1, enc2, enc3)
    rel = float(np.linalg.norm(np.asarray(out) - ref) /
                (np.linalg.norm(ref) + 1e-12))
    assert rel < 3e-2, f"relative error vs reference: {rel}"
    print("KERNEL_OK")
</pallas_src>

<mosaic_0001>
module attributes {stable_mosaic.version = 11 : i64} {
  func.func @_decoder_kernel(%arg0: i32, %arg1: memref<2x128x16xf32, #tpu.memory_space<vmem>>, %arg2: memref<2x64x64xf32, #tpu.memory_space<vmem>>, %arg3: memref<2x16x256xf32, #tpu.memory_space<vmem>>, %arg4: memref<256x128xbf16, #tpu.memory_space<vmem>>, %arg5: memref<64x1xf32, #tpu.memory_space<vmem>>, %arg6: memref<64x64xf32, #tpu.memory_space<vmem>>, %arg7: memref<64x1152xbf16, #tpu.memory_space<vmem>>, %arg8: memref<64x1xf32, #tpu.memory_space<vmem>>, %arg9: memref<9x1x64xbf16, #tpu.memory_space<vmem>>, %arg10: memref<64x64xbf16, #tpu.memory_space<vmem>>, %arg11: memref<16x1xf32, #tpu.memory_space<vmem>>, %arg12: memref<256x256xf32, #tpu.memory_space<vmem>>, %arg13: memref<16x288xbf16, #tpu.memory_space<vmem>>, %arg14: memref<16x1xf32, #tpu.memory_space<vmem>>, %arg15: memref<9x1x256xbf16, #tpu.memory_space<vmem>>, %arg16: memref<8x16xbf16, #tpu.memory_space<vmem>>, %arg17: memref<1x1xf32, #tpu.memory_space<vmem>>, %arg18: memref<2x8x256xf32, #tpu.memory_space<vmem>>) attributes {dimension_semantics = [#tpu.dimension_semantics<parallel>], iteration_bounds = array<i64: 4>, scalar_prefetch = 0 : i64, scratch_operands = 0 : i64, tpu.core_type = #tpu.core_type<tc>, window_params = [{transform_indices = @transform_0, window_bounds = array<i64: 2, 128, 16>}, {transform_indices = @transform_1, window_bounds = array<i64: 2, 64, 64>}, {transform_indices = @transform_2, window_bounds = array<i64: 2, 16, 256>}, {pipeline_mode = #tpu.pipeline_mode<synchronous>, transform_indices = @transform_3, window_bounds = array<i64: 256, 128>}, {pipeline_mode = #tpu.pipeline_mode<synchronous>, transform_indices = @transform_4, window_bounds = array<i64: 64, 1>}, {pipeline_mode = #tpu.pipeline_mode<synchronous>, transform_indices = @transform_5, window_bounds = array<i64: 64, 64>}, {pipeline_mode = #tpu.pipeline_mode<synchronous>, transform_indices = @transform_6, window_bounds = array<i64: 64, 1152>}, {pipeline_mode = #tpu.pipeline_mode<synchronous>, transform_indices = @transform_7, window_bounds = array<i64: 64, 1>}, {pipeline_mode = #tpu.pipeline_mode<synchronous>, transform_indices = @transform_8, window_bounds = array<i64: 9, 1, 64>}, {pipeline_mode = #tpu.pipeline_mode<synchronous>, transform_indices = @transform_9, window_bounds = array<i64: 64, 64>}, {pipeline_mode = #tpu.pipeline_mode<synchronous>, transform_indices = @transform_10, window_bounds = array<i64: 16, 1>}, {pipeline_mode = #tpu.pipeline_mode<synchronous>, transform_indices = @transform_11, window_bounds = array<i64: 256, 256>}, {pipeline_mode = #tpu.pipeline_mode<synchronous>, transform_indices = @transform_12, window_bounds = array<i64: 16, 288>}, {pipeline_mode = #tpu.pipeline_mode<synchronous>, transform_indices = @transform_13, window_bounds = array<i64: 16, 1>}, {pipeline_mode = #tpu.pipeline_mode<synchronous>, transform_indices = @transform_14, window_bounds = array<i64: 9, 1, 256>}, {pipeline_mode = #tpu.pipeline_mode<synchronous>, transform_indices = @transform_15, window_bounds = array<i64: 8, 16>}, {pipeline_mode = #tpu.pipeline_mode<synchronous>, transform_indices = @transform_16, window_bounds = array<i64: 1, 1>}, {transform_indices = @transform_17, window_bounds = array<i64: 2, 8, 256>}]} {
    %c0 = arith.constant 0 : index
    %c0_0 = arith.constant 0 : index
    %c0_1 = arith.constant 0 : index
    %0 = vector.load %arg1[%c0, %c0_0, %c0_1] : memref<2x128x16xf32, #tpu.memory_space<vmem>>, vector<1x128x16xf32>
    %1 = vector.shape_cast %0 : vector<1x128x16xf32> to vector<128x16xf32>
    %c0_2 = arith.constant 0 : index
    %c0_3 = arith.constant 0 : index
    %c0_4 = arith.constant 0 : index
    %2 = vector.load %arg2[%c0_2, %c0_3, %c0_4] : memref<2x64x64xf32, #tpu.memory_space<vmem>>, vector<1x64x64xf32>
    %3 = vector.shape_cast %2 : vector<1x64x64xf32> to vector<64x64xf32>
    %c0_5 = arith.constant 0 : index
    %c0_6 = arith.constant 0 : index
    %c0_7 = arith.constant 0 : index
    %4 = vector.load %arg3[%c0_5, %c0_6, %c0_7] : memref<2x16x256xf32, #tpu.memory_space<vmem>>, vector<1x16x256xf32>
    %5 = vector.shape_cast %4 : vector<1x16x256xf32> to vector<16x256xf32>
    %c0_8 = arith.constant 0 : index
    %c0_9 = arith.constant 0 : index
    %6 = vector.load %arg4[%c0_8, %c0_9] : memref<256x128xbf16, #tpu.memory_space<vmem>>, vector<256x128xbf16>
    %7 = arith.truncf %1 : vector<128x16xf32> to vector<128x16xbf16>
    %cst = arith.constant dense<0.000000e+00> : vector<256x16xf32>
    %8 = tpu.matmul %6, %7, %cst {dimension_numbers = #tpu.dot_dimension_numbers<[1], [0], [0], [1], [0, 0, 1, 1], [], []>} : vector<256x128xbf16>, vector<128x16xbf16>, vector<256x16xf32> -> vector<256x16xf32>
    %9 = vector.extract_strided_slice %8 {offsets = [0, 0], sizes = [64, 16], strides = [1, 1]} : vector<256x16xf32> to vector<64x16xf32>
    %10 = vector.extract_strided_slice %8 {offsets = [64, 0], sizes = [64, 16], strides = [1, 1]} : vector<256x16xf32> to vector<64x16xf32>
    %11 = vector.extract_strided_slice %8 {offsets = [128, 0], sizes = [64, 16], strides = [1, 1]} : vector<256x16xf32> to vector<64x16xf32>
    %12 = vector.extract_strided_slice %8 {offsets = [192, 0], sizes = [64, 16], strides = [1, 1]} : vector<256x16xf32> to vector<64x16xf32>
    %13 = tpu.concatenate %9, %10, %11, %12 in 1 : vector<64x16xf32>, vector<64x16xf32>, vector<64x16xf32>, vector<64x16xf32> -> vector<64x64xf32>
    %c0_10 = arith.constant 0 : index
    %c0_11 = arith.constant 0 : index
    %14 = vector.load %arg6[%c0_10, %c0_11] : memref<64x64xf32, #tpu.memory_space<vmem>>, vector<64x64xf32>
    %cst_12 = arith.constant dense<0.000000e+00> : vector<64x64xf32>
    %15 = tpu.matmul %13, %14, %cst_12 {dimension_numbers = #tpu.dot_dimension_numbers<[1], [0], [0], [1], [0, 0, 1, 1], [], []>} : vector<64x64xf32>, vector<64x64xf32>, vector<64x64xf32> -> vector<64x64xf32>
    %c0_13 = arith.constant 0 : index
    %c0_14 = arith.constant 0 : index
    %16 = vector.load %arg5[%c0_13, %c0_14] : memref<64x1xf32, #tpu.memory_space<vmem>>, vector<64x1xf32>
    %17 = vector.broadcast %16 : vector<64x1xf32> to vector<64x64xf32>
    %18 = arith.addf %15, %17 : vector<64x64xf32>
    %cst_15 = arith.constant 0.000000e+00 : f32
    %19 = vector.broadcast %cst_15 : f32 to vector<64x64xf32>
    %20 = arith.maximumf %18, %19 : vector<64x64xf32>
    %21 = tpu.concatenate %20, %3 in 0 : vector<64x64xf32>, vector<64x64xf32> -> vector<128x64xf32>
    %22 = arith.truncf %21 : vector<128x64xf32> to vector<128x64xbf16>
    %cst_16 = arith.constant 0.000000e+00 : bf16
    %23 = vector.broadcast %cst_16 : bf16 to vector<128x9xbf16>
    %24 = vector.extract_strided_slice %22 {offsets = [0, 0], sizes = [128, 55], strides = [1, 1]} : vector<128x64xbf16> to vector<128x55xbf16>
    %25 = tpu.concatenate %23, %24 in 1 : vector<128x9xbf16>, vector<128x55xbf16> -> vector<128x64xbf16>
    %c0_17 = arith.constant 0 : index
    %c0_18 = arith.constant 0 : index
    %c0_19 = arith.constant 0 : index
    %26 = vector.load %arg9[%c0_17, %c0_18, %c0_19] : memref<9x1x64xbf16, #tpu.memory_space<vmem>>, vector<1x1x64xbf16>
    %27 = vector.shape_cast %26 : vector<1x1x64xbf16> to vector<1x64xbf16>
    %28 = vector.broadcast %27 : vector<1x64xbf16> to vector<128x64xbf16>
    %29 = arith.mulf %25, %28 : vector<128x64xbf16>
    %cst_20 = arith.constant 0.000000e+00 : bf16
    %30 = vector.broadcast %cst_20 : bf16 to vector<128x8xbf16>
    %31 = vector.extract_strided_slice %22 {offsets = [0, 0], sizes = [128, 56], strides = [1, 1]} : vector<128x64xbf16> to vector<128x56xbf16>
    %32 = tpu.concatenate %30, %31 in 1 : vector<128x8xbf16>, vector<128x56xbf16> -> vector<128x64xbf16>
    %c1 = arith.constant 1 : index
    %c0_21 = arith.constant 0 : index
    %c0_22 = arith.constant 0 : index
    %33 = vector.load %arg9[%c1, %c0_21, %c0_22] : memref<9x1x64xbf16, #tpu.memory_space<vmem>>, vector<1x1x64xbf16>
    %34 = vector.shape_cast %33 : vector<1x1x64xbf16> to vector<1x64xbf16>
    %35 = vector.broadcast %34 : vector<1x64xbf16> to vector<128x64xbf16>
    %36 = arith.mulf %32, %35 : vector<128x64xbf16>
    %cst_23 = arith.constant 0.000000e+00 : bf16
    %37 = vector.broadcast %cst_23 : bf16 to vector<128x7xbf16>
    %38 = vector.extract_strided_slice %22 {offsets = [0, 0], sizes = [128, 57], strides = [1, 1]} : vector<128x64xbf16> to vector<128x57xbf16>
    %39 = tpu.concatenate %37, %38 in 1 : vector<128x7xbf16>, vector<128x57xbf16> -> vector<128x64xbf16>
    %c2 = arith.constant 2 : index
    %c0_24 = arith.constant 0 : index
    %c0_25 = arith.constant 0 : index
    %40 = vector.load %arg9[%c2, %c0_24, %c0_25] : memref<9x1x64xbf16, #tpu.memory_space<vmem>>, vector<1x1x64xbf16>
    %41 = vector.shape_cast %40 : vector<1x1x64xbf16> to vector<1x64xbf16>
    %42 = vector.broadcast %41 : vector<1x64xbf16> to vector<128x64xbf16>
    %43 = arith.mulf %39, %42 : vector<128x64xbf16>
    %cst_26 = arith.constant 0.000000e+00 : bf16
    %44 = vector.broadcast %cst_26 : bf16 to vector<128x1xbf16>
    %45 = vector.extract_strided_slice %22 {offsets = [0, 0], sizes = [128, 63], strides = [1, 1]} : vector<128x64xbf16> to vector<128x63xbf16>
    %46 = tpu.concatenate %44, %45 in 1 : vector<128x1xbf16>, vector<128x63xbf16> -> vector<128x64xbf16>
    %c3 = arith.constant 3 : index
    %c0_27 = arith.constant 0 : index
    %c0_28 = arith.constant 0 : index
    %47 = vector.load %arg9[%c3, %c0_27, %c0_28] : memref<9x1x64xbf16, #tpu.memory_space<vmem>>, vector<1x1x64xbf16>
    %48 = vector.shape_cast %47 : vector<1x1x64xbf16> to vector<1x64xbf16>
    %49 = vector.broadcast %48 : vector<1x64xbf16> to vector<128x64xbf16>
    %50 = arith.mulf %46, %49 : vector<128x64xbf16>
    %c4 = arith.constant 4 : index
    %c0_29 = arith.constant 0 : index
    %c0_30 = arith.constant 0 : index
    %51 = vector.load %arg9[%c4, %c0_29, %c0_30] : memref<9x1x64xbf16, #tpu.memory_space<vmem>>, vector<1x1x64xbf16>
    %52 = vector.shape_cast %51 : vector<1x1x64xbf16> to vector<1x64xbf16>
    %53 = vector.broadcast %52 : vector<1x64xbf16> to vector<128x64xbf16>
    %54 = arith.mulf %22, %53 : vector<128x64xbf16>
    %cst_31 = arith.constant 0.000000e+00 : bf16
    %55 = vector.broadcast %cst_31 : bf16 to vector<128x1xbf16>
    %56 = vector.extract_strided_slice %22 {offsets = [0, 1], sizes = [128, 63], strides = [1, 1]} : vector<128x64xbf16> to vector<128x63xbf16>
    %57 = tpu.concatenate %56, %55 in 1 : vector<128x63xbf16>, vector<128x1xbf16> -> vector<128x64xbf16>
    %c5 = arith.constant 5 : index
    %c0_32 = arith.constant 0 : index
    %c0_33 = arith.constant 0 : index
    %58 = vector.load %arg9[%c5, %c0_32, %c0_33] : memref<9x1x64xbf16, #tpu.memory_space<vmem>>, vector<1x1x64xbf16>
    %59 = vector.shape_cast %58 : vector<1x1x64xbf16> to vector<1x64xbf16>
    %60 = vector.broadcast %59 : vector<1x64xbf16> to vector<128x64xbf16>
    %61 = arith.mulf %57, %60 : vector<128x64xbf16>
    %cst_34 = arith.constant 0.000000e+00 : bf16
    %62 = vector.broadcast %cst_34 : bf16 to vector<128x7xbf16>
    %63 = vector.extract_strided_slice %22 {offsets = [0, 7], sizes = [128, 57], strides = [1, 1]} : vector<128x64xbf16> to vector<128x57xbf16>
    %64 = tpu.concatenate %63, %62 in 1 : vector<128x57xbf16>, vector<128x7xbf16> -> vector<128x64xbf16>
    %c6 = arith.constant 6 : index
    %c0_35 = arith.constant 0 : index
    %c0_36 = arith.constant 0 : index
    %65 = vector.load %arg9[%c6, %c0_35, %c0_36] : memref<9x1x64xbf16, #tpu.memory_space<vmem>>, vector<1x1x64xbf16>
    %66 = vector.shape_cast %65 : vector<1x1x64xbf16> to vector<1x64xbf16>
    %67 = vector.broadcast %66 : vector<1x64xbf16> to vector<128x64xbf16>
    %68 = arith.mulf %64, %67 : vector<128x64xbf16>
    %cst_37 = arith.constant 0.000000e+00 : bf16
    %69 = vector.broadcast %cst_37 : bf16 to vector<128x8xbf16>
    %70 = vector.extract_strided_slice %22 {offsets = [0, 8], sizes = [128, 56], strides = [1, 1]} : vector<128x64xbf16> to vector<128x56xbf16>
    %71 = tpu.concatenate %70, %69 in 1 : vector<128x56xbf16>, vector<128x8xbf16> -> vector<128x64xbf16>
    %c7 = arith.constant 7 : index
    %c0_38 = arith.constant 0 : index
    %c0_39 = arith.constant 0 : index
    %72 = vector.load %arg9[%c7, %c0_38, %c0_39] : memref<9x1x64xbf16, #tpu.memory_space<vmem>>, vector<1x1x64xbf16>
    %73 = vector.shape_cast %72 : vector<1x1x64xbf16> to vector<1x64xbf16>
    %74 = vector.broadcast %73 : vector<1x64xbf16> to vector<128x64xbf16>
    %75 = arith.mulf %71, %74 : vector<128x64xbf16>
    %cst_40 = arith.constant 0.000000e+00 : bf16
    %76 = vector.broadcast %cst_40 : bf16 to vector<128x9xbf16>
    %77 = vector.extract_strided_slice %22 {offsets = [0, 9], sizes = [128, 55], strides = [1, 1]} : vector<128x64xbf16> to vector<128x55xbf16>
    %78 = tpu.concatenate %77, %76 in 1 : vector<128x55xbf16>, vector<128x9xbf16> -> vector<128x64xbf16>
    %c8 = arith.constant 8 : index
    %c0_41 = arith.constant 0 : index
    %c0_42 = arith.constant 0 : index
    %79 = vector.load %arg9[%c8, %c0_41, %c0_42] : memref<9x1x64xbf16, #tpu.memory_space<vmem>>, vector<1x1x64xbf16>
    %80 = vector.shape_cast %79 : vector<1x1x64xbf16> to vector<1x64xbf16>
    %81 = vector.broadcast %80 : vector<1x64xbf16> to vector<128x64xbf16>
    %82 = arith.mulf %78, %81 : vector<128x64xbf16>
    %83 = tpu.concatenate %29, %36, %43, %50, %54, %61, %68, %75, %82 in 0 : vector<128x64xbf16>, vector<128x64xbf16>, vector<128x64xbf16>, vector<128x64xbf16>, vector<128x64xbf16>, vector<128x64xbf16>, vector<128x64xbf16>, vector<128x64xbf16>, vector<128x64xbf16> -> vector<1152x64xbf16>
    %c0_43 = arith.constant 0 : index
    %c0_44 = arith.constant 0 : index
    %84 = vector.load %arg7[%c0_43, %c0_44] : memref<64x1152xbf16, #tpu.memory_space<vmem>>, vector<64x1152xbf16>
    %cst_45 = arith.constant dense<0.000000e+00> : vector<64x64xf32>
    %85 = tpu.matmul %84, %83, %cst_45 {dimension_numbers = #tpu.dot_dimension_numbers<[1], [0], [0], [1], [0, 0, 1, 1], [], []>} : vector<64x1152xbf16>, vector<1152x64xbf16>, vector<64x64xf32> -> vector<64x64xf32>
    %c0_46 = arith.constant 0 : index
    %c0_47 = arith.constant 0 : index
    %86 = vector.load %arg8[%c0_46, %c0_47] : memref<64x1xf32, #tpu.memory_space<vmem>>, vector<64x1xf32>
    %87 = vector.broadcast %86 : vector<64x1xf32> to vector<64x64xf32>
    %88 = arith.addf %85, %87 : vector<64x64xf32>
    %cst_48 = arith.constant 0.000000e+00 : f32
    %89 = vector.broadcast %cst_48 : f32 to vector<64x64xf32>
    %90 = arith.maximumf %88, %89 : vector<64x64xf32>
    %c0_49 = arith.constant 0 : index
    %c0_50 = arith.constant 0 : index
    %91 = vector.load %arg10[%c0_49, %c0_50] : memref<64x64xbf16, #tpu.memory_space<vmem>>, vector<64x64xbf16>
    %92 = arith.truncf %90 : vector<64x64xf32> to vector<64x64xbf16>
    %cst_51 = arith.constant dense<0.000000e+00> : vector<64x64xf32>
    %93 = tpu.matmul %91, %92, %cst_51 {dimension_numbers = #tpu.dot_dimension_numbers<[1], [0], [0], [1], [0, 0, 1, 1], [], []>} : vector<64x64xbf16>, vector<64x64xbf16>, vector<64x64xf32> -> vector<64x64xf32>
    %94 = vector.extract_strided_slice %93 {offsets = [0, 0], sizes = [16, 64], strides = [1, 1]} : vector<64x64xf32> to vector<16x64xf32>
    %95 = vector.extract_strided_slice %93 {offsets = [16, 0], sizes = [16, 64], strides = [1, 1]} : vector<64x64xf32> to vector<16x64xf32>
    %96 = vector.extract_strided_slice %93 {offsets = [32, 0], sizes = [16, 64], strides = [1, 1]} : vector<64x64xf32> to vector<16x64xf32>
    %97 = vector.extract_strided_slice %93 {offsets = [48, 0], sizes = [16, 64], strides = [1, 1]} : vector<64x64xf32> to vector<16x64xf32>
    %98 = tpu.concatenate %94, %95, %96, %97 in 1 : vector<16x64xf32>, vector<16x64xf32>, vector<16x64xf32>, vector<16x64xf32> -> vector<16x256xf32>
    %c0_52 = arith.constant 0 : index
    %c0_53 = arith.constant 0 : index
    %99 = vector.load %arg12[%c0_52, %c0_53] : memref<256x256xf32, #tpu.memory_space<vmem>>, vector<256x256xf32>
    %cst_54 = arith.constant dense<0.000000e+00> : vector<16x256xf32>
    %100 = tpu.matmul %98, %99, %cst_54 {dimension_numbers = #tpu.dot_dimension_numbers<[1], [0], [0], [1], [0, 0, 1, 1], [], []>} : vector<16x256xf32>, vector<256x256xf32>, vector<16x256xf32> -> vector<16x256xf32>
    %c0_55 = arith.constant 0 : index
    %c0_56 = arith.constant 0 : index
    %101 = vector.load %arg11[%c0_55, %c0_56] : memref<16x1xf32, #tpu.memory_space<vmem>>, vector<16x1xf32>
    %102 = vector.broadcast %101 : vector<16x1xf32> to vector<16x256xf32>
    %103 = arith.addf %100, %102 : vector<16x256xf32>
    %cst_57 = arith.constant 0.000000e+00 : f32
    %104 = vector.broadcast %cst_57 : f32 to vector<16x256xf32>
    %105 = arith.maximumf %103, %104 : vector<16x256xf32>
    %106 = tpu.concatenate %105, %5 in 0 : vector<16x256xf32>, vector<16x256xf32> -> vector<32x256xf32>
    %107 = arith.truncf %106 : vector<32x256xf32> to vector<32x256xbf16>
    %cst_58 = arith.constant 0.000000e+00 : bf16
    %108 = vector.broadcast %cst_58 : bf16 to vector<32x17xbf16>
    %109 = vector.extract_strided_slice %107 {offsets = [0, 0], sizes = [32, 239], strides = [1, 1]} : vector<32x256xbf16> to vector<32x239xbf16>
    %110 = tpu.concatenate %108, %109 in 1 : vector<32x17xbf16>, vector<32x239xbf16> -> vector<32x256xbf16>
    %c0_59 = arith.constant 0 : index
    %c0_60 = arith.constant 0 : index
    %c0_61 = arith.constant 0 : index
    %111 = vector.load %arg15[%c0_59, %c0_60, %c0_61] : memref<9x1x256xbf16, #tpu.memory_space<vmem>>, vector<1x1x256xbf16>
    %112 = vector.shape_cast %111 : vector<1x1x256xbf16> to vector<1x256xbf16>
    %113 = vector.broadcast %112 : vector<1x256xbf16> to vector<32x256xbf16>
    %114 = arith.mulf %110, %113 : vector<32x256xbf16>
    %cst_62 = arith.constant 0.000000e+00 : bf16
    %115 = vector.broadcast %cst_62 : bf16 to vector<32x16xbf16>
    %116 = vector.extract_strided_slice %107 {offsets = [0, 0], sizes = [32, 240], strides = [1, 1]} : vector<32x256xbf16> to vector<32x240xbf16>
    %117 = tpu.concatenate %115, %116 in 1 : vector<32x16xbf16>, vector<32x240xbf16> -> vector<32x256xbf16>
    %c1_63 = arith.constant 1 : index
    %c0_64 = arith.constant 0 : index
    %c0_65 = arith.constant 0 : index
    %118 = vector.load %arg15[%c1_63, %c0_64, %c0_65] : memref<9x1x256xbf16, #tpu.memory_space<vmem>>, vector<1x1x256xbf16>
    %119 = vector.shape_cast %118 : vector<1x1x256xbf16> to vector<1x256xbf16>
    %120 = vector.broadcast %119 : vector<1x256xbf16> to vector<32x256xbf16>
    %121 = arith.mulf %117, %120 : vector<32x256xbf16>
    %cst_66 = arith.constant 0.000000e+00 : bf16
    %122 = vector.broadcast %cst_66 : bf16 to vector<32x15xbf16>
    %123 = vector.extract_strided_slice %107 {offsets = [0, 0], sizes = [32, 241], strides = [1, 1]} : vector<32x256xbf16> to vector<32x241xbf16>
    %124 = tpu.concatenate %122, %123 in 1 : vector<32x15xbf16>, vector<32x241xbf16> -> vector<32x256xbf16>
    %c2_67 = arith.constant 2 : index
    %c0_68 = arith.constant 0 : index
    %c0_69 = arith.constant 0 : index
    %125 = vector.load %arg15[%c2_67, %c0_68, %c0_69] : memref<9x1x256xbf16, #tpu.memory_space<vmem>>, vector<1x1x256xbf16>
    %126 = vector.shape_cast %125 : vector<1x1x256xbf16> to vector<1x256xbf16>
    %127 = vector.broadcast %126 : vector<1x256xbf16> to vector<32x256xbf16>
    %128 = arith.mulf %124, %127 : vector<32x256xbf16>
    %cst_70 = arith.constant 0.000000e+00 : bf16
    %129 = vector.broadcast %cst_70 : bf16 to vector<32x1xbf16>
    %130 = vector.extract_strided_slice %107 {offsets = [0, 0], sizes = [32, 255], strides = [1, 1]} : vector<32x256xbf16> to vector<32x255xbf16>
    %131 = tpu.concatenate %129, %130 in 1 : vector<32x1xbf16>, vector<32x255xbf16> -> vector<32x256xbf16>
    %c3_71 = arith.constant 3 : index
    %c0_72 = arith.constant 0 : index
    %c0_73 = arith.constant 0 : index
    %132 = vector.load %arg15[%c3_71, %c0_72, %c0_73] : memref<9x1x256xbf16, #tpu.memory_space<vmem>>, vector<1x1x256xbf16>
    %133 = vector.shape_cast %132 : vector<1x1x256xbf16> to vector<1x256xbf16>
    %134 = vector.broadcast %133 : vector<1x256xbf16> to vector<32x256xbf16>
    %135 = arith.mulf %131, %134 : vector<32x256xbf16>
    %c4_74 = arith.constant 4 : index
    %c0_75 = arith.constant 0 : index
    %c0_76 = arith.constant 0 : index
    %136 = vector.load %arg15[%c4_74, %c0_75, %c0_76] : memref<9x1x256xbf16, #tpu.memory_space<vmem>>, vector<1x1x256xbf16>
    %137 = vector.shape_cast %136 : vector<1x1x256xbf16> to vector<1x256xbf16>
    %138 = vector.broadcast %137 : vector<1x256xbf16> to vector<32x256xbf16>
    %139 = arith.mulf %107, %138 : vector<32x256xbf16>
    %cst_77 = arith.constant 0.000000e+00 : bf16
    %140 = vector.broadcast %cst_77 : bf16 to vector<32x1xbf16>
    %141 = vector.extract_strided_slice %107 {offsets = [0, 1], sizes = [32, 255], strides = [1, 1]} : vector<32x256xbf16> to vector<32x255xbf16>
    %142 = tpu.concatenate %141, %140 in 1 : vector<32x255xbf16>, vector<32x1xbf16> -> vector<32x256xbf16>
    %c5_78 = arith.constant 5 : index
    %c0_79 = arith.constant 0 : index
    %c0_80 = arith.constant 0 : index
    %143 = vector.load %arg15[%c5_78, %c0_79, %c0_80] : memref<9x1x256xbf16, #tpu.memory_space<vmem>>, vector<1x1x256xbf16>
    %144 = vector.shape_cast %143 : vector<1x1x256xbf16> to vector<1x256xbf16>
    %145 = vector.broadcast %144 : vector<1x256xbf16> to vector<32x256xbf16>
    %146 = arith.mulf %142, %145 : vector<32x256xbf16>
    %cst_81 = arith.constant 0.000000e+00 : bf16
    %147 = vector.broadcast %cst_81 : bf16 to vector<32x15xbf16>
    %148 = vector.extract_strided_slice %107 {offsets = [0, 15], sizes = [32, 241], strides = [1, 1]} : vector<32x256xbf16> to vector<32x241xbf16>
    %149 = tpu.concatenate %148, %147 in 1 : vector<32x241xbf16>, vector<32x15xbf16> -> vector<32x256xbf16>
    %c6_82 = arith.constant 6 : index
    %c0_83 = arith.constant 0 : index
    %c0_84 = arith.constant 0 : index
    %150 = vector.load %arg15[%c6_82, %c0_83, %c0_84] : memref<9x1x256xbf16, #tpu.memory_space<vmem>>, vector<1x1x256xbf16>
    %151 = vector.shape_cast %150 : vector<1x1x256xbf16> to vector<1x256xbf16>
    %152 = vector.broadcast %151 : vector<1x256xbf16> to vector<32x256xbf16>
    %153 = arith.mulf %149, %152 : vector<32x256xbf16>
    %cst_85 = arith.constant 0.000000e+00 : bf16
    %154 = vector.broadcast %cst_85 : bf16 to vector<32x16xbf16>
    %155 = vector.extract_strided_slice %107 {offsets = [0, 16], sizes = [32, 240], strides = [1, 1]} : vector<32x256xbf16> to vector<32x240xbf16>
    %156 = tpu.concatenate %155, %154 in 1 : vector<32x240xbf16>, vector<32x16xbf16> -> vector<32x256xbf16>
    %c7_86 = arith.constant 7 : index
    %c0_87 = arith.constant 0 : index
    %c0_88 = arith.constant 0 : index
    %157 = vector.load %arg15[%c7_86, %c0_87, %c0_88] : memref<9x1x256xbf16, #tpu.memory_space<vmem>>, vector<1x1x256xbf16>
    %158 = vector.shape_cast %157 : vector<1x1x256xbf16> to vector<1x256xbf16>
    %159 = vector.broadcast %158 : vector<1x256xbf16> to vector<32x256xbf16>
    %160 = arith.mulf %156, %159 : vector<32x256xbf16>
    %cst_89 = arith.constant 0.000000e+00 : bf16
    %161 = vector.broadcast %cst_89 : bf16 to vector<32x17xbf16>
    %162 = vector.extract_strided_slice %107 {offsets = [0, 17], sizes = [32, 239], strides = [1, 1]} : vector<32x256xbf16> to vector<32x239xbf16>
    %163 = tpu.concatenate %162, %161 in 1 : vector<32x239xbf16>, vector<32x17xbf16> -> vector<32x256xbf16>
    %c8_90 = arith.constant 8 : index
    %c0_91 = arith.constant 0 : index
    %c0_92 = arith.constant 0 : index
    %164 = vector.load %arg15[%c8_90, %c0_91, %c0_92] : memref<9x1x256xbf16, #tpu.memory_space<vmem>>, vector<1x1x256xbf16>
    %165 = vector.shape_cast %164 : vector<1x1x256xbf16> to vector<1x256xbf16>
    %166 = vector.broadcast %165 : vector<1x256xbf16> to vector<32x256xbf16>
    %167 = arith.mulf %163, %166 : vector<32x256xbf16>
    %168 = tpu.concatenate %114, %121, %128, %135, %139, %146, %153, %160, %167 in 0 : vector<32x256xbf16>, vector<32x256xbf16>, vector<32x256xbf16>, vector<32x256xbf16>, vector<32x256xbf16>, vector<32x256xbf16>, vector<32x256xbf16>, vector<32x256xbf16>, vector<32x256xbf16> -> vector<288x256xbf16>
    %c0_93 = arith.constant 0 : index
    %c0_94 = arith.constant 0 : index
    %169 = vector.load %arg13[%c0_93, %c0_94] : memref<16x288xbf16, #tpu.memory_space<vmem>>, vector<16x288xbf16>
    %cst_95 = arith.constant dense<0.000000e+00> : vector<16x256xf32>
    %170 = tpu.matmul %169, %168, %cst_95 {dimension_numbers = #tpu.dot_dimension_numbers<[1], [0], [0], [1], [0, 0, 1, 1], [], []>} : vector<16x288xbf16>, vector<288x256xbf16>, vector<16x256xf32> -> vector<16x256xf32>
    %c0_96 = arith.constant 0 : index
    %c0_97 = arith.constant 0 : index
    %171 = vector.load %arg14[%c0_96, %c0_97] : memref<16x1xf32, #tpu.memory_space<vmem>>, vector<16x1xf32>
    %172 = vector.broadcast %171 : vector<16x1xf32> to vector<16x256xf32>
    %173 = arith.addf %170, %172 : vector<16x256xf32>
    %cst_98 = arith.constant 0.000000e+00 : f32
    %174 = vector.broadcast %cst_98 : f32 to vector<16x256xf32>
    %175 = arith.maximumf %173, %174 : vector<16x256xf32>
    %c0_99 = arith.constant 0 : index
    %c0_100 = arith.constant 0 : index
    %176 = vector.load %arg16[%c0_99, %c0_100] : memref<8x16xbf16, #tpu.memory_space<vmem>>, vector<8x16xbf16>
    %177 = arith.truncf %175 : vector<16x256xf32> to vector<16x256xbf16>
    %cst_101 = arith.constant dense<0.000000e+00> : vector<8x256xf32>
    %178 = tpu.matmul %176, %177, %cst_101 {dimension_numbers = #tpu.dot_dimension_numbers<[1], [0], [0], [1], [0, 0, 1, 1], [], []>} : vector<8x16xbf16>, vector<16x256xbf16>, vector<8x256xf32> -> vector<8x256xf32>
    %c0_102 = arith.constant 0 : index
    %c0_103 = arith.constant 0 : index
    %179 = vector.load %arg17[%c0_102, %c0_103] : memref<1x1xf32, #tpu.memory_space<vmem>>, vector<1x1xf32>
    %180 = vector.broadcast %179 : vector<1x1xf32> to vector<8x256xf32>
    %181 = arith.addf %178, %180 : vector<8x256xf32>
    %c0_104 = arith.constant 0 : index
    %c0_105 = arith.constant 0 : index
    %c0_106 = arith.constant 0 : index
    %182 = vector.load %arg18[%c0_104, %c0_105, %c0_106] : memref<2x8x256xf32, #tpu.memory_space<vmem>>, vector<1x8x256xf32>
    %183 = vector.shape_cast %182 : vector<1x8x256xf32> to vector<8x256xf32>
    %184 = vector.shape_cast %181 : vector<8x256xf32> to vector<1x8x256xf32>
    tpu.vector_store %arg18[%c0_104, %c0_105, %c0_106], %184 {strides = array<i32>} : memref<2x8x256xf32, #tpu.memory_space<vmem>>, vector<1x8x256xf32>,
    %c1_107 = arith.constant 1 : index
    %c0_108 = arith.constant 0 : index
    %c0_109 = arith.constant 0 : index
    %185 = vector.load %arg1[%c1_107, %c0_108, %c0_109] : memref<2x128x16xf32, #tpu.memory_space<vmem>>, vector<1x128x16xf32>
    %186 = vector.shape_cast %185 : vector<1x128x16xf32> to vector<128x16xf32>
    %c1_110 = arith.constant 1 : index
    %c0_111 = arith.constant 0 : index
    %c0_112 = arith.constant 0 : index
    %187 = vector.load %arg2[%c1_110, %c0_111, %c0_112] : memref<2x64x64xf32, #tpu.memory_space<vmem>>, vector<1x64x64xf32>
    %188 = vector.shape_cast %187 : vector<1x64x64xf32> to vector<64x64xf32>
    %c1_113 = arith.constant 1 : index
    %c0_114 = arith.constant 0 : index
    %c0_115 = arith.constant 0 : index
    %189 = vector.load %arg3[%c1_113, %c0_114, %c0_115] : memref<2x16x256xf32, #tpu.memory_space<vmem>>, vector<1x16x256xf32>
    %190 = vector.shape_cast %189 : vector<1x16x256xf32> to vector<16x256xf32>
    %c0_116 = arith.constant 0 : index
    %c0_117 = arith.constant 0 : index
    %191 = vector.load %arg4[%c0_116, %c0_117] : memref<256x128xbf16, #tpu.memory_space<vmem>>, vector<256x128xbf16>
    %192 = arith.truncf %186 : vector<128x16xf32> to vector<128x16xbf16>
    %cst_118 = arith.constant dense<0.000000e+00> : vector<256x16xf32>
    %193 = tpu.matmul %191, %192, %cst_118 {dimension_numbers = #tpu.dot_dimension_numbers<[1], [0], [0], [1], [0, 0, 1, 1], [], []>} : vector<256x128xbf16>, vector<128x16xbf16>, vector<256x16xf32> -> vector<256x16xf32>
    %194 = vector.extract_strided_slice %193 {offsets = [0, 0], sizes = [64, 16], strides = [1, 1]} : vector<256x16xf32> to vector<64x16xf32>
    %195 = vector.extract_strided_slice %193 {offsets = [64, 0], sizes = [64, 16], strides = [1, 1]} : vector<256x16xf32> to vector<64x16xf32>
    %196 = vector.extract_strided_slice %193 {offsets = [128, 0], sizes = [64, 16], strides = [1, 1]} : vector<256x16xf32> to vector<64x16xf32>
    %197 = vector.extract_strided_slice %193 {offsets = [192, 0], sizes = [64, 16], strides = [1, 1]} : vector<256x16xf32> to vector<64x16xf32>
    %198 = tpu.concatenate %194, %195, %196, %197 in 1 : vector<64x16xf32>, vector<64x16xf32>, vector<64x16xf32>, vector<64x16xf32> -> vector<64x64xf32>
    %c0_119 = arith.constant 0 : index
    %c0_120 = arith.constant 0 : index
    %199 = vector.load %arg6[%c0_119, %c0_120] : memref<64x64xf32, #tpu.memory_space<vmem>>, vector<64x64xf32>
    %cst_121 = arith.constant dense<0.000000e+00> : vector<64x64xf32>
    %200 = tpu.matmul %198, %199, %cst_121 {dimension_numbers = #tpu.dot_dimension_numbers<[1], [0], [0], [1], [0, 0, 1, 1], [], []>} : vector<64x64xf32>, vector<64x64xf32>, vector<64x64xf32> -> vector<64x64xf32>
    %c0_122 = arith.constant 0 : index
    %c0_123 = arith.constant 0 : index
    %201 = vector.load %arg5[%c0_122, %c0_123] : memref<64x1xf32, #tpu.memory_space<vmem>>, vector<64x1xf32>
    %202 = vector.broadcast %201 : vector<64x1xf32> to vector<64x64xf32>
    %203 = arith.addf %200, %202 : vector<64x64xf32>
    %cst_124 = arith.constant 0.000000e+00 : f32
    %204 = vector.broadcast %cst_124 : f32 to vector<64x64xf32>
    %205 = arith.maximumf %203, %204 : vector<64x64xf32>
    %206 = tpu.concatenate %205, %188 in 0 : vector<64x64xf32>, vector<64x64xf32> -> vector<128x64xf32>
    %207 = arith.truncf %206 : vector<128x64xf32> to vector<128x64xbf16>
    %cst_125 = arith.constant 0.000000e+00 : bf16
    %208 = vector.broadcast %cst_125 : bf16 to vector<128x9xbf16>
    %209 = vector.extract_strided_slice %207 {offsets = [0, 0], sizes = [128, 55], strides = [1, 1]} : vector<128x64xbf16> to vector<128x55xbf16>
    %210 = tpu.concatenate %208, %209 in 1 : vector<128x9xbf16>, vector<128x55xbf16> -> vector<128x64xbf16>
    %c0_126 = arith.constant 0 : index
    %c0_127 = arith.constant 0 : index
    %c0_128 = arith.constant 0 : index
    %211 = vector.load %arg9[%c0_126, %c0_127, %c0_128] : memref<9x1x64xbf16, #tpu.memory_space<vmem>>, vector<1x1x64xbf16>
    %212 = vector.shape_cast %211 : vector<1x1x64xbf16> to vector<1x64xbf16>
    %213 = vector.broadcast %212 : vector<1x64xbf16> to vector<128x64xbf16>
    %214 = arith.mulf %210, %213 : vector<128x64xbf16>
    %cst_129 = arith.constant 0.000000e+00 : bf16
    %215 = vector.broadcast %cst_129 : bf16 to vector<128x8xbf16>
    %216 = vector.extract_strided_slice %207 {offsets = [0, 0], sizes = [128, 56], strides = [1, 1]} : vector<128x64xbf16> to vector<128x56xbf16>
    %217 = tpu.concatenate %215, %216 in 1 : vector<128x8xbf16>, vector<128x56xbf16> -> vector<128x64xbf16>
    %c1_130 = arith.constant 1 : index
    %c0_131 = arith.constant 0 : index
    %c0_132 = arith.constant 0 : index
    %218 = vector.load %arg9[%c1_130, %c0_131, %c0_132] : memref<9x1x64xbf16, #tpu.memory_space<vmem>>, vector<1x1x64xbf16>
    %219 = vector.shape_cast %218 : vector<1x1x64xbf16> to vector<1x64xbf16>
    %220 = vector.broadcast %219 : vector<1x64xbf16> to vector<128x64xbf16>
    %221 = arith.mulf %217, %220 : vector<128x64xbf16>
    %cst_133 = arith.constant 0.000000e+00 : bf16
    %222 = vector.broadcast %cst_133 : bf16 to vector<128x7xbf16>
    %223 = vector.extract_strided_slice %207 {offsets = [0, 0], sizes = [128, 57], strides = [1, 1]} : vector<128x64xbf16> to vector<128x57xbf16>
    %224 = tpu.concatenate %222, %223 in 1 : vector<128x7xbf16>, vector<128x57xbf16> -> vector<128x64xbf16>
    %c2_134 = arith.constant 2 : index
    %c0_135 = arith.constant 0 : index
    %c0_136 = arith.constant 0 : index
    %225 = vector.load %arg9[%c2_134, %c0_135, %c0_136] : memref<9x1x64xbf16, #tpu.memory_space<vmem>>, vector<1x1x64xbf16>
    %226 = vector.shape_cast %225 : vector<1x1x64xbf16> to vector<1x64xbf16>
    %227 = vector.broadcast %226 : vector<1x64xbf16> to vector<128x64xbf16>
    %228 = arith.mulf %224, %227 : vector<128x64xbf16>
    %cst_137 = arith.constant 0.000000e+00 : bf16
    %229 = vector.broadcast %cst_137 : bf16 to vector<128x1xbf16>
    %230 = vector.extract_strided_slice %207 {offsets = [0, 0], sizes = [128, 63], strides = [1, 1]} : vector<128x64xbf16> to vector<128x63xbf16>
    %231 = tpu.concatenate %229, %230 in 1 : vector<128x1xbf16>, vector<128x63xbf16> -> vector<128x64xbf16>
    %c3_138 = arith.constant 3 : index
    %c0_139 = arith.constant 0 : index
    %c0_140 = arith.constant 0 : index
    %232 = vector.load %arg9[%c3_138, %c0_139, %c0_140] : memref<9x1x64xbf16, #tpu.memory_space<vmem>>, vector<1x1x64xbf16>
    %233 = vector.shape_cast %232 : vector<1x1x64xbf16> to vector<1x64xbf16>
    %234 = vector.broadcast %233 : vector<1x64xbf16> to vector<128x64xbf16>
    %235 = arith.mulf %231, %234 : vector<128x64xbf16>
    %c4_141 = arith.constant 4 : index
    %c0_142 = arith.constant 0 : index
    %c0_143 = arith.constant 0 : index
    %236 = vector.load %arg9[%c4_141, %c0_142, %c0_143] : memref<9x1x64xbf16, #tpu.memory_space<vmem>>, vector<1x1x64xbf16>
    %237 = vector.shape_cast %236 : vector<1x1x64xbf16> to vector<1x64xbf16>
    %238 = vector.broadcast %237 : vector<1x64xbf16> to vector<128x64xbf16>
    %239 = arith.mulf %207, %238 : vector<128x64xbf16>
    %cst_144 = arith.constant 0.000000e+00 : bf16
    %240 = vector.broadcast %cst_144 : bf16 to vector<128x1xbf16>
    %241 = vector.extract_strided_slice %207 {offsets = [0, 1], sizes = [128, 63], strides = [1, 1]} : vector<128x64xbf16> to vector<128x63xbf16>
    %242 = tpu.concatenate %241, %240 in 1 : vector<128x63xbf16>, vector<128x1xbf16> -> vector<128x64xbf16>
    %c5_145 = arith.constant 5 : index
    %c0_146 = arith.constant 0 : index
    %c0_147 = arith.constant 0 : index
    %243 = vector.load %arg9[%c5_145, %c0_146, %c0_147] : memref<9x1x64xbf16, #tpu.memory_space<vmem>>, vector<1x1x64xbf16>
    %244 = vector.shape_cast %243 : vector<1x1x64xbf16> to vector<1x64xbf16>
    %245 = vector.broadcast %244 : vector<1x64xbf16> to vector<128x64xbf16>
    %246 = arith.mulf %242, %245 : vector<128x64xbf16>
    %cst_148 = arith.constant 0.000000e+00 : bf16
    %247 = vector.broadcast %cst_148 : bf16 to vector<128x7xbf16>
    %248 = vector.extract_strided_slice %207 {offsets = [0, 7], sizes = [128, 57], strides = [1, 1]} : vector<128x64xbf16> to vector<128x57xbf16>
    %249 = tpu.concatenate %248, %247 in 1 : vector<128x57xbf16>, vector<128x7xbf16> -> vector<128x64xbf16>
    %c6_149 = arith.constant 6 : index
    %c0_150 = arith.constant 0 : index
    %c0_151 = arith.constant 0 : index
    %250 = vector.load %arg9[%c6_149, %c0_150, %c0_151] : memref<9x1x64xbf16, #tpu.memory_space<vmem>>, vector<1x1x64xbf16>
    %251 = vector.shape_cast %250 : vector<1x1x64xbf16> to vector<1x64xbf16>
    %252 = vector.broadcast %251 : vector<1x64xbf16> to vector<128x64xbf16>
    %253 = arith.mulf %249, %252 : vector<128x64xbf16>
    %cst_152 = arith.constant 0.000000e+00 : bf16
    %254 = vector.broadcast %cst_152 : bf16 to vector<128x8xbf16>
    %255 = vector.extract_strided_slice %207 {offsets = [0, 8], sizes = [128, 56], strides = [1, 1]} : vector<128x64xbf16> to vector<128x56xbf16>
    %256 = tpu.concatenate %255, %254 in 1 : vector<128x56xbf16>, vector<128x8xbf16> -> vector<128x64xbf16>
    %c7_153 = arith.constant 7 : index
    %c0_154 = arith.constant 0 : index
    %c0_155 = arith.constant 0 : index
    %257 = vector.load %arg9[%c7_153, %c0_154, %c0_155] : memref<9x1x64xbf16, #tpu.memory_space<vmem>>, vector<1x1x64xbf16>
    %258 = vector.shape_cast %257 : vector<1x1x64xbf16> to vector<1x64xbf16>
    %259 = vector.broadcast %258 : vector<1x64xbf16> to vector<128x64xbf16>
    %260 = arith.mulf %256, %259 : vector<128x64xbf16>
    %cst_156 = arith.constant 0.000000e+00 : bf16
    %261 = vector.broadcast %cst_156 : bf16 to vector<128x9xbf16>
    %262 = vector.extract_strided_slice %207 {offsets = [0, 9], sizes = [128, 55], strides = [1, 1]} : vector<128x64xbf16> to vector<128x55xbf16>
    %263 = tpu.concatenate %262, %261 in 1 : vector<128x55xbf16>, vector<128x9xbf16> -> vector<128x64xbf16>
    %c8_157 = arith.constant 8 : index
    %c0_158 = arith.constant 0 : index
    %c0_159 = arith.constant 0 : index
    %264 = vector.load %arg9[%c8_157, %c0_158, %c0_159] : memref<9x1x64xbf16, #tpu.memory_space<vmem>>, vector<1x1x64xbf16>
    %265 = vector.shape_cast %264 : vector<1x1x64xbf16> to vector<1x64xbf16>
    %266 = vector.broadcast %265 : vector<1x64xbf16> to vector<128x64xbf16>
    %267 = arith.mulf %263, %266 : vector<128x64xbf16>
    %268 = tpu.concatenate %214, %221, %228, %235, %239, %246, %253, %260, %267 in 0 : vector<128x64xbf16>, vector<128x64xbf16>, vector<128x64xbf16>, vector<128x64xbf16>, vector<128x64xbf16>, vector<128x64xbf16>, vector<128x64xbf16>, vector<128x64xbf16>, vector<128x64xbf16> -> vector<1152x64xbf16>
    %c0_160 = arith.constant 0 : index
    %c0_161 = arith.constant 0 : index
    %269 = vector.load %arg7[%c0_160, %c0_161] : memref<64x1152xbf16, #tpu.memory_space<vmem>>, vector<64x1152xbf16>
    %cst_162 = arith.constant dense<0.000000e+00> : vector<64x64xf32>
    %270 = tpu.matmul %269, %268, %cst_162 {dimension_numbers = #tpu.dot_dimension_numbers<[1], [0], [0], [1], [0, 0, 1, 1], [], []>} : vector<64x1152xbf16>, vector<1152x64xbf16>, vector<64x64xf32> -> vector<64x64xf32>
    %c0_163 = arith.constant 0 : index
    %c0_164 = arith.constant 0 : index
    %271 = vector.load %arg8[%c0_163, %c0_164] : memref<64x1xf32, #tpu.memory_space<vmem>>, vector<64x1xf32>
    %272 = vector.broadcast %271 : vector<64x1xf32> to vector<64x64xf32>
    %273 = arith.addf %270, %272 : vector<64x64xf32>
    %cst_165 = arith.constant 0.000000e+00 : f32
    %274 = vector.broadcast %cst_165 : f32 to vector<64x64xf32>
    %275 = arith.maximumf %273, %274 : vector<64x64xf32>
    %c0_166 = arith.constant 0 : index
    %c0_167 = arith.constant 0 : index
    %276 = vector.load %arg10[%c0_166, %c0_167] : memref<64x64xbf16, #tpu.memory_space<vmem>>, vector<64x64xbf16>
    %277 = arith.truncf %275 : vector<64x64xf32> to vector<64x64xbf16>
    %cst_168 = arith.constant dense<0.000000e+00> : vector<64x64xf32>
    %278 = tpu.matmul %276, %277, %cst_168 {dimension_numbers = #tpu.dot_dimension_numbers<[1], [0], [0], [1], [0, 0, 1, 1], [], []>} : vector<64x64xbf16>, vector<64x64xbf16>, vector<64x64xf32> -> vector<64x64xf32>
    %279 = vector.extract_strided_slice %278 {offsets = [0, 0], sizes = [16, 64], strides = [1, 1]} : vector<64x64xf32> to vector<16x64xf32>
    %280 = vector.extract_strided_slice %278 {offsets = [16, 0], sizes = [16, 64], strides = [1, 1]} : vector<64x64xf32> to vector<16x64xf32>
    %281 = vector.extract_strided_slice %278 {offsets = [32, 0], sizes = [16, 64], strides = [1, 1]} : vector<64x64xf32> to vector<16x64xf32>
    %282 = vector.extract_strided_slice %278 {offsets = [48, 0], sizes = [16, 64], strides = [1, 1]} : vector<64x64xf32> to vector<16x64xf32>
    %283 = tpu.concatenate %279, %280, %281, %282 in 1 : vector<16x64xf32>, vector<16x64xf32>, vector<16x64xf32>, vector<16x64xf32> -> vector<16x256xf32>
    %c0_169 = arith.constant 0 : index
    %c0_170 = arith.constant 0 : index
    %284 = vector.load %arg12[%c0_169, %c0_170] : memref<256x256xf32, #tpu.memory_space<vmem>>, vector<256x256xf32>
    %cst_171 = arith.constant dense<0.000000e+00> : vector<16x256xf32>
    %285 = tpu.matmul %283, %284, %cst_171 {dimension_numbers = #tpu.dot_dimension_numbers<[1], [0], [0], [1], [0, 0, 1, 1], [], []>} : vector<16x256xf32>, vector<256x256xf32>, vector<16x256xf32> -> vector<16x256xf32>
    %c0_172 = arith.constant 0 : index
    %c0_173 = arith.constant 0 : index
    %286 = vector.load %arg11[%c0_172, %c0_173] : memref<16x1xf32, #tpu.memory_space<vmem>>, vector<16x1xf32>
    %287 = vector.broadcast %286 : vector<16x1xf32> to vector<16x256xf32>
    %288 = arith.addf %285, %287 : vector<16x256xf32>
    %cst_174 = arith.constant 0.000000e+00 : f32
    %289 = vector.broadcast %cst_174 : f32 to vector<16x256xf32>
    %290 = arith.maximumf %288, %289 : vector<16x256xf32>
    %291 = tpu.concatenate %290, %190 in 0 : vector<16x256xf32>, vector<16x256xf32> -> vector<32x256xf32>
    %292 = arith.truncf %291 : vector<32x256xf32> to vector<32x256xbf16>
    %cst_175 = arith.constant 0.000000e+00 : bf16
    %293 = vector.broadcast %cst_175 : bf16 to vector<32x17xbf16>
    %294 = vector.extract_strided_slice %292 {offsets = [0, 0], sizes = [32, 239], strides = [1, 1]} : vector<32x256xbf16> to vector<32x239xbf16>
    %295 = tpu.concatenate %293, %294 in 1 : vector<32x17xbf16>, vector<32x239xbf16> -> vector<32x256xbf16>
    %c0_176 = arith.constant 0 : index
    %c0_177 = arith.constant 0 : index
    %c0_178 = arith.constant 0 : index
    %296 = vector.load %arg15[%c0_176, %c0_177, %c0_178] : memref<9x1x256xbf16, #tpu.memory_space<vmem>>, vector<1x1x256xbf16>
    %297 = vector.shape_cast %296 : vector<1x1x256xbf16> to vector<1x256xbf16>
    %298 = vector.broadcast %297 : vector<1x256xbf16> to vector<32x256xbf16>
    %299 = arith.mulf %295, %298 : vector<32x256xbf16>
    %cst_179 = arith.constant 0.000000e+00 : bf16
    %300 = vector.broadcast %cst_179 : bf16 to vector<32x16xbf16>
    %301 = vector.extract_strided_slice %292 {offsets = [0, 0], sizes = [32, 240], strides = [1, 1]} : vector<32x256xbf16> to vector<32x240xbf16>
    %302 = tpu.concatenate %300, %301 in 1 : vector<32x16xbf16>, vector<32x240xbf16> -> vector<32x256xbf16>
    %c1_180 = arith.constant 1 : index
    %c0_181 = arith.constant 0 : index
    %c0_182 = arith.constant 0 : index
    %303 = vector.load %arg15[%c1_180, %c0_181, %c0_182] : memref<9x1x256xbf16, #tpu.memory_space<vmem>>, vector<1x1x256xbf16>
    %304 = vector.shape_cast %303 : vector<1x1x256xbf16> to vector<1x256xbf16>
    %305 = vector.broadcast %304 : vector<1x256xbf16> to vector<32x256xbf16>
    %306 = arith.mulf %302, %305 : vector<32x256xbf16>
    %cst_183 = arith.constant 0.000000e+00 : bf16
    %307 = vector.broadcast %cst_183 : bf16 to vector<32x15xbf16>
    %308 = vector.extract_strided_slice %292 {offsets = [0, 0], sizes = [32, 241], strides = [1, 1]} : vector<32x256xbf16> to vector<32x241xbf16>
    %309 = tpu.concatenate %307, %308 in 1 : vector<32x15xbf16>, vector<32x241xbf16> -> vector<32x256xbf16>
    %c2_184 = arith.constant 2 : index
    %c0_185 = arith.constant 0 : index
    %c0_186 = arith.constant 0 : index
    %310 = vector.load %arg15[%c2_184, %c0_185, %c0_186] : memref<9x1x256xbf16, #tpu.memory_space<vmem>>, vector<1x1x256xbf16>
    %311 = vector.shape_cast %310 : vector<1x1x256xbf16> to vector<1x256xbf16>
    %312 = vector.broadcast %311 : vector<1x256xbf16> to vector<32x256xbf16>
    %313 = arith.mulf %309, %312 : vector<32x256xbf16>
    %cst_187 = arith.constant 0.000000e+00 : bf16
    %314 = vector.broadcast %cst_187 : bf16 to vector<32x1xbf16>
    %315 = vector.extract_strided_slice %292 {offsets = [0, 0], sizes = [32, 255], strides = [1, 1]} : vector<32x256xbf16> to vector<32x255xbf16>
    %316 = tpu.concatenate %314, %315 in 1 : vector<32x1xbf16>, vector<32x255xbf16> -> vector<32x256xbf16>
    %c3_188 = arith.constant 3 : index
    %c0_189 = arith.constant 0 : index
    %c0_190 = arith.constant 0 : index
    %317 = vector.load %arg15[%c3_188, %c0_189, %c0_190] : memref<9x1x256xbf16, #tpu.memory_space<vmem>>, vector<1x1x256xbf16>
    %318 = vector.shape_cast %317 : vector<1x1x256xbf16> to vector<1x256xbf16>
    %319 = vector.broadcast %318 : vector<1x256xbf16> to vector<32x256xbf16>
    %320 = arith.mulf %316, %319 : vector<32x256xbf16>
    %c4_191 = arith.constant 4 : index
    %c0_192 = arith.constant 0 : index
    %c0_193 = arith.constant 0 : index
    %321 = vector.load %arg15[%c4_191, %c0_192, %c0_193] : memref<9x1x256xbf16, #tpu.memory_space<vmem>>, vector<1x1x256xbf16>
    %322 = vector.shape_cast %321 : vector<1x1x256xbf16> to vector<1x256xbf16>
    %323 = vector.broadcast %322 : vector<1x256xbf16> to vector<32x256xbf16>
    %324 = arith.mulf %292, %323 : vector<32x256xbf16>
    %cst_194 = arith.constant 0.000000e+00 : bf16
    %325 = vector.broadcast %cst_194 : bf16 to vector<32x1xbf16>
    %326 = vector.extract_strided_slice %292 {offsets = [0, 1], sizes = [32, 255], strides = [1, 1]} : vector<32x256xbf16> to vector<32x255xbf16>
    %327 = tpu.concatenate %326, %325 in 1 : vector<32x255xbf16>, vector<32x1xbf16> -> vector<32x256xbf16>
    %c5_195 = arith.constant 5 : index
    %c0_196 = arith.constant 0 : index
    %c0_197 = arith.constant 0 : index
    %328 = vector.load %arg15[%c5_195, %c0_196, %c0_197] : memref<9x1x256xbf16, #tpu.memory_space<vmem>>, vector<1x1x256xbf16>
    %329 = vector.shape_cast %328 : vector<1x1x256xbf16> to vector<1x256xbf16>
    %330 = vector.broadcast %329 : vector<1x256xbf16> to vector<32x256xbf16>
    %331 = arith.mulf %327, %330 : vector<32x256xbf16>
    %cst_198 = arith.constant 0.000000e+00 : bf16
    %332 = vector.broadcast %cst_198 : bf16 to vector<32x15xbf16>
    %333 = vector.extract_strided_slice %292 {offsets = [0, 15], sizes = [32, 241], strides = [1, 1]} : vector<32x256xbf16> to vector<32x241xbf16>
    %334 = tpu.concatenate %333, %332 in 1 : vector<32x241xbf16>, vector<32x15xbf16> -> vector<32x256xbf16>
    %c6_199 = arith.constant 6 : index
    %c0_200 = arith.constant 0 : index
    %c0_201 = arith.constant 0 : index
    %335 = vector.load %arg15[%c6_199, %c0_200, %c0_201] : memref<9x1x256xbf16, #tpu.memory_space<vmem>>, vector<1x1x256xbf16>
    %336 = vector.shape_cast %335 : vector<1x1x256xbf16> to vector<1x256xbf16>
    %337 = vector.broadcast %336 : vector<1x256xbf16> to vector<32x256xbf16>
    %338 = arith.mulf %334, %337 : vector<32x256xbf16>
    %cst_202 = arith.constant 0.000000e+00 : bf16
    %339 = vector.broadcast %cst_202 : bf16 to vector<32x16xbf16>
    %340 = vector.extract_strided_slice %292 {offsets = [0, 16], sizes = [32, 240], strides = [1, 1]} : vector<32x256xbf16> to vector<32x240xbf16>
    %341 = tpu.concatenate %340, %339 in 1 : vector<32x240xbf16>, vector<32x16xbf16> -> vector<32x256xbf16>
    %c7_203 = arith.constant 7 : index
    %c0_204 = arith.constant 0 : index
    %c0_205 = arith.constant 0 : index
    %342 = vector.load %arg15[%c7_203, %c0_204, %c0_205] : memref<9x1x256xbf16, #tpu.memory_space<vmem>>, vector<1x1x256xbf16>
    %343 = vector.shape_cast %342 : vector<1x1x256xbf16> to vector<1x256xbf16>
    %344 = vector.broadcast %343 : vector<1x256xbf16> to vector<32x256xbf16>
    %345 = arith.mulf %341, %344 : vector<32x256xbf16>
    %cst_206 = arith.constant 0.000000e+00 : bf16
    %346 = vector.broadcast %cst_206 : bf16 to vector<32x17xbf16>
    %347 = vector.extract_strided_slice %292 {offsets = [0, 17], sizes = [32, 239], strides = [1, 1]} : vector<32x256xbf16> to vector<32x239xbf16>
    %348 = tpu.concatenate %347, %346 in 1 : vector<32x239xbf16>, vector<32x17xbf16> -> vector<32x256xbf16>
    %c8_207 = arith.constant 8 : index
    %c0_208 = arith.constant 0 : index
    %c0_209 = arith.constant 0 : index
    %349 = vector.load %arg15[%c8_207, %c0_208, %c0_209] : memref<9x1x256xbf16, #tpu.memory_space<vmem>>, vector<1x1x256xbf16>
    %350 = vector.shape_cast %349 : vector<1x1x256xbf16> to vector<1x256xbf16>
    %351 = vector.broadcast %350 : vector<1x256xbf16> to vector<32x256xbf16>
    %352 = arith.mulf %348, %351 : vector<32x256xbf16>
    %353 = tpu.concatenate %299, %306, %313, %320, %324, %331, %338, %345, %352 in 0 : vector<32x256xbf16>, vector<32x256xbf16>, vector<32x256xbf16>, vector<32x256xbf16>, vector<32x256xbf16>, vector<32x256xbf16>, vector<32x256xbf16>, vector<32x256xbf16>, vector<32x256xbf16> -> vector<288x256xbf16>
    %c0_210 = arith.constant 0 : index
    %c0_211 = arith.constant 0 : index
    %354 = vector.load %arg13[%c0_210, %c0_211] : memref<16x288xbf16, #tpu.memory_space<vmem>>, vector<16x288xbf16>
    %cst_212 = arith.constant dense<0.000000e+00> : vector<16x256xf32>
    %355 = tpu.matmul %354, %353, %cst_212 {dimension_numbers = #tpu.dot_dimension_numbers<[1], [0], [0], [1], [0, 0, 1, 1], [], []>} : vector<16x288xbf16>, vector<288x256xbf16>, vector<16x256xf32> -> vector<16x256xf32>
    %c0_213 = arith.constant 0 : index
    %c0_214 = arith.constant 0 : index
    %356 = vector.load %arg14[%c0_213, %c0_214] : memref<16x1xf32, #tpu.memory_space<vmem>>, vector<16x1xf32>
    %357 = vector.broadcast %356 : vector<16x1xf32> to vector<16x256xf32>
    %358 = arith.addf %355, %357 : vector<16x256xf32>
    %cst_215 = arith.constant 0.000000e+00 : f32
    %359 = vector.broadcast %cst_215 : f32 to vector<16x256xf32>
    %360 = arith.maximumf %358, %359 : vector<16x256xf32>
    %c0_216 = arith.constant 0 : index
    %c0_217 = arith.constant 0 : index
    %361 = vector.load %arg16[%c0_216, %c0_217] : memref<8x16xbf16, #tpu.memory_space<vmem>>, vector<8x16xbf16>
    %362 = arith.truncf %360 : vector<16x256xf32> to vector<16x256xbf16>
    %cst_218 = arith.constant dense<0.000000e+00> : vector<8x256xf32>
    %363 = tpu.matmul %361, %362, %cst_218 {dimension_numbers = #tpu.dot_dimension_numbers<[1], [0], [0], [1], [0, 0, 1, 1], [], []>} : vector<8x16xbf16>, vector<16x256xbf16>, vector<8x256xf32> -> vector<8x256xf32>
    %c0_219 = arith.constant 0 : index
    %c0_220 = arith.constant 0 : index
    %364 = vector.load %arg17[%c0_219, %c0_220] : memref<1x1xf32, #tpu.memory_space<vmem>>, vector<1x1xf32>
    %365 = vector.broadcast %364 : vector<1x1xf32> to vector<8x256xf32>
    %366 = arith.addf %363, %365 : vector<8x256xf32>
    %c1_221 = arith.constant 1 : index
    %c0_222 = arith.constant 0 : index
    %c0_223 = arith.constant 0 : index
    %367 = vector.load %arg18[%c1_221, %c0_222, %c0_223] : memref<2x8x256xf32, #tpu.memory_space<vmem>>, vector<1x8x256xf32>
    %368 = vector.shape_cast %367 : vector<1x8x256xf32> to vector<8x256xf32>
    %369 = vector.shape_cast %366 : vector<8x256xf32> to vector<1x8x256xf32>
    tpu.vector_store %arg18[%c1_221, %c0_222, %c0_223], %369 {strides = array<i32>} : memref<2x8x256xf32, #tpu.memory_space<vmem>>, vector<1x8x256xf32>,
    return
  }
  func.func @transform_0(%arg0: i32) -> (i32, i32, i32) {
    %c0_i32 = arith.constant 0 : i32
    %c0_i32_0 = arith.constant 0 : i32
    %c0_i32_1 = arith.constant 0 : i32
    return %arg0, %c0_i32, %c0_i32_0 : i32, i32, i32
  }
  func.func @transform_1(%arg0: i32) -> (i32, i32, i32) {
    %c0_i32 = arith.constant 0 : i32
    %c0_i32_0 = arith.constant 0 : i32
    %c0_i32_1 = arith.constant 0 : i32
    return %arg0, %c0_i32, %c0_i32_0 : i32, i32, i32
  }
  func.func @transform_2(%arg0: i32) -> (i32, i32, i32) {
    %c0_i32 = arith.constant 0 : i32
    %c0_i32_0 = arith.constant 0 : i32
    %c0_i32_1 = arith.constant 0 : i32
    return %arg0, %c0_i32, %c0_i32_0 : i32, i32, i32
  }
  func.func @transform_3(%arg0: i32) -> (i32, i32) {
    %c0_i32 = arith.constant 0 : i32
    %c0_i32_0 = arith.constant 0 : i32
    %c0_i32_1 = arith.constant 0 : i32
    return %c0_i32, %c0_i32_0 : i32, i32
  }
  func.func @transform_4(%arg0: i32) -> (i32, i32) {
    %c0_i32 = arith.constant 0 : i32
    %c0_i32_0 = arith.constant 0 : i32
    %c0_i32_1 = arith.constant 0 : i32
    return %c0_i32, %c0_i32_0 : i32, i32
  }
  func.func @transform_5(%arg0: i32) -> (i32, i32) {
    %c0_i32 = arith.constant 0 : i32
    %c0_i32_0 = arith.constant 0 : i32
    %c0_i32_1 = arith.constant 0 : i32
    return %c0_i32, %c0_i32_0 : i32, i32
  }
  func.func @transform_6(%arg0: i32) -> (i32, i32) {
    %c0_i32 = arith.constant 0 : i32
    %c0_i32_0 = arith.constant 0 : i32
    %c0_i32_1 = arith.constant 0 : i32
    return %c0_i32, %c0_i32_0 : i32, i32
  }
  func.func @transform_7(%arg0: i32) -> (i32, i32) {
    %c0_i32 = arith.constant 0 : i32
    %c0_i32_0 = arith.constant 0 : i32
    %c0_i32_1 = arith.constant 0 : i32
    return %c0_i32, %c0_i32_0 : i32, i32
  }
  func.func @transform_8(%arg0: i32) -> (i32, i32, i32) {
    %c0_i32 = arith.constant 0 : i32
    %c0_i32_0 = arith.constant 0 : i32
    %c0_i32_1 = arith.constant 0 : i32
    %c0_i32_2 = arith.constant 0 : i32
    return %c0_i32, %c0_i32_0, %c0_i32_1 : i32, i32, i32
  }
  func.func @transform_9(%arg0: i32) -> (i32, i32) {
    %c0_i32 = arith.constant 0 : i32
    %c0_i32_0 = arith.constant 0 : i32
    %c0_i32_1 = arith.constant 0 : i32
    return %c0_i32, %c0_i32_0 : i32, i32
  }
  func.func @transform_10(%arg0: i32) -> (i32, i32) {
    %c0_i32 = arith.constant 0 : i32
    %c0_i32_0 = arith.constant 0 : i32
    %c0_i32_1 = arith.constant 0 : i32
    return %c0_i32, %c0_i32_0 : i32, i32
  }
  func.func @transform_11(%arg0: i32) -> (i32, i32) {
    %c0_i32 = arith.constant 0 : i32
    %c0_i32_0 = arith.constant 0 : i32
    %c0_i32_1 = arith.constant 0 : i32
    return %c0_i32, %c0_i32_0 : i32, i32
  }
  func.func @transform_12(%arg0: i32) -> (i32, i32) {
    %c0_i32 = arith.constant 0 : i32
    %c0_i32_0 = arith.constant 0 : i32
    %c0_i32_1 = arith.constant 0 : i32
    return %c0_i32, %c0_i32_0 : i32, i32
  }
  func.func @transform_13(%arg0: i32) -> (i32, i32) {
    %c0_i32 = arith.constant 0 : i32
    %c0_i32_0 = arith.constant 0 : i32
    %c0_i32_1 = arith.constant 0 : i32
    return %c0_i32, %c0_i32_0 : i32, i32
  }
  func.func @transform_14(%arg0: i32) -> (i32, i32, i32) {
    %c0_i32 = arith.constant 0 : i32
    %c0_i32_0 = arith.constant 0 : i32
    %c0_i32_1 = arith.constant 0 : i32
    %c0_i32_2 = arith.constant 0 : i32
    return %c0_i32, %c0_i32_0, %c0_i32_1 : i32, i32, i32
  }
  func.func @transform_15(%arg0: i32) -> (i32, i32) {
    %c0_i32 = arith.constant 0 : i32
    %c0_i32_0 = arith.constant 0 : i32
    %c0_i32_1 = arith.constant 0 : i32
    return %c0_i32, %c0_i32_0 : i32, i32
  }
  func.func @transform_16(%arg0: i32) -> (i32, i32) {
    %c0_i32 = arith.constant 0 : i32
    %c0_i32_0 = arith.constant 0 : i32
    %c0_i32_1 = arith.constant 0 : i32
    return %c0_i32, %c0_i32_0 : i32, i32
  }
  func.func @transform_17(%arg0: i32) -> (i32, i32, i32) {
    %c0_i32 = arith.constant 0 : i32
    %c0_i32_0 = arith.constant 0 : i32
    %c0_i32_1 = arith.constant 0 : i32
    return %arg0, %c0_i32, %c0_i32_0 : i32, i32, i32
  }
}

</mosaic_0001>

<bundles_post_ra>
// kernel: decoder_forward.1
= control target key start
LH: loop header
LB: loop body
LE: loop exit
PB: predicated region body
PF: predicated region fallthrough
CT: control target
= control target key end

     0   :  { %s7427_s26 = smov 0   ;;  %s9853_s0 = inlined_call_operand.vmem [shape: f32[8,128,16], index: 0, kind: input, shape index: {}]   ;;  %s9854_s1 = inlined_call_operand.vmem [shape: f32[8,64,64], index: 1, kind: input, shape index: {}]   ;;  %s9855_s2 = inlined_call_operand.vmem [shape: f32[8,16,256], index: 2, kind: input, shape index: {}]   ;;  %s9856_s3 = inlined_call_operand.vmem [shape: bf16[256,128], index: 3, kind: input, shape index: {}]   ;;  %s9857_s4 = inlined_call_operand.vmem [shape: f32[64,1], index: 4, kind: input, shape index: {}]   ;;  %s9858_s5 = inlined_call_operand.vmem [shape: f32[64,64], index: 5, kind: input, shape index: {}]   ;;  %s9859_s6 = inlined_call_operand.vmem [shape: bf16[64,1152], index: 6, kind: input, shape index: {}]   ;;  %s9860_s7 = inlined_call_operand.vmem [shape: f32[64,1], index: 7, kind: input, shape index: {}]   ;;  %s9861_s8 = inlined_call_operand.vmem [shape: bf16[9,1,64], index: 8, kind: input, shape index: {}]   ;;  %s9862_s9 = inlined_call_operand.vmem [shape: bf16[64,64], index: 9, kind: input, shape index: {}]   ;;  %s9863_s10 = inlined_call_operand.vmem [shape: f32[16,1], index: 10, kind: input, shape index: {}]   ;;  %s9864_s11 = inlined_call_operand.vmem [shape: f32[256,256], index: 11, kind: input, shape index: {}]   ;;  %s9865_s12 = inlined_call_operand.vmem [shape: bf16[16,288], index: 12, kind: input, shape index: {}]   ;;  %s9866_s13 = inlined_call_operand.vmem [shape: f32[16,1], index: 13, kind: input, shape index: {}]   ;;  %s9867_s14 = inlined_call_operand.vmem [shape: bf16[9,1,256], index: 14, kind: input, shape index: {}]   ;;  %s9868_s15 = inlined_call_operand.vmem [shape: bf16[8,16], index: 15, kind: input, shape index: {}]   ;;  %s9869_s16 = inlined_call_operand.<no memory space> [shape: f32[1,1], index: 16, kind: input, shape index: {}]   ;;  %s9870_s17 = inlined_call_operand.vmem [shape: f32[8,8,256], index: 17, kind: output, shape index: {}]  }
   0x1   :  { %9914 = sst [smem:[#allocation10_spill]] %s9853_s0  ;;  %v22_v0 = vstv %s9869_s16 }
   0x2   :  { %9915 = sst [smem:[#allocation11_spill]] %s9854_s1  ;;  %23 = vst [vmem:[#allocation2] sm:$0x1] %v22_v0 }
   0x3 LB: > { %s6183_s27 = sadd.s32 4294967295, %s7313_s26   ;;  %p6187_p0 = scmp.ge.s32.totalorder %s7313_s26, 1  ;;  %s7313_s26 = sphi %s7427_s26, %s29_s26  }
   0x4   : > { %p515_p1 = scmp.lt.s32.totalorder %s7313_s26, 5 }
   0x6   : > { %p516_p2 = pnand %p6187_p0, %p515_p1 }
   0x8   : > { %519 = sbr.rel (%p516_p2) target bundleno = 4174 (0x104e), region = 88 }
   0xd   : > { %s6188_s28 = sshll.u32 %s6183_s27, 1  ;;  %v7155_v1 = vld [vmem:[%s9856_s3] sm:$0xff]   ;;  %s9916_s19 = sld [smem:[#allocation10_spill]]  ;;  %v7156_v26 = vld [vmem:[%s9856_s3 + $0x8] sm:$0xff]   ;;  %v7157_v27 = vld [vmem:[%s9856_s3 + $0x10] sm:$0xff]   ;;  %vm1040_vm0 = vcmask 261120  }
   0xe   : > { %p582_p3 = scmp.lt.s32.totalorder %s6188_s28, 7  ;;  %6890 = vmatprep.mubr.bf16.mxu0 %v7155_v1  ;;  %v7158_v28 = vld [vmem:[%s9856_s3 + $0x18] sm:$0xff]   ;;  %v7159_v29 = vld [vmem:[%s9856_s3 + $0x20] sm:$0xff]   ;;  %v7160_v30 = vld [vmem:[%s9856_s3 + $0x28] sm:$0xff]   ;;  %s7315_s24 = smov 16   ;;  %vm1031_vm1 = vcmask 130048  }
   0xf   : > { %v7161_v31 = vld [vmem:[%s9856_s3 + $0x30] sm:$0xff]   ;;  %v7162_v32 = vld [vmem:[%s9856_s3 + $0x38] sm:$0xff]   ;;  %v7163_v33 = vld [vmem:[%s9856_s3 + $0x40] sm:$0xff]   ;;  %s9873_s20 = smov 32   ;;  %s9871_s30 = smov 48   ;;  %vm1114_vm2 = vcmask 523264  }
  0x10   : > { %s9968_s28 = smov (!%p582_p3, %s6188_s28), 7  ;;  %v7164_v34 = vld [vmem:[%s9856_s3 + $0x48] sm:$0xff]   ;;  %v7165_v35 = vld [vmem:[%s9856_s3 + $0x50] sm:$0xff]   ;;  %v7166_v36 = vld [vmem:[%s9856_s3 + $0x58] sm:$0xff]   ;;  %s9883_s0 = smov 8   ;;  %vm1049_vm3 = vcmask 392192  }
  0x11   : > { %s6430_s16 = sshll.u32 %s9968_s28, 7  ;;  %v7167_v37 = vld [vmem:[%s9856_s3 + $0x60] sm:$0xff]   ;;  %v7168_v38 = vld [vmem:[%s9856_s3 + $0x68] sm:$0xff]   ;;  %v7169_v39 = vld [vmem:[%s9856_s3 + $0x70] sm:$0xff]   ;;  %s6431_s27 = sshll.u32 %s9968_s28, 6  ;;  %vm1284_vm4 = vcmask 72704  }
  0x12   : > { %v7170_v40 = vld [vmem:[%s9856_s3 + $0x78] sm:$0xff]   ;;  %v1064_v58 = vld [vmem:[%s9858_s5 + $0x30] sm:$0xff]  ;;  %v1063_v60 = vld [vmem:[%s9858_s5 + $0x28] sm:$0xff]  ;;  %s9908_s18 = smov 1   ;;  %vm1342_vm5 = vcmask 64512   ;;  %s9875_s22 = smov 121  }
  0x13   : > { %s7444_s1 = scalar_lea.vmem %s9916_s19, %s6430_s16  ;;  %v1065_v56 = vld [vmem:[%s9858_s5 + $0x38] sm:$0xff]  ;;  %v1062_v62 = vld [vmem:[%s9858_s5 + $0x20] sm:$0xff]  ;;  %s9879_s16 = smov 7   ;;  %vm1458_vm6 = vcmask 7168   ;;  %vm1400_vm7 = vcmask 56320   ;;  %vm1533_vm8 = vcmask 515072  }
  0x14   : > { %v624_v2 = vld [vmem:[%s7444_s1 + $0x70] sm:$0xff]  ;;  %v625_v3 = vld [vmem:[%s7444_s1 + $0x78] sm:$0xff]  ;;  %v622_v4 = vld [vmem:[%s7444_s1 + $0x60] sm:$0xff]  ;;  %6922 = vmatprep.subr.mxu1 %v1065_v56  ;;  %s9877_s19 = smov 120   ;;  %s9885_s29 = smov 119   ;;  %vm1649_vm9 = vcmask 457728  }
  0x15   : > { %v677_v5 = vpack.c.bf16 %v625_v3, %v624_v2  ;;  %v623_v6 = vld [vmem:[%s7444_s1 + $0x68] sm:$0xff]  ;;  %v620_v8 = vld [vmem:[%s7444_s1 + $0x50] sm:$0xff]  ;;  %v621_v9 = vld [vmem:[%s7444_s1 + $0x58] sm:$0xff]  ;;  %6923 = vmatpush3.msra.mxu1 %v1065_v56  ;;  %vm1591_vm10 = vcmask 465920   ;;  %vm1707_vm11 = vcmask 449536   ;;  %s9896_s23 = smov 112  }
  0x16   : > { %v676_v7 = vpack.c.bf16 %v623_v6, %v622_v4  ;;  %v675_v10 = vpack.c.bf16 %v621_v9, %v620_v8  ;;  %v618_v11 = vld [vmem:[%s7444_s1 + $0x40] sm:$0xff]  ;;  %v619_v12 = vld [vmem:[%s7444_s1 + $0x48] sm:$0xff]  ;;  %v616_v14 = vld [vmem:[%s7444_s1 + $0x30] sm:$0xff]  ;;  %6924 = vmatprep.subr.mxu1 %v1064_v58  ;;  %s9930_s25 = smov 127   ;;  %vm2780_vm12 = vcmask 121856   ;;  %vm2656_vm13 = vcmask 138240  }
  0x17   : > { %6874 = vmatprep.subr.bf16.mxu0 %v677_v5  ;;  %v674_v13 = vpack.c.bf16 %v619_v12, %v618_v11  ;;  %v617_v15 = vld [vmem:[%s7444_s1 + $0x38] sm:$0xff]  ;;  %v614_v17 = vld [vmem:[%s7444_s1 + $0x20] sm:$0xff]  ;;  %v615_v18 = vld [vmem:[%s7444_s1 + $0x28] sm:$0xff]  ;;  %6925 = vmatpush3.msra.mxu1 %v1064_v58  ;;  %vm9902_vm14 = vcmask 916480   ;;  %vm9903_vm15 = vcmask 924672  }
  0x18   : > { %6875 = vmatpush3.bf16.msra.mxu0 %v677_v5  ;;  %v673_v16 = vpack.c.bf16 %v617_v15, %v616_v14  ;;  %v612_v19 = vld [vmem:[%s7444_s1 + $0x10] sm:$0xff]  ;;  %v613_v20 = vld [vmem:[%s7444_s1 + $0x18] sm:$0xff]  ;;  %v672_v21 = vpack.c.bf16 %v615_v18, %v614_v17  ;;  %v610_v22 = vld [vmem:[%s7444_s1] sm:$0xff]  ;;  %6926 = vmatprep.subr.mxu1 %v1063_v60  ;;  %v9887_v15 = vmov 0  }
  0x19   : > { %6876 = vmatprep.subr.bf16.mxu0 %v676_v7  ;;  %v611_v23 = vld [vmem:[%s7444_s1 + $0x8] sm:$0xff]  ;;  %v671_v24 = vpack.c.bf16 %v613_v20, %v612_v19  ;;  %6927 = vmatpush3.msra.mxu1 %v1063_v60  ;;  %v1061_v0 = vld [vmem:[%s9858_s5 + $0x18] sm:$0xff]  ;;  %v1060_v2 = vld [vmem:[%s9858_s5 + $0x10] sm:$0xff] }
  0x1a   : > { %v670_v25 = vpack.c.bf16 %v611_v23, %v610_v22  ;;  %6928 = vmatprep.subr.mxu1 %v1062_v62  ;;  %v1059_v4 = vld [vmem:[%s9858_s5 + $0x8] sm:$0xff]  ;;  %v1058_v6 = vld [vmem:[%s9858_s5] sm:$0xff]  ;;  %7134 = vset.pattern.permute.xlu1 %v9887_v15  ;;  %v1072_v18 = vld [vmem:[%s9857_s4 + $0x30] sm:$0xff] }
  0x1b   : > { %6929 = vmatpush3.msra.mxu1 %v1062_v62  ;;  %7133 = vset.pattern.permute.xlu0 %v9887_v15  ;;  %v1073_v19 = vld [vmem:[%s9857_s4 + $0x38] sm:$0xff]  ;;  %v1071_v20 = vld [vmem:[%s9857_s4 + $0x28] sm:$0xff]  ;;  %v1068_v23 = vld [vmem:[%s9857_s4 + $0x10] sm:$0xff] }
  0x1c   : > { %6877 = vmatpush3.bf16.msra.mxu0 %v676_v7  ;;  %6930 = vmatprep.subr.mxu1 %v1061_v0  ;;  %v1069_v22 = vld [vmem:[%s9857_s4 + $0x18] sm:$0xff] }
  0x1d   : > { %6878 = vmatprep.subr.bf16.mxu0 %v675_v10  ;;  %6931 = vmatpush3.msra.mxu1 %v1061_v0 }
  0x1e   : > { %6932 = vmatprep.subr.mxu1 %v1060_v2 }
  0x1f   : > { %6933 = vmatpush3.msra.mxu1 %v1060_v2 }
  0x20   : > { %6879 = vmatpush3.bf16.msra.mxu0 %v675_v10  ;;  %6934 = vmatprep.subr.mxu1 %v1059_v4 }
  0x21   : > { %6880 = vmatprep.subr.bf16.mxu0 %v674_v13  ;;  %6935 = vmatpush3.msra.mxu1 %v1059_v4 }
  0x22   : > { %6936 = vmatprep.subr.mxu1 %v1058_v6 }
  0x23   : > { %6937 = vmatpush3.msra.mxu1 %v1058_v6 }
  0x24   : > { %6881 = vmatpush3.bf16.msra.mxu0 %v674_v13 }
  0x25   : > { %6882 = vmatprep.subr.bf16.mxu0 %v673_v16 }
  0x28   : > { %6883 = vmatpush3.bf16.msra.mxu0 %v673_v16 }
  0x29   : > { %6884 = vmatprep.subr.bf16.mxu0 %v672_v21 }
  0x2c   : > { %6885 = vmatpush3.bf16.msra.mxu0 %v672_v21  ;;  %v1070_v21 = vld [vmem:[%s9857_s4 + $0x20] sm:$0xff] }
  0x2d   : > { %6886 = vmatprep.subr.bf16.mxu0 %v671_v24 }
  0x30   : > { %6887 = vmatpush3.bf16.msra.mxu0 %v671_v24  ;;  %v1067_v24 = vld [vmem:[%s9857_s4 + $0x8] sm:$0xff] }
  0x31   : > { %6888 = vmatprep.subr.bf16.mxu0 %v670_v25 }
  0x34   : > { %6889 = vmatpush3.bf16.msra.mxu0 %v670_v25 }
  0x37   : > { %6891 = vmatmul.mubr.bf16.vlgmr.msra.gmra.mxu0 %v7156_v26 }
  0x38   : > { %6894 = vmatprep.mubr.bf16.mxu0 %v7157_v27 }
  0x3f   : > { %6895 = vmatmul.mubr.bf16.gmra.mxu0 %v7158_v28  ;;  %v1066_v28 = vld [vmem:[%s9857_s4] sm:$0xff] }
  0x40   : > { %6898 = vmatprep.mubr.bf16.mxu0 %v7159_v29 }
  0x47   : > { %6899 = vmatmul.mubr.bf16.gmra.mxu0 %v7160_v30 }
  0x48   : > { %6902 = vmatprep.mubr.bf16.mxu0 %v7161_v31 }
  0x4f   : > { %6903 = vmatmul.mubr.bf16.gmra.mxu0 %v7162_v32 }
  0x50   : > { %6906 = vmatprep.mubr.bf16.mxu0 %v7163_v33 }
  0x57   : > { %6907 = vmatmul.mubr.bf16.gmra.mxu0 %v7164_v34 }
  0x58   : > { %6910 = vmatprep.mubr.bf16.mxu0 %v7165_v35 }
  0x5f   : > { %6911 = vmatmul.mubr.bf16.gmra.mxu0 %v7166_v36 }
  0x60   : > { %6914 = vmatprep.mubr.bf16.mxu0 %v7167_v37 }
  0x67   : > { %6915 = vmatmul.mubr.bf16.gmra.mxu0 %v7168_v38 }
  0x68   : > { %6918 = vmatprep.mubr.bf16.mxu0 %v7169_v39 }
  0x6f   : > { %6919 = vmatmul.mubr.bf16.gmra.mxu0 %v7170_v40 }
  0xf7   : > { %v7507_v41 = vpop.f32.mrf.mxu0 }
  0xf9   : > { %v7509_v42 = vpop.f32.mrf.mxu0 }
  0xfb   : > { %v7511_v43 = vpop.f32.mrf.mxu0 }
  0xfd   : > { %v7513_v44 = vpop.f32.mrf.mxu0 }
  0xff   : > { %v7515_v45 = vpop.f32.mrf.mxu0 }
 0x101   : > { %v7517_v46 = vpop.f32.mrf.mxu0 }
 0x103   : > { %v7519_v47 = vpop.f32.mrf.mxu0 }
 0x105   : > { %v7521_v48 = vpop.f32.mrf.mxu0 }
 0x107   : > { %v6900_v49 = vpop.f32.mrf.mxu0 }
 0x108   : > { %947 = vrot.lane.b32.xlu0 %v6900_v49, %s7315_s24 }
 0x109   : > { %v840_v50 = vpop.f32.mrf.mxu0 }
 0x10b   : > { %v6901_v51 = vpop.f32.mrf.mxu0 }
 0x10c   : > { %943 = vrot.lane.b32.xlu0 %v840_v50, %s7315_s24  ;;  %949 = vrot.lane.b32.xlu1 %v6901_v51, %s7315_s24 }
 0x10d   : > { %v843_v52 = vpop.f32.mrf.mxu0 }
 0x10f   : > { %v6904_v53 = vpop.f32.mrf.mxu0 }
 0x110   : > { %945 = vrot.lane.b32.xlu0 %v843_v52, %s7315_s24 }
 0x111   : > { %v856_v54 = vpop.f32.mrf.mxu0 }
 0x113   : > { %v6905_v55 = vpop.f32.mrf.mxu0 }
 0x114   : > { %955 = vrot.lane.b32.xlu0 %v6904_v53, %s7315_s24  ;;  %957 = vrot.lane.b32.xlu1 %v6905_v55, %s7315_s24 }
 0x115   : > { %v859_v57 = vpop.f32.mrf.mxu0 }
 0x117   : > { %v6908_v59 = vpop.f32.mrf.mxu0 }
 0x118   : > { %951 = vrot.lane.b32.xlu0 %v856_v54, %s7315_s24  ;;  %953 = vrot.lane.b32.xlu1 %v859_v57, %s7315_s24 }
 0x119   : > { %v872_v61 = vpop.f32.mrf.mxu0 }
 0x11b   : > { %v6909_v63 = vpop.f32.mrf.mxu0 }
 0x11c   : > { %979 = vrot.lane.b32.xlu0 %v6908_v59, %s9873_s20  ;;  %975 = vrot.lane.b32.xlu1 %v872_v61, %s9873_s20 }
 0x11d   : > { %v875_v1 = vpop.f32.mrf.mxu0 }
 0x11f   : > { %v6912_v3 = vpop.f32.mrf.mxu0 }
 0x120   : > { %981 = vrot.lane.b32.xlu1 %v6909_v63, %s9873_s20 }
 0x121   : > { %v888_v5 = vpop.f32.mrf.mxu0 }
 0x122   : > { %983 = vrot.lane.b32.xlu0 %v888_v5, %s9873_s20 }
 0x123   : > { %v6913_v7 = vpop.f32.mrf.mxu0 }
 0x124   : > { %977 = vrot.lane.b32.xlu1 %v875_v1, %s9873_s20 }
 0x125   : > { %v891_v8 = vpop.f32.mrf.mxu0 }
 0x127   : > { %v6916_v9 = vpop.f32.mrf.mxu0 }
 0x128   : > { %985 = vrot.lane.b32.xlu1 %v891_v8, %s9873_s20  ;;  %1011 = vrot.lane.b32.xlu0 %v6916_v9, %s9871_s30 }
 0x129   : > { %v904_v10 = vpop.f32.mrf.mxu0 }
 0x12b   : > { %v6917_v11 = vpop.f32.mrf.mxu0 }
 0x12c   : > { %1007 = vrot.lane.b32.xlu0 %v904_v10, %s9871_s30  ;;  %1013 = vrot.lane.b32.xlu1 %v6917_v11, %s9871_s30 }
 0x12d   : > { %v907_v12 = vpop.f32.mrf.mxu0 }
 0x12f   : > { %v6920_v13 = vpop.f32.mrf.mxu0 }
 0x130   : > { %987 = vrot.lane.b32.xlu0 %v6912_v3, %s9873_s20  ;;  %1009 = vrot.lane.b32.xlu1 %v907_v12, %s9871_s30 }
 0x131   : > { %v920_v14 = vpop.f32.mrf.mxu0 }
 0x133   : > { %v6921_v16 = vpop.f32.mrf.mxu0 }
 0x134   : > { %989 = vrot.lane.b32.xlu1 %v6913_v7, %s9873_s20  ;;  %1015 = vrot.lane.b32.xlu0 %v920_v14, %s9871_s30  ;;  %s9917_s20 = sld [smem:[#allocation11_spill]] }
 0x135   : > { %v923_v17 = vpop.f32.mrf.mxu0 }
 0x138   : > { %1019 = vrot.lane.b32.xlu0 %v6920_v13, %s9871_s30  ;;  %1017 = vrot.lane.b32.xlu1 %v923_v17, %s9871_s30 }
 0x13a   : > { %s7592_s21 = scalar_lea.vmem %s9917_s20, %s6431_s27  ;;  %s9881_s27 = smov 9  }
 0x13b   : > { %v632_v25 = vld [vmem:[%s7592_s21 + $0x30] sm:$0xff]  ;;  %v633_v26 = vld [vmem:[%s7592_s21 + $0x38] sm:$0xff]  ;;  %v630_v29 = vld [vmem:[%s7592_s21 + $0x20] sm:$0xff]  ;;  %s9898_s20 = smov 17  }
 0x13c   : > { %1021 = vrot.lane.b32.xlu1 %v6921_v16, %s9871_s30  ;;  %1106 = vperm.xlu0 %7133, %v1072_v18   ;;  %v7602_v27 = vpack.c.bf16 %v633_v26, %v632_v25  ;;  %v631_v30 = vld [vmem:[%s7592_s21 + $0x28] sm:$0xff]  ;;  %v628_v32 = vld [vmem:[%s7592_s21 + $0x10] sm:$0xff]  ;;  %v629_v33 = vld [vmem:[%s7592_s21 + $0x18] sm:$0xff]  ;;  %s9892_s30 = smov 127  }
 0x13d   : > { %v7611_v31 = vpack.c.bf16 %v631_v30, %v630_v29  ;;  %v7619_v34 = vpack.c.bf16 %v629_v33, %v628_v32  ;;  %v626_v35 = vld [vmem:[%s7592_s21] sm:$0xff]  ;;  %v627_v36 = vld [vmem:[%s7592_s21 + $0x8] sm:$0xff]  ;;  %v1314_v30 = vlaneseq }
 0x13e   : > { %v7627_v37 = vpack.c.bf16 %v627_v36, %v626_v35  ;;  %v6224_v36 = vld [vmem:[%s9861_s8 + $0x1] sm:$0x1] }
 0x13f   : > { %v7691_v35 = vshrl.u32 %v1314_v30, 7 }
 0x140   : > { %1111 = vperm.xlu1 %7134, %v1073_v19   ;;  %1101 = vperm.xlu0 %7133, %v1071_v20  }
 0x141   : > { %9918 = vst [vmem:[#allocation3_spill] sm:$0xff] %v7691_v35 }
 0x144   : > { %1096 = vperm.xlu1 %7134, %v1070_v21   ;;  %1091 = vperm.xlu0 %7133, %v1069_v22  }
 0x148   : > { %1086 = vperm.xlu1 %7134, %v1068_v23   ;;  %1081 = vperm.xlu0 %7133, %v1067_v24  }
 0x14c   : > { %1076 = vperm.xlu1 %7134, %v1066_v28   ;;  %1282 = vrot.lane.b32.xlu0 %v7602_v27, %s9881_s27 }
 0x150   : > { %1340 = vrot.lane.b32.xlu1 %v7602_v27, %s9883_s0  ;;  %1280 = vrot.lane.b32.xlu0 %v7611_v31, %s9881_s27 }
 0x154   : > { %1338 = vrot.lane.b32.xlu1 %v7611_v31, %s9883_s0  ;;  %1278 = vrot.lane.b32.xlu0 %v7619_v34, %s9881_s27 }
 0x158   : > { %1336 = vrot.lane.b32.xlu1 %v7619_v34, %s9883_s0  ;;  %1276 = vrot.lane.b32.xlu0 %v7627_v37, %s9881_s27 }
 0x15c   : > { %1334 = vrot.lane.b32.xlu1 %v7627_v37, %s9883_s0  ;;  %1398 = vrot.lane.b32.xlu0 %v7602_v27, %s9879_s16 }
 0x160   : > { %1456 = vrot.lane.b32.xlu1 %v7602_v27, %s9908_s18  ;;  %1396 = vrot.lane.b32.xlu0 %v7611_v31, %s9879_s16 }
 0x164   : > { %1454 = vrot.lane.b32.xlu1 %v7611_v31, %s9908_s18 }
 0x17a   : > { %v948_v38 = vpop.permute.xlu0 %947 }
 0x17b   : > { %v1034_v3 = vsel %vm1031_vm1, %v7507_v41, %v948_v38  ;;  %v1310_v38 = vld [vmem:[%s9861_s8] sm:$0x1] }
 0x17e   : > { %v944_v39 = vpop.permute.xlu0 %943  ;;  %v950_v40 = vpop.permute.xlu1 %949 }
 0x17f   : > { %v1032_v61 = vsel %vm1031_vm1, %v7509_v42, %v944_v39  ;;  %v1035_v9 = vsel %vm1031_vm1, %v7511_v43, %v950_v40  ;;  %v7700_v39 = vsub.s32 0, %v7691_v35 }
 0x181   : > { %9919 = vst [vmem:[#allocation4_spill] sm:$0xff] %v7700_v39 }
 0x182   : > { %v946_v49 = vpop.permute.xlu0 %945 }
 0x183   : > { %v1033_v2 = vsel %vm1031_vm1, %v7513_v44, %v946_v49  ;;  %v1370_v49 = vpack.i.b16 %v6224_v36, %v6224_v36 }
 0x186   : > { %v956_v50 = vpop.permute.xlu0 %955  ;;  %v958_v51 = vpop.permute.xlu1 %957 }
 0x187   : > { %v1038_v43 = vsel %vm1031_vm1, %v7515_v45, %v956_v50  ;;  %v1039_v45 = vsel %vm1031_vm1, %v7519_v47, %v958_v51  ;;  %v1312_v51 = vpack.i.b16 %v1310_v38, %v1310_v38 }
 0x18a   : > { %v954_v52 = vpop.permute.xlu1 %953  ;;  %v952_v53 = vpop.permute.xlu0 %951 }
 0x18b   : > { %v1036_v44 = vsel %vm1031_vm1, %v7517_v46, %v952_v53  ;;  %v1037_v46 = vsel %vm1031_vm1, %v7521_v48, %v954_v52 }
 0x18e   : > { %v976_v54 = vpop.permute.xlu1 %975  ;;  %v980_v55 = vpop.permute.xlu0 %979 }
 0x18f   : > { %v1041_v62 = vsel %vm1040_vm0, %v1032_v61, %v976_v54  ;;  %v1043_v6 = vsel %vm1040_vm0, %v1034_v3, %v980_v55  ;;  %v7705_v54 = vrot.slane %v1370_v49, %v7700_v39  ;;  %v7708_v55 = vrot.slane %v1312_v51, %v7700_v39  ;;  %v1796_v49 = vld [vmem:[%s9860_s7 + $0x38] sm:$0xff] }
 0x192   : > { %v982_v56 = vpop.permute.xlu1 %981 }
 0x193   : > { %v1044_v41 = vsel %vm1040_vm0, %v1035_v9, %v982_v56 }
 0x194   : > { %v984_v57 = vpop.permute.xlu0 %983 }
 0x195   : > { %v1045_v10 = vsel %vm1040_vm0, %v1036_v44, %v984_v57 }
 0x196   : > { %v978_v58 = vpop.permute.xlu1 %977 }
 0x197   : > { %v1042_v4 = vsel %vm1040_vm0, %v1033_v2, %v978_v58 }
 0x19a   : > { %v986_v59 = vpop.permute.xlu1 %985  ;;  %v1012_v60 = vpop.permute.xlu0 %1011 }
 0x19b   : > { %v1052_v8 = vsel %vm1049_vm3, %v1043_v6, %v1012_v60  ;;  %v1046_v16 = vsel %vm1040_vm0, %v1037_v46, %v986_v59 }
 0x19e   : > { %v1008_v63 = vpop.permute.xlu0 %1007  ;;  %v1014_v0 = vpop.permute.xlu1 %1013 }
 0x19f   : > { %v1050_v1 = vsel %vm1049_vm3, %v1041_v62, %v1008_v63  ;;  %v1053_v13 = vsel %vm1049_vm3, %v1044_v41, %v1014_v0 }
 0x1a0   : > { %6938 = vmatprep.mubr.msk.f32.mxu1 %vm1114_vm2, %v1050_v1 }
 0x1a2   : > { %v988_v5 = vpop.permute.xlu0 %987  ;;  %v1010_v42 = vpop.permute.xlu1 %1009 }
 0x1a3   : > { %v1051_v7 = vsel %vm1049_vm3, %v1042_v4, %v1010_v42  ;;  %v1047_v17 = vsel %vm1040_vm0, %v1038_v43, %v988_v5 }
 0x1a4   : > { %6939 = vmatmul.mubr.msk.f32.vlgmr.msra.gmra.mxu1 %vm1114_vm2, %v1051_v7 }
 0x1a5   : > { %6941 = vmatprep.mubr.msk.f32.mxu1 %vm1114_vm2, %v1052_v8 }
 0x1a6   : > { %v990_v11 = vpop.permute.xlu1 %989  ;;  %v1016_v12 = vpop.permute.xlu0 %1015 }
 0x1a7   : > { %v1054_v14 = vsel %vm1049_vm3, %v1045_v10, %v1016_v12  ;;  %v1048_v48 = vsel %vm1040_vm0, %v1039_v45, %v990_v11 }
 0x1a8   : > { %6942 = vmatmul.mubr.msk.f32.gmra.mxu1 %vm1114_vm2, %v1053_v13 }
 0x1a9   : > { %6944 = vmatprep.mubr.msk.f32.mxu1 %vm1114_vm2, %v1054_v14 }
 0x1aa   : > { %v1020_v18 = vpop.permute.xlu0 %1019  ;;  %v1018_v19 = vpop.permute.xlu1 %1017 }
 0x1ab   : > { %v1056_v20 = vsel %vm1049_vm3, %v1047_v17, %v1020_v18  ;;  %v1055_v21 = vsel %vm1049_vm3, %v1046_v16, %v1018_v19 }
 0x1ac   : > { %6945 = vmatmul.mubr.msk.f32.gmra.mxu1 %vm1114_vm2, %v1055_v21 }
 0x1ad   : > { %6947 = vmatprep.mubr.msk.f32.mxu1 %vm1114_vm2, %v1056_v20 }
 0x1ae   : > { %v1022_v22 = vpop.permute.xlu1 %1021 }
 0x1af   : > { %v1057_v23 = vsel %vm1049_vm3, %v1048_v48, %v1022_v22 }
 0x1b0   : > { %6948 = vmatmul.mubr.msk.f32.gmra.mxu1 %vm1114_vm2, %v1057_v23 }
 0x1b7   : > { %v7683_v47 = vpop.permute.xlu0 %1106 }
 0x1bb   : > { %v7685_v24 = vpop.permute.xlu1 %1111  ;;  %v7687_v25 = vpop.permute.xlu0 %1101 }
 0x1bf   : > { %v7689_v26 = vpop.permute.xlu1 %1096  ;;  %v1092_v28 = vpop.permute.xlu0 %1091 }
 0x1c3   : > { %v1087_v29 = vpop.permute.xlu1 %1086  ;;  %v1082_v32 = vpop.permute.xlu0 %1081 }
 0x1c7   : > { %v1077_v33 = vpop.permute.xlu1 %1076  ;;  %v1283_v40 = vpop.permute.xlu0 %1282 }
 0x1c8   : > { %v1308_v53 = vsel %vm1284_vm4, 0, %v1283_v40 }
 0x1c9   : > { %v1325_v59 = vmul.bf16 %v7708_v55, %v1308_v53  ;;  %v1794_v53 = vld [vmem:[%s9860_s7 + $0x28] sm:$0xff] }
 0x1cb   : > { %v1341_v50 = vpop.permute.xlu1 %1340  ;;  %v1281_v57 = vpop.permute.xlu0 %1280 }
 0x1cc   : > { %v1365_v52 = vsel %vm1342_vm5, 0, %v1341_v50  ;;  %v1305_v60 = vsel %vm1284_vm4, 0, %v1281_v57  ;;  %v1795_v50 = vld [vmem:[%s9860_s7 + $0x30] sm:$0xff] }
 0x1cd   : > { %v1383_v56 = vmul.bf16 %v7705_v54, %v1365_v52  ;;  %v1324_v63 = vmul.bf16 %v7708_v55, %v1305_v60  ;;  %v1791_v60 = vld [vmem:[%s9860_s7 + $0x10] sm:$0xff] }
 0x1cf   : > { %v1339_v58 = vpop.permute.xlu1 %1338  ;;  %6474 = vmatprep.subr.bf16.mxu1 %v1383_v56  ;;  %v1279_v0 = vpop.permute.xlu0 %1278  ;;  %v1793_v56 = vld [vmem:[%s9860_s7 + $0x20] sm:$0xff] }
 0x1d0   : > { %v1362_v61 = vsel %vm1342_vm5, 0, %v1339_v58  ;;  %6475 = vmatpush3.bf16.msra.mxu1 %v1325_v59  ;;  %v1302_v2 = vsel %vm1284_vm4, 0, %v1279_v0  ;;  %v1792_v59 = vld [vmem:[%s9860_s7 + $0x18] sm:$0xff] }
 0x1d1   : > { %v1382_v62 = vmul.bf16 %v7705_v54, %v1362_v61  ;;  %v1323_v5 = vmul.bf16 %v7708_v55, %v1302_v2  ;;  %v1790_v61 = vld [vmem:[%s9860_s7 + $0x8] sm:$0xff] }
 0x1d3   : > { %6476 = vmatprep.subr.bf16.mxu1 %v1382_v62  ;;  %v1337_v1 = vpop.permute.xlu1 %1336  ;;  %v1277_v42 = vpop.permute.xlu0 %1276  ;;  %v1789_v62 = vld [vmem:[%s9860_s7] sm:$0xff] }
 0x1d4   : > { %v1359_v3 = vsel %vm1342_vm5, 0, %v1337_v1  ;;  %6477 = vmatpush3.bf16.msra.mxu1 %v1324_v63  ;;  %v1299_v7 = vsel %vm1284_vm4, 0, %v1277_v42 }
 0x1d5   : > { %v1381_v4 = vmul.bf16 %v7705_v54, %v1359_v3  ;;  %v1322_v44 = vmul.bf16 %v7708_v55, %v1299_v7 }
 0x1d7   : > { %6478 = vmatprep.subr.bf16.mxu1 %v1381_v4  ;;  %v1335_v6 = vpop.permute.xlu1 %1334  ;;  %v7852_v51 = vpop.permute.xlu0 %1398 }
 0x1d8   : > { %v1356_v8 = vsel %vm1342_vm5, 0, %v1335_v6  ;;  %6479 = vmatpush3.bf16.msra.mxu1 %v1323_v5 }
 0x1d9   : > { %v1380_v9 = vmul.bf16 %v7705_v54, %v1356_v8 }
 0x1db   : > { %6480 = vmatprep.subr.bf16.mxu1 %v1380_v9  ;;  %v1457_v52 = vpop.permute.xlu1 %1456  ;;  %v7860_v57 = vpop.permute.xlu0 %1396 }
 0x1dc   : > { %6481 = vmatpush3.bf16.msra.mxu1 %v1322_v44 }
 0x1df   : > { %v7862_v58 = vpop.permute.xlu1 %1454 }
 0x264   : > { %v6940_v41 = vpop.f32.mrf.mxu1 }
 0x265   : > { %v1211_v10 = vadd.f32 %v6940_v41, %v1082_v32 }
 0x266   : > { %v1205_v11 = vpop.f32.mrf.mxu1 }
 0x267   : > { %v1206_v12 = vadd.f32 %v1205_v11, %v1077_v33  ;;  %v1245_v14 = vmax.f32 %v1211_v10, 0.0 }
 0x268   : > { %v6943_v13 = vpop.f32.mrf.mxu1 }
 0x269   : > { %v1244_v43 = vmax.f32 %v1206_v12, 0.0  ;;  %v1221_v46 = vadd.f32 %v6943_v13, %v1092_v28  ;;  %v6226_v13 = vld [vmem:[%s9861_s8 + $0x3] sm:$0x1] }
 0x26a   : > { %v1215_v16 = vpop.f32.mrf.mxu1 }
 0x26b   : > { %v7724_v17 = vpack.c.bf16 %v1245_v14, %v1244_v43  ;;  %v1216_v18 = vadd.f32 %v1215_v16, %v1087_v29  ;;  %v1247_v20 = vmax.f32 %v1221_v46, 0.0  ;;  %v6228_v46 = vld [vmem:[%s9861_s8 + $0x5] sm:$0x1]  ;;  %v6225_v16 = vld [vmem:[%s9861_s8 + $0x2] sm:$0x1] }
 0x26c   : > { %v6946_v19 = vpop.f32.mrf.mxu1 }
 0x26d   : > { %v1246_v21 = vmax.f32 %v1216_v18, 0.0  ;;  %v1231_v45 = vadd.f32 %v6946_v19, %v7687_v25  ;;  %1268 = vrot.lane.b32.xlu0 %v7724_v17, %s9881_s27  ;;  %1326 = vrot.lane.b32.xlu1 %v7724_v17, %s9883_s0  ;;  %v1486_v18 = vpack.i.b16 %v6226_v13, %v6226_v13 }
 0x26e   : > { %v1225_v48 = vpop.f32.mrf.mxu1 }
 0x26f   : > { %v7731_v22 = vpack.c.bf16 %v1247_v20, %v1246_v21  ;;  %v1226_v23 = vadd.f32 %v1225_v48, %v7689_v26  ;;  %v1249_v30 = vmax.f32 %v1231_v45, 0.0  ;;  %v7196_v26 = vld [vmem:[%s9859_s6 + $0x14] ss:$36 sps:$4 sm:$0xff]   ;;  %v6227_v48 = vld [vmem:[%s9861_s8 + $0x4] sm:$0x1] }
 0x270   : > { %v6949_v28 = vpop.f32.mrf.mxu1  ;;  %2183 = vmatprep.mubr.bf16.mxu0 %v7196_v26  ;;  %v1481_v26 = vsel %vm1458_vm6, 0, %v1457_v52 }
 0x271   : > { %v1248_v32 = vmax.f32 %v1226_v23, 0.0  ;;  %v1241_v29 = vadd.f32 %v6949_v28, %v7685_v24  ;;  %1270 = vrot.lane.b32.xlu0 %v7731_v22, %s9881_s27  ;;  %1328 = vrot.lane.b32.xlu1 %v7731_v22, %s9883_s0  ;;  %v1561_v28 = vpack.i.b16 %v6228_v46, %v6228_v46 }
 0x272   : > { %v1235_v25 = vpop.f32.mrf.mxu1 }
 0x273   : > { %v7739_v33 = vpack.c.bf16 %v1249_v30, %v1248_v32  ;;  %v1236_v36 = vadd.f32 %v1235_v25, %v7683_v47  ;;  %v1251_v38 = vmax.f32 %v1241_v29, 0.0  ;;  %v7173_v47 = vld [vmem:[%s9859_s6 + $0x4] ss:$36 sps:$4 sm:$0xff]   ;;  %v1428_v30 = vpack.i.b16 %v6225_v16, %v6225_v16 }
 0x274   : > { %2053 = vmatprep.mubr.bf16.mxu1 %v7173_v47  ;;  %v1503_v29 = vpack.i.b16 %v6227_v48, %v6227_v48  ;;  %v7906_v25 = vrot.slane %v1486_v18, %v7700_v39 }
 0x275   : > { %v1250_v40 = vmax.f32 %v1236_v36, 0.0  ;;  %1272 = vrot.lane.b32.xlu0 %v7739_v33, %s9881_s27  ;;  %1330 = vrot.lane.b32.xlu1 %v7739_v33, %s9883_s0 }
 0x277   : > { %v7746_v24 = vpack.c.bf16 %v1251_v38, %v1250_v40 }
 0x279   : > { %1274 = vrot.lane.b32.xlu0 %v7746_v24, %s9881_s27  ;;  %1332 = vrot.lane.b32.xlu1 %v7746_v24, %s9883_s0  ;;  %s9906_s27 = smov 64   ;;  %s9904_s0 = smov 111  }
 0x27d   : > { %1394 = vrot.lane.b32.xlu0 %v7619_v34, %s9879_s16  ;;  %1452 = vrot.lane.b32.xlu1 %v7619_v34, %s9908_s18 }
 0x281   : > { %1392 = vrot.lane.b32.xlu0 %v7627_v37, %s9879_s16  ;;  %1450 = vrot.lane.b32.xlu1 %v7627_v37, %s9908_s18 }
 0x285   : > { %1388 = vrot.lane.b32.xlu0 %v7739_v33, %s9879_s16  ;;  %1446 = vrot.lane.b32.xlu1 %v7739_v33, %s9908_s18 }
 0x289   : > { %1444 = vrot.lane.b32.xlu0 %v7731_v22, %s9908_s18  ;;  %1531 = vrot.lane.b32.xlu1 %v7602_v27, %s9892_s30 }
 0x28d   : > { %1529 = vrot.lane.b32.xlu0 %v7611_v31, %s9892_s30  ;;  %1386 = vrot.lane.b32.xlu1 %v7731_v22, %s9879_s16 }
 0x291   : > { %1384 = vrot.lane.b32.xlu0 %v7724_v17, %s9879_s16  ;;  %1442 = vrot.lane.b32.xlu1 %v7724_v17, %s9908_s18 }
 0x295   : > { %1647 = vrot.lane.b32.xlu0 %v7602_v27, %s9877_s19  ;;  %1527 = vrot.lane.b32.xlu1 %v7619_v34, %s9892_s30 }
 0x299   : > { %1390 = vrot.lane.b32.xlu0 %v7746_v24, %s9879_s16  ;;  %1448 = vrot.lane.b32.xlu1 %v7746_v24, %s9908_s18  ;;  %s9941_s16 = smov 119  }
 0x29d   : > { %1525 = vrot.lane.b32.xlu0 %v7627_v37, %s9892_s30  ;;  %1589 = vrot.lane.b32.xlu1 %v7602_v27, %s9875_s22 }
 0x2a1   : > { %1587 = vrot.lane.b32.xlu0 %v7611_v31, %s9875_s22  ;;  %1645 = vrot.lane.b32.xlu1 %v7611_v31, %s9877_s19 }
 0x2a5   : > { %1643 = vrot.lane.b32.xlu0 %v7619_v34, %s9877_s19  ;;  %1585 = vrot.lane.b32.xlu1 %v7619_v34, %s9875_s22 }
 0x2a9   : > { %1521 = vrot.lane.b32.xlu0 %v7739_v33, %s9892_s30  ;;  %1641 = vrot.lane.b32.xlu1 %v7627_v37, %s9877_s19 }
 0x2ad   : > { %1583 = vrot.lane.b32.xlu0 %v7627_v37, %s9875_s22  ;;  %1519 = vrot.lane.b32.xlu1 %v7731_v22, %s9892_s30 }
 0x2b1   : > { %1517 = vrot.lane.b32.xlu0 %v7724_v17, %s9892_s30  ;;  %1523 = vrot.lane.b32.xlu1 %v7746_v24, %s9892_s30 }
 0x2b5   : > { %1639 = vrot.lane.b32.xlu0 %v7746_v24, %s9877_s19  ;;  %1637 = vrot.lane.b32.xlu1 %v7739_v33, %s9877_s19 }
 0x2b9   : > { %1579 = vrot.lane.b32.xlu0 %v7739_v33, %s9875_s22  ;;  %1581 = vrot.lane.b32.xlu1 %v7746_v24, %s9875_s22 }
 0x2bd   : > { %1635 = vrot.lane.b32.xlu0 %v7731_v22, %s9877_s19  ;;  %1705 = vrot.lane.b32.xlu1 %v7602_v27, %s9885_s29 }
 0x2c1   : > { %1703 = vrot.lane.b32.xlu0 %v7611_v31, %s9885_s29  ;;  %1577 = vrot.lane.b32.xlu1 %v7731_v22, %s9875_s22 }
 0x2c5   : > { %1575 = vrot.lane.b32.xlu0 %v7724_v17, %s9875_s22  ;;  %1633 = vrot.lane.b32.xlu1 %v7724_v17, %s9877_s19  ;;  %s9900_s22 = smov 15  }
 0x2c9   : > { %1699 = vrot.lane.b32.xlu0 %v7627_v37, %s9885_s29  ;;  %1701 = vrot.lane.b32.xlu1 %v7619_v34, %s9885_s29 }
 0x2cd   : > { %1695 = vrot.lane.b32.xlu0 %v7739_v33, %s9885_s29  ;;  %1697 = vrot.lane.b32.xlu1 %v7746_v24, %s9885_s29 }
 0x2d1   : > { %1691 = vrot.lane.b32.xlu0 %v7724_v17, %s9885_s29  ;;  %1693 = vrot.lane.b32.xlu1 %v7731_v22, %s9885_s29  ;;  %s6432_s29 = sshll.u32 %s9968_s28, 5 }
 0x2d2   : > { %s8451_s30 = scalar_lea.vmem %s9855_s2, %s6432_s29  ;;  %s9894_s29 = smov 113  }
 0x2d5   : > { %1834 = vperm.xlu0 %7133, %v1796_v49   ;;  %1829 = vperm.xlu1 %7134, %v1795_v50   ;;  %v7916_v49 = vrot.slane %v1561_v28, %v7700_v39  ;;  %v7919_v50 = vrot.slane %v1428_v30, %v7700_v39 }
 0x2d9   : > { %1824 = vperm.xlu0 %7133, %v1794_v53   ;;  %1819 = vperm.xlu1 %7134, %v1793_v56   ;;  %v1423_v56 = vsel %vm1400_vm7, 0, %v7852_v51 }
 0x2dd   : > { %1814 = vperm.xlu0 %7133, %v1792_v59   ;;  %1809 = vperm.xlu1 %7134, %v1791_v60   ;;  %v1499_v59 = vmul.bf16 %v7906_v25, %v1481_v26 }
 0x2df   : > { %v1269_v63 = vpop.permute.xlu0 %1268  ;;  %v1327_v0 = vpop.permute.xlu1 %1326 }
 0x2e0   : > { %v1344_v23 = vsel %vm1342_vm5, 0, %v1327_v0  ;;  %v1287_v36 = vsel %vm1284_vm4, 0, %v1269_v63  ;;  %v7174_v0 = vld [vmem:[%s9859_s6 + $0x4c] ss:$36 sps:$4 sm:$0xff]  }
 0x2e1   : > { %1804 = vperm.xlu0 %7133, %v1790_v61   ;;  %1799 = vperm.xlu1 %7134, %v1789_v62   ;;  %v1376_v38 = vmul.bf16 %v7705_v54, %v1344_v23  ;;  %v1318_v53 = vmul.bf16 %v7708_v55, %v1287_v36  ;;  %v7171_v61 = vld [vmem:[%s9859_s6] ss:$36 sps:$4 sm:$0xff]   ;;  %v1478_v62 = vsel %vm1458_vm6, 0, %v7862_v58 }
 0x2e2   : > { %v1498_v58 = vmul.bf16 %v7906_v25, %v1478_v62 }
 0x2e3   : > { %v1271_v1 = vpop.permute.xlu0 %1270  ;;  %v1329_v2 = vpop.permute.xlu1 %1328 }
 0x2e4   : > { %v1347_v14 = vsel %vm1342_vm5, 0, %v1329_v2  ;;  %v1290_v19 = vsel %vm1284_vm4, 0, %v1271_v1  ;;  %v1441_v1 = vmul.bf16 %v7919_v50, %v1423_v56  ;;  %v1420_v2 = vsel %vm1400_vm7, 0, %v7860_v57 }
 0x2e5   : > { %v1377_v20 = vmul.bf16 %v7705_v54, %v1347_v14  ;;  %v1319_v32 = vmul.bf16 %v7708_v55, %v1290_v19  ;;  %v1440_v57 = vmul.bf16 %v7919_v50, %v1420_v2 }
 0x2e7   : > { %v1273_v3 = vpop.permute.xlu0 %1272  ;;  %v1331_v4 = vpop.permute.xlu1 %1330 }
 0x2e8   : > { %v1350_v6 = vsel %vm1342_vm5, 0, %v1331_v4  ;;  %v1293_v41 = vsel %vm1284_vm4, 0, %v1273_v3 }
 0x2e9   : > { %v1378_v10 = vmul.bf16 %v7705_v54, %v1350_v6  ;;  %v1320_v43 = vmul.bf16 %v7708_v55, %v1293_v41  ;;  %v7176_v41 = vld [vmem:[%s9859_s6 + $0x48] ss:$36 sps:$4 sm:$0xff]  }
 0x2eb   : > { %v1275_v5 = vpop.permute.xlu0 %1274  ;;  %v1333_v42 = vpop.permute.xlu1 %1332 }
 0x2ec   : > { %v1296_v7 = vsel %vm1284_vm4, 0, %v1275_v5  ;;  %v1353_v8 = vsel %vm1342_vm5, 0, %v1333_v42 }
 0x2ed   : > { %v1321_v9 = vmul.bf16 %v7708_v55, %v1296_v7  ;;  %v1379_v44 = vmul.bf16 %v7705_v54, %v1353_v8  ;;  %v7923_v54 = vrot.slane %v1503_v29, %v7700_v39 }
 0x2ef   : > { %v7883_v11 = vpop.permute.xlu0 %1394  ;;  %6482 = vmatprep.subr.bf16.mxu1 %v1379_v44  ;;  %v1453_v12 = vpop.permute.xlu1 %1452  ;;  %v1516_v63 = vmul.bf16 %v7923_v54, %v7602_v27  ;;  %v1515_v42 = vmul.bf16 %v7923_v54, %v7611_v31  ;;  %v1514_v16 = vmul.bf16 %v7923_v54, %v7619_v34  ;;  %v7180_v34 = vld [vmem:[%s9859_s6 + $0xdc] ss:$36 sps:$4 sm:$0xff]  }
 0x2f0   : > { %6483 = vmatpush3.bf16.msra.mxu1 %v1321_v9  ;;  %v1475_v27 = vsel %vm1458_vm6, 0, %v1453_v12  ;;  %v1417_v7 = vsel %vm1400_vm7, 0, %v7883_v11 }
 0x2f1   : > { %6484 = vmatprep.subr.bf16.mxu1 %v1378_v10  ;;  %v1497_v8 = vmul.bf16 %v7906_v25, %v1475_v27  ;;  %v7177_v10 = vld [vmem:[%s9859_s6 + $0x94] ss:$36 sps:$4 sm:$0xff]   ;;  %v1439_v11 = vmul.bf16 %v7919_v50, %v1417_v7 }
 0x2f3   : > { %v7898_v21 = vpop.permute.xlu0 %1392  ;;  %v1451_v45 = vpop.permute.xlu1 %1450 }
 0x2f4   : > { %6485 = vmatpush3.bf16.msra.mxu1 %v1320_v43  ;;  %v1472_v31 = vsel %vm1458_vm6, 0, %v1451_v45  ;;  %v1414_v12 = vsel %vm1400_vm7, 0, %v7898_v21  ;;  %v7179_v45 = vld [vmem:[%s9859_s6 + $0x90] ss:$36 sps:$4 sm:$0xff]  }
 0x2f5   : > { %6486 = vmatprep.subr.bf16.mxu1 %v1377_v20  ;;  %v1496_v13 = vmul.bf16 %v7906_v25, %v1472_v31  ;;  %v1438_v19 = vmul.bf16 %v7919_v50, %v1414_v12 }
 0x2f7   : > { %v7910_v40 = vpop.permute.xlu0 %1388  ;;  %v7912_v47 = vpop.permute.xlu1 %1446 }
 0x2f8   : > { %6487 = vmatpush3.bf16.msra.mxu1 %v1319_v32  ;;  %v1466_v48 = vsel %vm1458_vm6, 0, %v7912_v47  ;;  %v1408_v29 = vsel %vm1400_vm7, 0, %v7910_v40  ;;  %v1513_v40 = vmul.bf16 %v7923_v54, %v7627_v37  ;;  %v7182_v37 = vld [vmem:[%s9859_s6 + $0xd8] ss:$36 sps:$4 sm:$0xff]  }
 0x2f9   : > { %6488 = vmatprep.subr.bf16.mxu1 %v1376_v38  ;;  %v1494_v36 = vmul.bf16 %v7906_v25, %v1466_v48 }
 0x2fb   : > { %v7928_v52 = vpop.permute.xlu0 %1444  ;;  %v1532_v60 = vpop.permute.xlu1 %1531 }
 0x2fc   : > { %v1556_v55 = vsel %vm1533_vm8, %v1532_v60, 0  ;;  %6489 = vmatpush3.bf16.msra.mxu1 %v1318_v53  ;;  %v1463_v26 = vsel %vm1458_vm6, 0, %v7928_v52  ;;  %v6230_v53 = vld [vmem:[%s9861_s8 + $0x7] sm:$0x1]  ;;  %v1436_v60 = vmul.bf16 %v7919_v50, %v1408_v29 }
 0x2fd   : > { %v1574_v51 = vmul.bf16 %v7916_v49, %v1556_v55  ;;  %6514 = vmatprep.subr.bf16.mxu1 %v1499_v59  ;;  %v1677_v62 = vpack.i.b16 %v6230_v53, %v6230_v53  ;;  %v6229_v55 = vld [vmem:[%s9861_s8 + $0x6] sm:$0x1] }
 0x2ff   : > { %v1530_v3 = vpop.permute.xlu0 %1529  ;;  %2054 = vmatmul.mubr.bf16.vlgmr.msra.gmra.mxu1 %v7171_v61  ;;  %6554 = vmatprep.subr.bf16.mxu0 %v1574_v51  ;;  %v1387_v4 = vpop.permute.xlu1 %1386  ;;  %v1493_v61 = vmul.bf16 %v7906_v25, %v1463_v26  ;;  %v8015_v27 = vrot.slane %v1677_v62, %v7700_v39 }
 0x300   : > { %v1553_v5 = vsel %vm1533_vm8, %v1530_v3, 0  ;;  %6515 = vmatpush3.bf16.msra.mxu1 %v1441_v1  ;;  %6555 = vmatpush3.bf16.msra.mxu0 %v1516_v63  ;;  %v1405_v52 = vsel %vm1400_vm7, 0, %v1387_v4  ;;  %v7185_v1 = vld [vmem:[%s9859_s6 + $0xc] ss:$36 sps:$4 sm:$0xff]  }
 0x301   : > { %v1573_v6 = vmul.bf16 %v7916_v49, %v1553_v5  ;;  %6516 = vmatprep.subr.bf16.mxu1 %v1498_v58  ;;  %2061 = vmatprep.mubr.bf16.mxu1 %v7174_v0  ;;  %v1435_v2 = vmul.bf16 %v7919_v50, %v1405_v52  ;;  %v1619_v58 = vpack.i.b16 %v6229_v55, %v6229_v55  ;;  %v7191_v55 = vld [vmem:[%s9859_s6 + $0x98] ss:$36 sps:$4 sm:$0xff]  }
 0x303   : > { %v7955_v9 = vpop.permute.xlu0 %1384  ;;  %v1443_v44 = vpop.permute.xlu1 %1442  ;;  %6556 = vmatprep.subr.bf16.mxu0 %v1573_v6  ;;  %v8020_v7 = vrot.slane %v1619_v58, %v7700_v39 }
 0x304   : > { %6517 = vmatpush3.bf16.msra.mxu1 %v1440_v57  ;;  %6557 = vmatpush3.bf16.msra.mxu0 %v1515_v42  ;;  %v1460_v0 = vsel %vm1458_vm6, 0, %v1443_v44  ;;  %v1402_v3 = vsel %vm1400_vm7, 0, %v7955_v9 }
 0x305   : > { %6518 = vmatprep.subr.bf16.mxu1 %v1497_v8  ;;  %v1492_v4 = vmul.bf16 %v7906_v25, %v1460_v0  ;;  %v1434_v57 = vmul.bf16 %v7919_v50, %v1402_v3 }
 0x307   : > { %v1648_v14 = vpop.permute.xlu0 %1647  ;;  %2062 = vmatmul.mubr.bf16.gmra.mxu1 %v7176_v41  ;;  %v1528_v43 = vpop.permute.xlu1 %1527  ;;  %v7183_v41 = vld [vmem:[%s9859_s6 + $0x8] ss:$36 sps:$4 sm:$0xff]  }
 0x308   : > { %v1550_v46 = vsel %vm1533_vm8, %v1528_v43, 0  ;;  %6519 = vmatpush3.bf16.msra.mxu1 %v1439_v11  ;;  %2069 = vmatprep.mubr.bf16.mxu1 %v7177_v10  ;;  %v1672_v6 = vsel %vm1649_vm9, %v1648_v14, 0 }
 0x309   : > { %v1572_v18 = vmul.bf16 %v7916_v49, %v1550_v46  ;;  %6520 = vmatprep.subr.bf16.mxu1 %v1496_v13  ;;  %v1690_v8 = vmul.bf16 %v8015_v27, %v1672_v6 }
 0x30b   : > { %v1391_v20 = vpop.permute.xlu0 %1390  ;;  %6558 = vmatprep.subr.bf16.mxu0 %v1572_v18  ;;  %v1449_v21 = vpop.permute.xlu1 %1448 }
 0x30c   : > { %v1411_v23 = vsel %vm1400_vm7, 0, %v1391_v20  ;;  %v1469_v28 = vsel %vm1458_vm6, 0, %v1449_v21  ;;  %6521 = vmatpush3.bf16.msra.mxu1 %v1438_v19  ;;  %6559 = vmatpush3.bf16.msra.mxu0 %v1514_v16  ;;  %v7188_v21 = vld [vmem:[%s9859_s6 + $0x50] ss:$36 sps:$4 sm:$0xff]  }
 0x30d   : > { %v1437_v30 = vmul.bf16 %v7919_v50, %v1411_v23  ;;  %v1495_v32 = vmul.bf16 %v7906_v25, %v1469_v28  ;;  %v7186_v50 = vld [vmem:[%s9859_s6 + $0x54] ss:$36 sps:$4 sm:$0xff]  }
 0x30f   : > { %v1526_v38 = vpop.permute.xlu0 %1525  ;;  %2070 = vmatmul.mubr.bf16.gmra.mxu1 %v7179_v45  ;;  %6522 = vmatprep.subr.bf16.mxu1 %v1495_v32  ;;  %v1590_v47 = vpop.permute.xlu1 %1589  ;;  %v7189_v32 = vld [vmem:[%s9859_s6 + $0x9c] ss:$36 sps:$4 sm:$0xff]  }
 0x310   : > { %v1547_v56 = vsel %vm1533_vm8, %v1526_v38, 0  ;;  %6523 = vmatpush3.bf16.msra.mxu1 %v1437_v30  ;;  %2077 = vmatprep.mubr.bf16.mxu1 %v7180_v34  ;;  %v1614_v25 = vsel %vm1591_vm10, %v1590_v47, 0  ;;  %v1512_v30 = vmul.bf16 %v7923_v54, %v7746_v24  ;;  %v6231_v24 = vld [vmem:[%s9861_s8 + $0x8] sm:$0x1] }
 0x311   : > { %v1571_v59 = vmul.bf16 %v7916_v49, %v1547_v56  ;;  %6524 = vmatprep.subr.bf16.mxu1 %v1494_v36  ;;  %v1632_v10 = vmul.bf16 %v8020_v7, %v1614_v25 }
 0x313   : > { %v1588_v63 = vpop.permute.xlu0 %1587  ;;  %v1646_v51 = vpop.permute.xlu1 %1645  ;;  %6560 = vmatprep.subr.bf16.mxu0 %v1571_v59  ;;  %v1511_v59 = vmul.bf16 %v7923_v54, %v7739_v33 }
 0x314   : > { %6525 = vmatpush3.bf16.msra.mxu1 %v1436_v60  ;;  %6561 = vmatpush3.bf16.msra.mxu0 %v1513_v40  ;;  %v1669_v31 = vsel %vm1649_vm9, %v1646_v51, 0  ;;  %v1611_v11 = vsel %vm1591_vm10, %v1588_v63, 0  ;;  %v1735_v63 = vpack.i.b16 %v6231_v24, %v6231_v24 }
 0x315   : > { %6526 = vmatprep.subr.bf16.mxu1 %v1493_v61  ;;  %v1689_v12 = vmul.bf16 %v8015_v27, %v1669_v31  ;;  %v1631_v46 = vmul.bf16 %v8020_v7, %v1611_v11  ;;  %v7194_v31 = vld [vmem:[%s9859_s6 + $0x10] ss:$36 sps:$4 sm:$0xff]  }
 0x317   : > { %v1644_v5 = vpop.permute.xlu0 %1643  ;;  %2078 = vmatmul.mubr.bf16.gmra.mxu1 %v7182_v37  ;;  %v1586_v42 = vpop.permute.xlu1 %1585 }
 0x318   : > { %6527 = vmatpush3.bf16.msra.mxu1 %v1435_v2  ;;  %2118 = vmatprep.mubr.bf16.mxu1 %v7185_v1  ;;  %v1666_v43 = vsel %vm1649_vm9, %v1644_v5, 0  ;;  %v1608_v18 = vsel %vm1591_vm10, %v1586_v42, 0  ;;  %v1510_v1 = vmul.bf16 %v7923_v54, %v7731_v22  ;;  %v7192_v2 = vld [vmem:[%s9859_s6 + $0xe4] ss:$36 sps:$4 sm:$0xff]   ;;  %v8080_v42 = vrot.slane %v1735_v63, %v7700_v39  ;;  %v7216_v63 = vld [vmem:[%s9859_s6 + $0xf4] ss:$36 sps:$4 sm:$0xff]  }
 0x319   : > { %6528 = vmatprep.subr.bf16.mxu1 %v1492_v4  ;;  %v1688_v16 = vmul.bf16 %v8015_v27, %v1666_v43  ;;  %v1630_v34 = vmul.bf16 %v8020_v7, %v1608_v18 }
 0x31b   : > { %v1522_v9 = vpop.permute.xlu0 %1521  ;;  %v1642_v44 = vpop.permute.xlu1 %1641 }
 0x31c   : > { %6529 = vmatpush3.bf16.msra.mxu1 %v1434_v57  ;;  %v1541_v45 = vsel %vm1533_vm8, %v1522_v9, 0  ;;  %v1663_v48 = vsel %vm1649_vm9, %v1642_v44, 0 }
 0x31d   : > { %6594 = vmatprep.subr.bf16.mxu1 %v1690_v8  ;;  %v1569_v29 = vmul.bf16 %v7916_v49, %v1541_v45  ;;  %v1687_v36 = vmul.bf16 %v8015_v27, %v1663_v48  ;;  %v1509_v8 = vmul.bf16 %v7923_v54, %v7724_v17  ;;  %v7200_v45 = vld [vmem:[%s9859_s6 + $0x18] ss:$36 sps:$4 sm:$0xff]  }
 0x31e   : > { %v7203_v48 = vld [vmem:[%s9859_s6 + $0x58] ss:$36 sps:$4 sm:$0xff]  }
 0x31f   : > { %v1584_v13 = vpop.permute.xlu0 %1583  ;;  %2119 = vmatmul.mubr.bf16.vlgmr.msra.gmra.mxu1 %v7183_v41  ;;  %v1520_v14 = vpop.permute.xlu1 %1519 }
 0x320   : > { %6595 = vmatpush3.bf16.msra.mxu1 %v1632_v10  ;;  %2126 = vmatprep.mubr.bf16.mxu1 %v7186_v50  ;;  %v1605_v38 = vsel %vm1591_vm10, %v1584_v13, 0  ;;  %v1538_v53 = vsel %vm1533_vm8, %v1520_v14, 0  ;;  %v7197_v50 = vld [vmem:[%s9859_s6 + $0xe0] ss:$36 sps:$4 sm:$0xff]  }
 0x321   : > { %6596 = vmatprep.subr.bf16.mxu1 %v1689_v12  ;;  %v1629_v40 = vmul.bf16 %v8020_v7, %v1605_v38  ;;  %v1568_v60 = vmul.bf16 %v7916_v49, %v1538_v53  ;;  %v7198_v12 = vld [vmem:[%s9859_s6 + $0x5c] ss:$36 sps:$4 sm:$0xff]   ;;  %v7210_v53 = vld [vmem:[%s9859_s6 + $0xec] ss:$36 sps:$4 sm:$0xff]  }
 0x322   : > { %v7202_v13 = vld [vmem:[%s9859_s6 + $0x1c] ss:$36 sps:$4 sm:$0xff]  }
 0x323   : > { %v1518_v19 = vpop.permute.xlu0 %1517  ;;  %v1524_v20 = vpop.permute.xlu1 %1523  ;;  %v7208_v38 = vld [vmem:[%s9859_s6 + $0xa0] ss:$36 sps:$4 sm:$0xff]  }
 0x324   : > { %v1544_v23 = vsel %vm1533_vm8, %v1524_v20, 0  ;;  %6597 = vmatpush3.bf16.msra.mxu1 %v1631_v46  ;;  %v1535_v51 = vsel %vm1533_vm8, %v1518_v19, 0 }
 0x325   : > { %v1570_v28 = vmul.bf16 %v7916_v49, %v1544_v23  ;;  %6598 = vmatprep.subr.bf16.mxu1 %v1688_v16  ;;  %v1567_v58 = vmul.bf16 %v7916_v49, %v1535_v51  ;;  %v7218_v51 = vld [vmem:[%s9859_s6 + $0x20] ss:$36 sps:$4 sm:$0xff]  }
 0x327   : > { %v1640_v47 = vpop.permute.xlu0 %1639  ;;  %2127 = vmatmul.mubr.bf16.gmra.mxu1 %v7188_v21  ;;  %6562 = vmatprep.subr.bf16.mxu0 %v1570_v28  ;;  %v1638_v26 = vpop.permute.xlu1 %1637 }
 0x328   : > { %v1660_v56 = vsel %vm1649_vm9, %v1640_v47, 0  ;;  %6563 = vmatpush3.bf16.msra.mxu0 %v1512_v30  ;;  %6599 = vmatpush3.bf16.msra.mxu1 %v1630_v34  ;;  %v1657_v37 = vsel %vm1649_vm9, %v1638_v26, 0  ;;  %v7206_v34 = vld [vmem:[%s9859_s6 + $0x64] ss:$36 sps:$4 sm:$0xff]  }
 0x329   : > { %6564 = vmatprep.subr.bf16.mxu0 %v1569_v29  ;;  %6600 = vmatprep.subr.bf16.mxu1 %v1687_v36  ;;  %v1686_v61 = vmul.bf16 %v8015_v27, %v1660_v56  ;;  %v1685_v3 = vmul.bf16 %v8015_v27, %v1657_v37  ;;  %v7209_v47 = vld [vmem:[%s9859_s6 + $0x60] ss:$36 sps:$4 sm:$0xff]   ;;  %v7212_v56 = vld [vmem:[%s9859_s6 + $0xac] ss:$36 sps:$4 sm:$0xff]  }
 0x32a   : > { %2134 = vmatprep.mubr.bf16.mxu1 %v7189_v32 }
 0x32b   : > { %v1580_v52 = vpop.permute.xlu0 %1579  ;;  %v1582_v62 = vpop.permute.xlu1 %1581 }
 0x32c   : > { %v1602_v0 = vsel %vm1591_vm10, %v1582_v62, 0  ;;  %6565 = vmatpush3.bf16.msra.mxu0 %v1511_v59  ;;  %6601 = vmatpush3.bf16.msra.mxu1 %v1629_v40  ;;  %v1599_v4 = vsel %vm1591_vm10, %v1580_v52, 0  ;;  %v7214_v52 = vld [vmem:[%s9859_s6 + $0xe8] ss:$36 sps:$4 sm:$0xff]  }
 0x32d   : > { %v1628_v33 = vmul.bf16 %v8020_v7, %v1602_v0  ;;  %6566 = vmatprep.subr.bf16.mxu0 %v1568_v60  ;;  %6602 = vmatprep.subr.bf16.mxu1 %v1686_v61  ;;  %v1627_v49 = vmul.bf16 %v8020_v7, %v1599_v4  ;;  %v7215_v62 = vld [vmem:[%s9859_s6 + $0xa8] ss:$36 sps:$4 sm:$0xff]  }
 0x32f   : > { %v1636_v5 = vpop.permute.xlu0 %1635  ;;  %2135 = vmatmul.mubr.bf16.gmra.mxu1 %v7191_v55  ;;  %v1706_v6 = vpop.permute.xlu1 %1705 }
 0x330   : > { %v1654_v57 = vsel %vm1649_vm9, %v1636_v5, 0  ;;  %v1730_v22 = vsel %vm1707_vm11, %v1706_v6, 0  ;;  %6567 = vmatpush3.bf16.msra.mxu0 %v1510_v1  ;;  %6603 = vmatpush3.bf16.msra.mxu1 %v1628_v33  ;;  %v7219_v33 = vld [vmem:[%s9859_s6 + $0xf0] ss:$36 sps:$4 sm:$0xff]   ;;  %v7220_v1 = vld [vmem:[%s9859_s6 + $0x68] ss:$36 sps:$4 sm:$0xff]  }
 0x331   : > { %6568 = vmatprep.subr.bf16.mxu0 %v1567_v58  ;;  %6604 = vmatprep.subr.bf16.mxu1 %v1685_v3  ;;  %v1684_v25 = vmul.bf16 %v8015_v27, %v1654_v57  ;;  %v1748_v9 = vmul.bf16 %v8080_v42, %v1730_v22  ;;  %v7222_v58 = vld [vmem:[%s9859_s6 + $0xf8] ss:$36 sps:$4 sm:$0xff]   ;;  %v7223_v3 = vld [vmem:[%s9862_s9] sm:$0xff]  }
 0x332   : > { %2142 = vmatprep.mubr.bf16.mxu1 %v7192_v2  ;;  %v7221_v2 = vld [vmem:[%s9859_s6 + $0xb0] ss:$36 sps:$4 sm:$0xff]  }
 0x333   : > { %v1704_v44 = vpop.permute.xlu0 %1703  ;;  %v1578_v41 = vpop.permute.xlu1 %1577 }
 0x334   : > { %v1727_v10 = vsel %vm1707_vm11, %v1704_v44, 0  ;;  %v1596_v11 = vsel %vm1591_vm10, %v1578_v41, 0  ;;  %6569 = vmatpush3.bf16.msra.mxu0 %v1509_v8  ;;  %6605 = vmatpush3.bf16.msra.mxu1 %v1627_v49 }
 0x335   : > { %v1747_v17 = vmul.bf16 %v8080_v42, %v1727_v10  ;;  %v1626_v54 = vmul.bf16 %v8020_v7, %v1596_v11  ;;  %6606 = vmatprep.subr.bf16.mxu1 %v1684_v25  ;;  %6950 = vmatprep.subr.bf16.mxu0 %v1748_v9 }
 0x337   : > { %v1576_v14 = vpop.permute.xlu0 %1575  ;;  %2143 = vmatmul.mubr.bf16.gmra.mxu1 %v7197_v50  ;;  %2184 = vmatmul.mubr.bf16.vlgmr.msra.gmra.mxu0 %v7194_v31  ;;  %v1634_v43 = vpop.permute.xlu1 %1633 }
 0x338   : > { %v1593_v46 = vsel %vm1591_vm10, %v1576_v14, 0  ;;  %v1651_v16 = vsel %vm1649_vm9, %v1634_v43, 0  ;;  %6607 = vmatpush3.bf16.msra.mxu1 %v1626_v54  ;;  %6951 = vmatpush3.bf16.msra.mxu0 %v1748_v9 }
 0x339   : > { %v1625_v18 = vmul.bf16 %v8020_v7, %v1593_v46  ;;  %v1683_v19 = vmul.bf16 %v8015_v27, %v1651_v16  ;;  %6952 = vmatprep.subr.bf16.mxu0 %v1747_v17  ;;  %2191 = vmatprep.mubr.bf16.mxu0 %v7198_v12  ;;  %v7204_v27 = vld [vmem:[%s9859_s6 + $0xa4] ss:$36 sps:$4 sm:$0xff]  }
 0x33a   : > { %2248 = vmatprep.mubr.bf16.mxu1 %v7202_v13 }
 0x33b   : > { %v1700_v20 = vpop.permute.xlu0 %1699  ;;  %6608 = vmatprep.subr.bf16.mxu1 %v1683_v19  ;;  %v1702_v21 = vpop.permute.xlu1 %1701 }
 0x33c   : > { %v1721_v23 = vsel %vm1707_vm11, %v1700_v20, 0  ;;  %v1724_v7 = vsel %vm1707_vm11, %v1702_v21, 0  ;;  %6609 = vmatpush3.bf16.msra.mxu1 %v1625_v18  ;;  %6953 = vmatpush3.bf16.msra.mxu0 %v1747_v17 }
 0x33d   : > { %v1746_v28 = vmul.bf16 %v8080_v42, %v1724_v7  ;;  %v1745_v30 = vmul.bf16 %v8080_v42, %v1721_v23 }
 0x33f   : > { %2192 = vmatmul.mubr.bf16.gmra.mxu0 %v7203_v48  ;;  %2249 = vmatmul.mubr.bf16.vlgmr.msra.gmra.mxu1 %v7200_v45  ;;  %v1698_v32 = vpop.permute.xlu1 %1697  ;;  %v1696_v36 = vpop.permute.xlu0 %1695 }
 0x340   : > { %6954 = vmatprep.subr.bf16.mxu0 %v1746_v28  ;;  %2199 = vmatprep.mubr.bf16.mxu0 %v7204_v27  ;;  %v1718_v29 = vsel %vm1707_vm11, %v1698_v32, 0  ;;  %v1715_v24 = vsel %vm1707_vm11, %v1696_v36, 0 }
 0x341   : > { %6955 = vmatpush3.bf16.msra.mxu0 %v1746_v28  ;;  %2256 = vmatprep.mubr.bf16.mxu1 %v7206_v34  ;;  %v1744_v26 = vmul.bf16 %v8080_v42, %v1718_v29  ;;  %v1743_v59 = vmul.bf16 %v8080_v42, %v1715_v24 }
 0x342   : > { %6956 = vmatprep.subr.bf16.mxu0 %v1745_v30 }
 0x343   : > { %v1694_v40 = vpop.permute.xlu1 %1693  ;;  %v1692_v61 = vpop.permute.xlu0 %1691 }
 0x344   : > { %v1712_v60 = vsel %vm1707_vm11, %v1694_v40, 0  ;;  %v1709_v37 = vsel %vm1707_vm11, %v1692_v61, 0 }
 0x345   : > { %6957 = vmatpush3.bf16.msra.mxu0 %v1745_v30  ;;  %v1742_v55 = vmul.bf16 %v8080_v42, %v1712_v60  ;;  %v1741_v0 = vmul.bf16 %v8080_v42, %v1709_v37 }
 0x346   : > { %6958 = vmatprep.subr.bf16.mxu0 %v1744_v26 }
 0x347   : > { %2200 = vmatmul.mubr.bf16.gmra.mxu0 %v7208_v38  ;;  %2257 = vmatmul.mubr.bf16.gmra.mxu1 %v7209_v47 }
 0x348   : > { %2207 = vmatprep.mubr.bf16.mxu0 %v7210_v53  ;;  %2264 = vmatprep.mubr.bf16.mxu1 %v7212_v56 }
 0x349   : > { %6959 = vmatpush3.bf16.msra.mxu0 %v1744_v26 }
 0x34a   : > { %6960 = vmatprep.subr.bf16.mxu0 %v1743_v59 }
 0x34d   : > { %6961 = vmatpush3.bf16.msra.mxu0 %v1743_v59 }
 0x34e   : > { %6962 = vmatprep.subr.bf16.mxu0 %v1742_v55 }
 0x34f   : > { %2208 = vmatmul.mubr.bf16.gmra.mxu0 %v7214_v52  ;;  %2265 = vmatmul.mubr.bf16.gmra.mxu1 %v7215_v62 }
 0x350   : > { %2272 = vmatprep.mubr.bf16.mxu1 %v7216_v63  ;;  %6966 = vmatprep.mubr.bf16.mxu0 %v7218_v51  ;;  %v8179_v44 = vpop.permute.xlu1 %1829  ;;  %v8183_v10 = vpop.permute.xlu0 %1834 }
 0x351   : > { %6963 = vmatpush3.bf16.msra.mxu0 %v1742_v55 }
 0x352   : > { %6964 = vmatprep.subr.bf16.mxu0 %v1741_v0 }
 0x354   : > { %v8187_v17 = vpop.permute.xlu1 %1819  ;;  %v8193_v13 = vpop.permute.xlu0 %1824 }
 0x355   : > { %6965 = vmatpush3.bf16.msra.mxu0 %v1741_v0 }
 0x357   : > { %2273 = vmatmul.mubr.bf16.gmra.mxu1 %v7219_v33 }
 0x358   : > { %6967 = vmatmul.mubr.bf16.vlgmr.msra.gmra.mxu0 %v7220_v1  ;;  %v1810_v43 = vpop.permute.xlu1 %1809  ;;  %v1815_v18 = vpop.permute.xlu0 %1814 }
 0x359   : > { %6970 = vmatprep.mubr.bf16.mxu0 %v7221_v2 }
 0x35c   : > { %v1800_v20 = vpop.permute.xlu1 %1799  ;;  %v1805_v28 = vpop.permute.xlu0 %1804 }
 0x360   : > { %6971 = vmatmul.mubr.bf16.gmra.mxu0 %v7222_v58 }
 0x361   : > { %6982 = vmatprep.mubr.msk.bf16.mxu0 %vm1114_vm2, %v7223_v3 }
 0x3bf   : > { %v6490_v4 = vpop.f32.mrf.mxu1 }
 0x3c1   : > { %v6491_v5 = vpop.f32.mrf.mxu1 }
 0x3c2   : > { %v6492_v42 = vadd.f32 %v6491_v5, %v6490_v4 }
 0x3c3   : > { %v6493_v6 = vpop.f32.mrf.mxu1 }
 0x3c4   : > { %v2056_v45 = vadd.f32 %v6492_v42, %v1800_v20 }
 0x3c5   : > { %v6494_v57 = vpop.f32.mrf.mxu1 }
 0x3c6   : > { %v6495_v48 = vadd.f32 %v6494_v57, %v6493_v6 }
 0x3c7   : > { %v6496_v22 = vpop.f32.mrf.mxu1 }
 0x3c8   : > { %v2059_v30 = vadd.f32 %v6495_v48, %v1805_v28 }
 0x3c9   : > { %v6497_v49 = vpop.f32.mrf.mxu1 }
 0x3ca   : > { %v8173_v8 = vadd.f32 %v6497_v49, %v6496_v22 }
 0x3cb   : > { %v8175_v25 = vpop.f32.mrf.mxu1 }
 0x3cc   : > { %v2064_v28 = vadd.f32 %v8173_v8, %v1810_v43 }
 0x3cd   : > { %v8177_v9 = vpop.f32.mrf.mxu1 }
 0x3cf   : > { %v6502_v41 = vpop.f32.mrf.mxu1 }
 0x3d1   : > { %v6503_v31 = vpop.f32.mrf.mxu1 }
 0x3d2   : > { %v8181_v50 = vadd.f32 %v6503_v31, %v6502_v41 }
 0x3d3   : > { %v8185_v11 = vpop.f32.mrf.mxu1 }
 0x3d5   : > { %v8189_v54 = vpop.f32.mrf.mxu1 }
 0x3d6   : > { %v6507_v39 = vadd.f32 %v8189_v54, %v8185_v11  ;;  %v2072_v11 = vadd.f32 %v8181_v50, %v8187_v17 }
 0x3d7   : > { %v8191_v12 = vpop.f32.mrf.mxu1 }
 0x3d8   : > { %v2075_v54 = vadd.f32 %v6507_v39, %v8193_v13 }
 0x3d9   : > { %v8195_v14 = vpop.f32.mrf.mxu1 }
 0x3da   : > { %v6510_v35 = vadd.f32 %v8195_v14, %v8191_v12 }
 0x3db   : > { %v8197_v46 = vpop.f32.mrf.mxu1 }
 0x3dc   : > { %v2080_v12 = vadd.f32 %v6510_v35, %v8179_v44 }
 0x3dd   : > { %v8199_v16 = vpop.f32.mrf.mxu1 }
 0x3df   : > { %v6530_v19 = vpop.f32.mrf.mxu1 }
 0x3e1   : > { %v6531_v21 = vpop.f32.mrf.mxu1 }
 0x3e2   : > { %v6532_v23 = vadd.f32 %v6531_v21, %v6530_v19  ;;  %v6501_v21 = vadd.f32 %v8177_v9, %v8175_v25 }
 0x3e3   : > { %v6533_v7 = vpop.f32.mrf.mxu1 }
 0x3e4   : > { %v8201_v27 = vadd.f32 %v6532_v23, %v2056_v45  ;;  %v2067_v15 = vadd.f32 %v6501_v21, %v1815_v18 }
 0x3e5   : > { %v6534_v34 = vpop.f32.mrf.mxu1 }
 0x3e6   : > { %v6535_v32 = vadd.f32 %v6534_v34, %v6533_v7 }
 0x3e7   : > { %v6536_v29 = vpop.f32.mrf.mxu1 }
 0x3e8   : > { %v8203_v36 = vadd.f32 %v6535_v32, %v2059_v30 }
 0x3e9   : > { %v6537_v38 = vpop.f32.mrf.mxu1 }
 0x3ea   : > { %v6538_v45 = vadd.f32 %v6537_v38, %v6536_v29  ;;  %v6513_v38 = vadd.f32 %v8199_v16, %v8197_v46 }
 0x3eb   : > { %v6539_v47 = vpop.f32.mrf.mxu1 }
 0x3ed   : > { %v6540_v26 = vpop.f32.mrf.mxu1 }
 0x3ee   : > { %v6541_v7 = vadd.f32 %v6540_v26, %v6539_v47 }
 0x3ef   : > { %v6542_v53 = vpop.f32.mrf.mxu1 }
 0x3f0   : > { %v2132_v8 = vadd.f32 %v6541_v7, %v2067_v15 }
 0x3f1   : > { %v6543_v56 = vpop.f32.mrf.mxu1 }
 0x3f2   : > { %v6544_v43 = vadd.f32 %v6543_v56, %v6542_v53  ;;  %v2083_v53 = vadd.f32 %v6513_v38, %v8183_v10 }
 0x3f3   : > { %v8205_v24 = vpop.f32.mrf.mxu1 }
 0x3f4   : > { %9920 = vst [vmem:[#allocation5_spill] sm:$0xff] %v8205_v24  ;;  %v2137_v56 = vadd.f32 %v6544_v43, %v2072_v11 }
 0x3f5   : > { %v8207_v40 = vpop.f32.mrf.mxu1 }
 0x3f6   : > { %9921 = vst [vmem:[#allocation6_spill] sm:$0xff] %v8207_v40 }
 0x3f7   : > { %v6548_v59 = vpop.f32.mrf.mxu1  ;;  %v6570_v60 = vpop.f32.mrf.mxu0 }
 0x3f9   : > { %v6549_v61 = vpop.f32.mrf.mxu1  ;;  %v6571_v52 = vpop.f32.mrf.mxu0 }
 0x3fa   : > { %v6572_v40 = vadd.f32 %v6571_v52, %v6570_v60  ;;  %v6550_v14 = vadd.f32 %v6549_v61, %v6548_v59 }
 0x3fb   : > { %v6551_v62 = vpop.f32.mrf.mxu1  ;;  %v6573_v55 = vpop.f32.mrf.mxu0  ;;  %v9923_v44 = vld [vmem:[#allocation5_spill] sm:$0xff] }
 0x3fc   : > { %v2186_v52 = vadd.f32 %v6572_v40, %v8201_v27  ;;  %v2145_v27 = vadd.f32 %v6550_v14, %v2080_v12 }
 0x3fd   : > { %v6552_v63 = vpop.f32.mrf.mxu1  ;;  %v6574_v51 = vpop.f32.mrf.mxu0  ;;  %v9924_v59 = vld [vmem:[#allocation6_spill] sm:$0xff] }
 0x3fe   : > { %v6575_v47 = vadd.f32 %v6574_v51, %v6573_v55  ;;  %v6553_v55 = vadd.f32 %v6552_v63, %v6551_v62  ;;  %v6547_v61 = vadd.f32 %v9924_v59, %v9923_v44  ;;  %v2502_v44 = vld [vmem:[%s9864_s11 + $0x98] sm:$0xff]  ;;  %v2501_v59 = vld [vmem:[%s9864_s11 + $0x90] sm:$0xff] }
 0x3ff   : > { %v6576_v37 = vpop.f32.mrf.mxu0  ;;  %v6610_v0 = vpop.f32.mrf.mxu1 }
 0x400   : > { %v2189_v50 = vadd.f32 %v6575_v47, %v8203_v36  ;;  %v2148_v63 = vadd.f32 %v6553_v55, %v2083_v53  ;;  %v2512_v53 = vld [vmem:[%s9864_s11 + $0xe8] sm:$0xff]  ;;  %v2510_v55 = vld [vmem:[%s9864_s11 + $0xd8] sm:$0xff] }
 0x401   : > { %v6577_v33 = vpop.f32.mrf.mxu0  ;;  %v6611_v1 = vpop.f32.mrf.mxu1 }
 0x402   : > { %v6578_v34 = vadd.f32 %v6577_v33, %v6576_v37  ;;  %v6612_v18 = vadd.f32 %v6611_v1, %v6610_v0 }
 0x403   : > { %v6579_v2 = vpop.f32.mrf.mxu0  ;;  %v6613_v58 = vpop.f32.mrf.mxu1 }
 0x404   : > { %v2251_v39 = vadd.f32 %v6612_v18, %v2186_v52  ;;  %v7224_v52 = vld [vmem:[%s9862_s9 + $0x8] sm:$0xff]  }
 0x405   : > { %v6580_v3 = vpop.f32.mrf.mxu0  ;;  %v6614_v4 = vpop.f32.mrf.mxu1 }
 0x406   : > { %v6581_v24 = vadd.f32 %v6580_v3, %v6579_v2  ;;  %v6615_v46 = vadd.f32 %v6614_v4, %v6613_v58 }
 0x407   : > { %v6582_v5 = vpop.f32.mrf.mxu0  ;;  %v6616_v42 = vpop.f32.mrf.mxu1 }
 0x408   : > { %v2197_v2 = vadd.f32 %v6581_v24, %v2132_v8  ;;  %v2254_v62 = vadd.f32 %v6615_v46, %v2189_v50  ;;  %v7226_v46 = vld [vmem:[%s9862_s9 + $0x18] sm:$0xff]   ;;  %v2507_v50 = vld [vmem:[%s9864_s11 + $0xc0] sm:$0xff] }
 0x409   : > { %v6583_v6 = vpop.f32.mrf.mxu0  ;;  %v6617_v57 = vpop.f32.mrf.mxu1 }
 0x40a   : > { %v6618_v25 = vadd.f32 %v6617_v57, %v6616_v42  ;;  %v6584_v24 = vadd.f32 %v6583_v6, %v6582_v5 }
 0x40b   : > { %v8209_v22 = vpop.f32.mrf.mxu0  ;;  %v6619_v49 = vpop.f32.mrf.mxu1 }
 0x40c   : > { %9922 = vst [vmem:[#allocation7_spill] sm:$0xff] %v8209_v22  ;;  %v2129_v22 = vadd.f32 %v6538_v45, %v2064_v28  ;;  %v2202_v7 = vadd.f32 %v6584_v24, %v2137_v56  ;;  %v2511_v56 = vld [vmem:[%s9864_s11 + $0xe0] sm:$0xff]  ;;  %v2498_v24 = vld [vmem:[%s9864_s11 + $0x78] sm:$0xff] }
 0x40d   : > { %v6586_v41 = vpop.f32.mrf.mxu0  ;;  %v6620_v31 = vpop.f32.mrf.mxu1 }
 0x40e   : > { %v2194_v26 = vadd.f32 %v6578_v34, %v2129_v22  ;;  %v6621_v37 = vadd.f32 %v6620_v31, %v6619_v49 }
 0x40f   : > { %v6588_v19 = vpop.f32.mrf.mxu0  ;;  %v6622_v20 = vpop.f32.mrf.mxu1 }
 0x410   : > { %v2259_v15 = vadd.f32 %v6618_v25, %v2194_v26  ;;  %v2262_v35 = vadd.f32 %v6621_v37, %v2197_v2  ;;  %v7225_v2 = vld [vmem:[%s9862_s9 + $0x10] sm:$0xff]  }
 0x411   : > { %v6589_v48 = vpop.f32.mrf.mxu0  ;;  %v6623_v23 = vpop.f32.mrf.mxu1 }
 0x412   : > { %v6590_v51 = vadd.f32 %v6589_v48, %v6588_v19  ;;  %v6624_v22 = vadd.f32 %v6623_v23, %v6622_v20  ;;  %v2140_v48 = vadd.f32 %v6547_v61, %v2075_v54  ;;  %v2500_v61 = vld [vmem:[%s9864_s11 + $0x88] sm:$0xff] }
 0x413   : > { %v6591_v30 = vpop.f32.mrf.mxu0  ;;  %v6625_v32 = vpop.f32.mrf.mxu1  ;;  %v9925_v42 = vld [vmem:[#allocation7_spill] sm:$0xff] }
 0x414   : > { %v6587_v57 = vadd.f32 %v6586_v41, %v9925_v42  ;;  %v2210_v36 = vadd.f32 %v6590_v51, %v2145_v27  ;;  %v2267_v47 = vadd.f32 %v6624_v22, %v2202_v7  ;;  %v2509_v51 = vld [vmem:[%s9864_s11 + $0xd0] sm:$0xff]  ;;  %v2499_v27 = vld [vmem:[%s9864_s11 + $0x80] sm:$0xff]  ;;  %v2486_v22 = vld [vmem:[%s9864_s11 + $0x18] sm:$0xff] }
 0x415   : > { %v6592_v9 = vpop.f32.mrf.mxu0  ;;  %v6626_v29 = vpop.f32.mrf.mxu1  ;;  %v2489_v42 = vld [vmem:[%s9864_s11 + $0x30] sm:$0xff]  ;;  %v2543_v7 = vld [vmem:[%s9864_s11 + $0x1e0] sm:$0xff] }
 0x416   : > { %v6593_v40 = vadd.f32 %v6592_v9, %v6591_v30  ;;  %v6627_v6 = vadd.f32 %v6626_v29, %v6625_v32  ;;  %v2205_v38 = vadd.f32 %v6587_v57, %v2140_v48  ;;  %v2488_v57 = vld [vmem:[%s9864_s11 + $0x28] sm:$0xff] }
 0x417   : > { %v6628_v33 = vpop.f32.mrf.mxu1  ;;  %v2544_v48 = vld [vmem:[%s9864_s11 + $0x1e8] sm:$0xff] }
 0x418   : > { %v6968_v60 = vpop.f32.mrf.mxu0  ;;  %v2213_v5 = vadd.f32 %v6593_v40, %v2148_v63  ;;  %v2270_v37 = vadd.f32 %v6627_v6, %v2205_v38  ;;  %v2497_v40 = vld [vmem:[%s9864_s11 + $0x70] sm:$0xff]  ;;  %v2490_v63 = vld [vmem:[%s9864_s11 + $0x38] sm:$0xff]  ;;  %v2535_v38 = vld [vmem:[%s9864_s11 + $0x1a0] sm:$0xff] }
 0x419   : > { %v6629_v16 = vpop.f32.mrf.mxu1  ;;  %v2324_v17 = vadd.f32 %v6968_v60, %v2259_v15  ;;  %v2514_v15 = vld [vmem:[%s9864_s11 + $0xf8] sm:$0xff]  ;;  %v2541_v6 = vld [vmem:[%s9864_s11 + $0x1d0] sm:$0xff] }
 0x41a   : > { %v2315_v0 = vpop.f32.mrf.mxu0  ;;  %v6630_v58 = vadd.f32 %v6629_v16, %v6628_v33  ;;  %v2513_v16 = vld [vmem:[%s9864_s11 + $0xf0] sm:$0xff]  ;;  %2559 = vmatprep.subr.mxu1 %v2514_v15 }
 0x41b   : > { %v6631_v13 = vpop.f32.mrf.mxu1  ;;  %v2316_v3 = vadd.f32 %v2315_v0, %v2251_v39  ;;  %v2348_v31 = vmax.f32 %v2324_v17, 0.0  ;;  %2560 = vmatpush1.msra.mxu1 %v2513_v16  ;;  %v2508_v0 = vld [vmem:[%s9864_s11 + $0xc8] sm:$0xff]  ;;  %v2506_v17 = vld [vmem:[%s9864_s11 + $0xb8] sm:$0xff]  ;;  %v2505_v39 = vld [vmem:[%s9864_s11 + $0xb0] sm:$0xff] }
 0x41c   : > { %v6969_v1 = vpop.f32.mrf.mxu0  ;;  %v2275_v9 = vadd.f32 %v6630_v58, %v2210_v36  ;;  %2561 = vmatprep.subr.mxu1 %v2512_v53  ;;  %v2495_v58 = vld [vmem:[%s9864_s11 + $0x60] sm:$0xff] }
 0x41d   : > { %v2327_v10 = vadd.f32 %v6969_v1, %v2262_v35  ;;  %v6632_v4 = vpop.f32.mrf.mxu1  ;;  %v2346_v34 = vmax.f32 %v2316_v3, 0.0  ;;  %2562 = vmatpush1.msra.mxu1 %v2511_v56  ;;  %v2503_v35 = vld [vmem:[%s9864_s11 + $0xa0] sm:$0xff]  ;;  %v2496_v1 = vld [vmem:[%s9864_s11 + $0x68] sm:$0xff]  ;;  %v2494_v3 = vld [vmem:[%s9864_s11 + $0x58] sm:$0xff] }
 0x41e   : > { %v2318_v49 = vpop.f32.mrf.mxu0  ;;  %v6633_v21 = vadd.f32 %v6632_v4, %v6631_v13  ;;  %2563 = vmatprep.subr.mxu1 %v2510_v55  ;;  %v2504_v13 = vld [vmem:[%s9864_s11 + $0xa8] sm:$0xff]  ;;  %v2487_v36 = vld [vmem:[%s9864_s11 + $0x20] sm:$0xff] }
 0x41f   : > { %v2349_v19 = vmax.f32 %v2327_v10, 0.0  ;;  %v2319_v45 = vadd.f32 %v2318_v49, %v2254_v62  ;;  %2564 = vmatpush1.msra.mxu1 %v2509_v51  ;;  %v2493_v10 = vld [vmem:[%s9864_s11 + $0x50] sm:$0xff]  ;;  %v2492_v4 = vld [vmem:[%s9864_s11 + $0x48] sm:$0xff]  ;;  %v2491_v62 = vld [vmem:[%s9864_s11 + $0x40] sm:$0xff] }
 0x420   : > { %v6972_v28 = vpop.f32.mrf.mxu0  ;;  %v2278_v20 = vadd.f32 %v6633_v21, %v2213_v5  ;;  %2565 = vmatprep.subr.mxu1 %v2508_v0  ;;  %v2485_v49 = vld [vmem:[%s9864_s11 + $0x10] sm:$0xff]  ;;  %v2546_v21 = vld [vmem:[%s9864_s11 + $0x1f8] sm:$0xff] }
 0x421   : > { %v2363_v30 = vpack.c.bf16 %v2349_v19, %v2348_v31  ;;  %v2347_v25 = vmax.f32 %v2319_v45, 0.0  ;;  %v2340_v41 = vadd.f32 %v6972_v28, %v2275_v9  ;;  %2566 = vmatpush1.msra.mxu1 %v2507_v50  ;;  %v2484_v31 = vld [vmem:[%s9864_s11 + $0x8] sm:$0xff]  ;;  %v2483_v19 = vld [vmem:[%s9864_s11] sm:$0xff]  ;;  %v2545_v45 = vld [vmem:[%s9864_s11 + $0x1f0] sm:$0xff] }
 0x422   : > { %v2331_v8 = vpop.f32.mrf.mxu0  ;;  %2567 = vmatprep.subr.mxu1 %v2506_v17  ;;  %v2542_v5 = vld [vmem:[%s9864_s11 + $0x1d8] sm:$0xff]  ;;  %v2540_v28 = vld [vmem:[%s9864_s11 + $0x1c8] sm:$0xff]  ;;  %v2547_v17 = vld [vmem:[%s9863_s10] sm:$0xff] }
 0x423   : > { %v2362_v43 = vpack.c.bf16 %v2347_v25, %v2346_v34  ;;  %v2332_v26 = vadd.f32 %v2331_v8, %v2267_v47  ;;  %v2352_v11 = vmax.f32 %v2340_v41, 0.0  ;;  %2568 = vmatpush1.msra.mxu1 %v2505_v39  ;;  %v2539_v34 = vld [vmem:[%s9864_s11 + $0x1c0] sm:$0xff]  ;;  %v2537_v25 = vld [vmem:[%s9864_s11 + $0x1b0] sm:$0xff]  ;;  %v2536_v9 = vld [vmem:[%s9864_s11 + $0x1a8] sm:$0xff] }
 0x424   : > { %v6973_v23 = vpop.f32.mrf.mxu0  ;;  %2569 = vmatprep.subr.mxu1 %v2504_v13  ;;  %v2534_v8 = vld [vmem:[%s9864_s11 + $0x198] sm:$0xff]  ;;  %v2532_v41 = vld [vmem:[%s9864_s11 + $0x188] sm:$0xff]  ;;  %v2531_v47 = vld [vmem:[%s9864_s11 + $0x180] sm:$0xff] }
 0x425   : > { %v2343_v18 = vadd.f32 %v6973_v23, %v2278_v20  ;;  %v2350_v32 = vmax.f32 %v2332_v26, 0.0  ;;  %2570 = vmatpush1.msra.mxu1 %v2503_v35  ;;  %v2530_v20 = vld [vmem:[%s9864_s11 + $0x178] sm:$0xff]  ;;  %v2529_v23 = vld [vmem:[%s9864_s11 + $0x170] sm:$0xff]  ;;  %v2528_v26 = vld [vmem:[%s9864_s11 + $0x168] sm:$0xff] }
 0x426   : > { %v2334_v33 = vpop.f32.mrf.mxu0  ;;  %2571 = vmatprep.subr.mxu1 %v2502_v44  ;;  %v2548_v13 = vld [vmem:[%s9863_s10 + $0x8] sm:$0xff] }
 0x427   : > { %v2353_v54 = vmax.f32 %v2343_v18, 0.0  ;;  %v2335_v12 = vadd.f32 %v2334_v33, %v2270_v37  ;;  %2572 = vmatpush1.msra.mxu1 %v2501_v59  ;;  %v2527_v18 = vld [vmem:[%s9864_s11 + $0x160] sm:$0xff]  ;;  %v2526_v37 = vld [vmem:[%s9864_s11 + $0x158] sm:$0xff]  ;;  %v2525_v33 = vld [vmem:[%s9864_s11 + $0x150] sm:$0xff] }
 0x428   : > { %2573 = vmatprep.subr.mxu1 %v2500_v61 }
 0x429   : > { %v2365_v29 = vpack.c.bf16 %v2353_v54, %v2352_v11  ;;  %v2351_v14 = vmax.f32 %v2335_v12, 0.0  ;;  %2574 = vmatpush1.msra.mxu1 %v2499_v27  ;;  %v2524_v11 = vld [vmem:[%s9864_s11 + $0x148] sm:$0xff]  ;;  %v2523_v54 = vld [vmem:[%s9864_s11 + $0x140] sm:$0xff]  ;;  %v2522_v12 = vld [vmem:[%s9864_s11 + $0x138] sm:$0xff] }
 0x42a   : > { %2575 = vmatprep.subr.mxu1 %v2498_v24 }
 0x42b   : > { %v2364_v60 = vpack.c.bf16 %v2351_v14, %v2350_v32  ;;  %6974 = vmatprep.subr.bf16.mxu0 %v2365_v29  ;;  %2576 = vmatpush1.msra.mxu1 %v2497_v40  ;;  %v2521_v32 = vld [vmem:[%s9864_s11 + $0x130] sm:$0xff]  ;;  %v2519_v14 = vld [vmem:[%s9864_s11 + $0x120] sm:$0xff] }
 0x42c   : > { %6975 = vmatpush3.bf16.msra.mxu0 %v2365_v29  ;;  %2577 = vmatprep.subr.mxu1 %v2496_v1  ;;  %v2520_v29 = vld [vmem:[%s9864_s11 + $0x128] sm:$0xff] }
 0x42d   : > { %6976 = vmatprep.subr.bf16.mxu0 %v2364_v60  ;;  %2578 = vmatpush1.msra.mxu1 %v2495_v58 }
 0x42e   : > { %2579 = vmatprep.subr.mxu1 %v2494_v3 }
 0x42f   : > { %2580 = vmatpush1.msra.mxu1 %v2493_v10 }
 0x430   : > { %6977 = vmatpush3.bf16.msra.mxu0 %v2364_v60  ;;  %2581 = vmatprep.subr.mxu1 %v2492_v4  ;;  %v2518_v60 = vld [vmem:[%s9864_s11 + $0x118] sm:$0xff]  ;;  %v9926_v4 = vmov 0  }
 0x431   : > { %6978 = vmatprep.subr.bf16.mxu0 %v2363_v30  ;;  %2582 = vmatpush1.msra.mxu1 %v2491_v62  ;;  %v634_v62 = vld [vmem:[%s8451_s30] sm:$0xff] }
 0x432   : > { %2583 = vmatprep.subr.mxu1 %v2490_v63  ;;  %v636_v63 = vld [vmem:[%s8451_s30 + $0x10] sm:$0xff] }
 0x433   : > { %2584 = vmatpush1.msra.mxu1 %v2489_v42  ;;  %v8455_v42 = vpack.c.bf16 %v636_v63, %v634_v62 }
 0x434   : > { %6979 = vmatpush3.bf16.msra.mxu0 %v2363_v30  ;;  %2585 = vmatprep.subr.mxu1 %v2488_v57  ;;  %v2538_v30 = vld [vmem:[%s9864_s11 + $0x1b8] sm:$0xff]  ;;  %v635_v57 = vld [vmem:[%s8451_s30 + $0x8] sm:$0xff] }
 0x435   : > { %6980 = vmatprep.subr.bf16.mxu0 %v2362_v43  ;;  %2586 = vmatpush1.msra.mxu1 %v2487_v36  ;;  %v637_v36 = vld [vmem:[%s8451_s30 + $0x18] sm:$0xff] }
 0x436   : > { %2587 = vmatprep.subr.mxu1 %v2486_v22  ;;  %v8459_v22 = vpack.c.bf16 %v637_v36, %v635_v57  ;;  %v6276_v57 = vld.sshfl [vmem:[%s9867_s14] sm:$0x11 pattern:$0x75316420] }
 0x437   : > { %2588 = vmatpush1.msra.mxu1 %v2485_v49  ;;  %v7328_v49 = vmov 1966171168  }
 0x438   : > { %6981 = vmatpush3.bf16.msra.mxu0 %v2362_v43  ;;  %2589 = vmatprep.subr.mxu1 %v2484_v31  ;;  %v2533_v43 = vld [vmem:[%s9864_s11 + $0x190] sm:$0xff]  ;;  %v2679_v31 = vunpack.c.l.s4 %v7328_v49 }
 0x439   : > { %2590 = vmatpush1.msra.mxu1 %v2483_v19 }
 0x43a   : > { %2591 = vmatprep.subr.mxu1 %v2546_v21  ;;  %v2680_v19 = vunpack.c.0.s8 %v2679_v31  ;;  %v6282_v21 = vld.sshfl [vmem:[%s9867_s14 + $0x6] sm:$0x11 pattern:$0x75316420] }
 0x43b   : > { %6983 = vmatmul.mubr.msk.bf16.vlgmr.msra.gmra.mxu0 %vm1114_vm2, %v7224_v52  ;;  %2592 = vmatpush2.msra.mxu1 %v2545_v45  ;;  %v2517_v52 = vld [vmem:[%s9864_s11 + $0x110] sm:$0xff]  ;;  %v2864_v45 = vcombine.high %v6282_v21, %v6282_v21 }
 0x43c   : > { %6986 = vmatprep.mubr.msk.bf16.mxu0 %vm1114_vm2, %v7225_v2  ;;  %2593 = vmatprep.subr.mxu1 %v2544_v48  ;;  %v2516_v2 = vld [vmem:[%s9864_s11 + $0x108] sm:$0xff] }
 0x43d   : > { %2594 = vmatpush2.msra.mxu1 %v2543_v7  ;;  %v9927_v48 = vld [vmem:[#allocation3_spill] sm:$0xff] }
 0x43e   : > { %2595 = vmatprep.subr.mxu1 %v2542_v5  ;;  %v8469_v7 = vsub.s32 %v2680_v19, %v9927_v48 }
 0x43f   : > { %2596 = vmatpush2.msra.mxu1 %v2541_v6 }
 0x440   : > { %2597 = vmatprep.subr.mxu1 %v2540_v28  ;;  %9928 = vst [vmem:[#allocation5_spill] sm:$0xff] %v8469_v7  ;;  %v2871_v5 = vrot.slane %v6282_v21, %v8469_v7  ;;  %v2878_v6 = vrot.slane %v2864_v45, %v8469_v7 }
 0x441   : > { %2598 = vmatpush2.msra.mxu1 %v2539_v34 }
 0x442   : > { %2599 = vmatprep.subr.mxu1 %v2538_v30  ;;  %v2880_v28 = vpack.i.b16 %v2871_v5, %v2871_v5  ;;  %v2887_v34 = vpack.i.b16 %v2878_v6, %v2878_v6  ;;  %v2677_v5 = vcombine.high %v6276_v57, %v6276_v57 }
 0x443   : > { %6987 = vmatmul.mubr.msk.bf16.gmra.mxu0 %vm1114_vm2, %v7226_v46  ;;  %2600 = vmatpush2.msra.mxu1 %v2537_v25  ;;  %v2515_v46 = vld [vmem:[%s9864_s11 + $0x100] sm:$0xff] }
 0x444   : > { %2601 = vmatprep.subr.mxu1 %v2536_v9  ;;  %v9929_v9 = vld [vmem:[#allocation4_spill] sm:$0xff] }
 0x445   : > { %2602 = vmatpush2.msra.mxu1 %v2535_v38  ;;  %v8474_v38 = vrot.slane %v2880_v28, %v9929_v9 }
 0x446   : > { %2603 = vmatprep.subr.mxu1 %v2534_v8  ;;  %v8477_v8 = vrot.slane %v2887_v34, %v9929_v9 }
 0x447   : > { %2604 = vmatpush2.msra.mxu1 %v2533_v43 }
 0x448   : > { %2605 = vmatprep.subr.mxu1 %v2532_v41 }
 0x449   : > { %2606 = vmatpush2.msra.mxu1 %v2531_v47 }
 0x44a   : > { %2607 = vmatprep.subr.mxu1 %v2530_v20 }
 0x44b   : > { %2608 = vmatpush2.msra.mxu1 %v2529_v23 }
 0x44c   : > { %2609 = vmatprep.subr.mxu1 %v2528_v26 }
 0x44d   : > { %2610 = vmatpush2.msra.mxu1 %v2527_v18 }
 0x44e   : > { %2611 = vmatprep.subr.mxu1 %v2526_v37 }
 0x44f   : > { %2612 = vmatpush2.msra.mxu1 %v2525_v33 }
 0x450   : > { %2613 = vmatprep.subr.mxu1 %v2524_v11 }
 0x451   : > { %2614 = vmatpush2.msra.mxu1 %v2523_v54 }
 0x452   : > { %2615 = vmatprep.subr.mxu1 %v2522_v12 }
 0x453   : > { %2616 = vmatpush2.msra.mxu1 %v2521_v32 }
 0x454   : > { %2617 = vmatprep.subr.mxu1 %v2520_v29 }
 0x455   : > { %2618 = vmatpush2.msra.mxu1 %v2519_v14 }
 0x456   : > { %2619 = vmatprep.subr.mxu1 %v2518_v60 }
 0x457   : > { %2620 = vmatpush2.msra.mxu1 %v2517_v52 }
 0x458   : > { %2621 = vmatprep.subr.mxu1 %v2516_v2 }
 0x459   : > { %2622 = vmatpush2.msra.mxu1 %v2515_v46 }
 0x4fb   : > { %v6984_v15 = vpop.f32.mrf.mxu0 }
 0x4fd   : > { %v2432_v16 = vpop.f32.mrf.mxu0 }
 0x4ff   : > { %v6985_v53 = vpop.f32.mrf.mxu0 }
 0x501   : > { %v2435_v56 = vpop.f32.mrf.mxu0 }
 0x503   : > { %v6988_v55 = vpop.f32.mrf.mxu0 }
 0x504   : > { %v7135_v51 = vpack.i.bf16 %v6984_v15, %v6988_v55  ;;  %v6280_v55 = vld.sshfl [vmem:[%s9867_s14 + $0x4] sm:$0x11 pattern:$0x75316420] }
 0x505   : > { %v2448_v0 = vpop.f32.mrf.mxu0 }
 0x506   : > { %7136 = vrot.lane.b32.xlu1 %v7135_v51, %s9906_s27  ;;  %v2802_v51 = vcombine.high %v6280_v55, %v6280_v55 }
 0x507   : > { %v6989_v50 = vpop.f32.mrf.mxu0 }
 0x508   : > { %v7140_v39 = vpack.i.bf16 %v6985_v53, %v6989_v50  ;;  %v3196_v53 = vld [vmem:[%s9866_s13] sm:$0xff]  ;;  %v2816_v50 = vrot.slane %v2802_v51, %v8469_v7 }
 0x509   : > { %v2451_v58 = vpop.f32.mrf.mxu0 }
 0x50a   : > { %2551 = vperm.xlu1 %7134, %v2547_v17   ;;  %7141 = vrot.lane.b32.xlu0 %v7140_v39, %s9906_s27  ;;  %v6278_v17 = vld.sshfl [vmem:[%s9867_s14 + $0x2] sm:$0x11 pattern:$0x75316420]  ;;  %s9934_s27 = smov 48  }
 0x50e   : > { %2556 = vperm.xlu0 %7133, %v2548_v13   ;;  %2839 = vrot.lane.b32.xlu1 %v8455_v42, %s9908_s18 }
 0x512   : > { %2841 = vrot.lane.b32.xlu0 %v8459_v22, %s9908_s18 }
 0x578   : > { %v7137_v35 = vpop.permute.xlu1 %7136 }
 0x579   : > { %v7139_v44 = vunpack.i.h.bf16 %v7137_v35  ;;  %v7138_v59 = vunpack.i.l.bf16 %v7137_v35  ;;  %v2825_v35 = vpack.i.b16 %v2816_v50, %v2816_v50 }
 0x57b   : > { %v2481_v61 = vsel %vm1114_vm2, %v2448_v0, %v7138_v59  ;;  %v2479_v27 = vsel %vm1114_vm2, %v2432_v16, %v7139_v44  ;;  %v7229_v16 = vld [vmem:[%s9865_s12 + $0x4] ss:$12 sps:$4 sm:$0xff]   ;;  %v2809_v0 = vrot.slane %v6280_v55, %v8469_v7  ;;  %v2739_v44 = vcombine.high %v6278_v17, %v6278_v17 }
 0x57c   : > { %2623 = vmatprep.mubr.f32.mxu1 %v2481_v61  ;;  %v7142_v24 = vpop.permute.xlu0 %7141  ;;  %3258 = vmatprep.mubr.bf16.mxu0 %v7229_v16  ;;  %v6288_v16 = vld.sshfl [vmem:[%s9867_s14 + $0xc] sm:$0x11 pattern:$0x75316420] }
 0x57d   : > { %v7144_v40 = vunpack.i.h.bf16 %v7142_v24  ;;  %v7143_v1 = vunpack.i.l.bf16 %v7142_v24  ;;  %2624 = vmatmul.mubr.f32.vlgmr.msra.gmra.mxu1 %v2479_v27  ;;  %v2818_v39 = vpack.i.b16 %v2809_v0, %v2809_v0 }
 0x57f   : > { %v2482_v3 = vsel %vm1114_vm2, %v2451_v58, %v7143_v1  ;;  %v2480_v10 = vsel %vm1114_vm2, %v2435_v56, %v7144_v40  ;;  %v3197_v56 = vld [vmem:[%s9866_s13 + $0x8] sm:$0xff]  ;;  %v2823_v24 = vrot.slane %v2818_v39, %v9929_v9  ;;  %v2746_v40 = vrot.slane %v6278_v17, %v8469_v7 }
 0x580   : > { %2629 = vmatprep.mubr.f32.mxu1 %v2482_v3  ;;  %v2830_v3 = vrot.slane %v2825_v35, %v9929_v9 }
 0x581   : > { %2630 = vmatmul.mubr.f32.gmra.mxu1 %v2480_v10  ;;  %v2753_v10 = vrot.slane %v2739_v44, %v8469_v7  ;;  %v2755_v19 = vpack.i.b16 %v2746_v40, %v2746_v40 }
 0x582   : > { %3301 = vmatprep.mubr.bf16.mxu1 %v9926_v4 }
 0x583   : > { %v2762_v48 = vpack.i.b16 %v2753_v10, %v2753_v10  ;;  %v6286_v10 = vld.sshfl [vmem:[%s9867_s14 + $0xa] sm:$0x11 pattern:$0x75316420] }
 0x585   : > { %v2552_v30 = vpop.permute.xlu1 %2551 }
 0x589   : > { %v2557_v25 = vpop.permute.xlu0 %2556  ;;  %v2840_v43 = vpop.permute.xlu1 %2839 }
 0x58a   : > { %v2852_v41 = vsel %vm1458_vm6, 0, %v2840_v43 }
 0x58b   : > { %v2895_v20 = vmul.bf16 %v8474_v38, %v2852_v41  ;;  %v2767_v41 = vrot.slane %v2762_v48, %v9929_v9  ;;  %v2970_v48 = vcombine.high %v6286_v10, %v6286_v10 }
 0x58d   : > { %v2842_v47 = vpop.permute.xlu0 %2841 }
 0x58e   : > { %v2845_v23 = vsel %vm1458_vm6, %v2840_v43, %v2842_v47  ;;  %v2691_v47 = vrot.slane %v2677_v5, %v8469_v7 }
 0x58f   : > { %v2896_v26 = vmul.bf16 %v8477_v8, %v2845_v23 }
 0x591   : > { %3226 = vmatprep.subr.bf16.mxu0 %v2896_v26 }
 0x592   : > { %3227 = vmatpush1.bf16.msra.mxu0 %v2895_v20 }
 0x63d   : > { %v2625_v18 = vpop.f32.mrf.mxu1 }
 0x63e   : > { %v2626_v33 = vadd.f32 %v2625_v18, %v2552_v30 }
 0x63f   : > { %v2627_v37 = vpop.f32.mrf.mxu1 }
 0x640   : > { %v2628_v54 = vadd.f32 %v2627_v37, %v2552_v30  ;;  %v2636_v29 = vmax.f32 %v2626_v33, 0.0  ;;  %v2760_v30 = vrot.slane %v2755_v19, %v9929_v9 }
 0x641   : > { %v2631_v11 = vpop.f32.mrf.mxu1 }
 0x642   : > { %v2632_v12 = vadd.f32 %v2631_v11, %v2557_v25  ;;  %v2637_v52 = vmax.f32 %v2628_v54, 0.0 }
 0x643   : > { %v2633_v32 = vpop.f32.mrf.mxu1 }
 0x644   : > { %v2638_v14 = vmax.f32 %v2632_v12, 0.0  ;;  %v2634_v60 = vadd.f32 %v2633_v32, %v2557_v25  ;;  %v2684_v25 = vrot.slane %v6276_v57, %v8469_v7  ;;  %v2700_v32 = vpack.i.b16 %v2691_v47, %v2691_v47 }
 0x646   : > { %v8483_v2 = vpack.c.bf16 %v2638_v14, %v2636_v29  ;;  %v2639_v46 = vmax.f32 %v2634_v60, 0.0  ;;  %v2693_v11 = vpack.i.b16 %v2684_v25, %v2684_v25  ;;  %v2705_v55 = vrot.slane %v2700_v32, %v9929_v9 }
 0x648   : > { %v8485_v15 = vpack.c.bf16 %v2639_v46, %v2637_v52  ;;  %2835 = vrot.lane.b32.xlu1 %v8483_v2, %s9908_s18  ;;  %v2698_v46 = vrot.slane %v2693_v11, %v9929_v9 }
 0x64a   : > { %2837 = vrot.lane.b32.xlu0 %v8485_v15, %s9908_s18  ;;  %s9954_s18 = smov 112  }
 0x64c   : > { %2776 = vrot.lane.b32.xlu1 %v8455_v42, %s9900_s22 }
 0x64e   : > { %2778 = vrot.lane.b32.xlu0 %v8459_v22, %s9900_s22 }
 0x650   : > { %2772 = vrot.lane.b32.xlu1 %v8483_v2, %s9900_s22 }
 0x652   : > { %2774 = vrot.lane.b32.xlu0 %v8485_v15, %s9900_s22  ;;  %s9935_s22 = smov 8  }
 0x654   : > { %2714 = vrot.lane.b32.xlu1 %v8455_v42, %s7315_s24 }
 0x656   : > { %2716 = vrot.lane.b32.xlu0 %v8459_v22, %s7315_s24 }
 0x658   : > { %2710 = vrot.lane.b32.xlu1 %v8483_v2, %s7315_s24 }
 0x65a   : > { %2712 = vrot.lane.b32.xlu0 %v8485_v15, %s7315_s24 }
 0x65c   : > { %2652 = vrot.lane.b32.xlu1 %v8455_v42, %s9898_s20 }
 0x65e   : > { %2654 = vrot.lane.b32.xlu0 %v8459_v22, %s9898_s20 }
 0x660   : > { %2648 = vrot.lane.b32.xlu1 %v8483_v2, %s9898_s20 }
 0x662   : > { %2650 = vrot.lane.b32.xlu0 %v8485_v15, %s9898_s20  ;;  %s9936_s20 = smov 9  }
 0x664   : > { %3072 = vrot.lane.b32.xlu1 %v8459_v22, %s9896_s23 }
 0x666   : > { %3070 = vrot.lane.b32.xlu0 %v8455_v42, %s9896_s23 }
 0x668   : > { %3068 = vrot.lane.b32.xlu1 %v8485_v15, %s9896_s23 }
 0x66a   : > { %3066 = vrot.lane.b32.xlu0 %v8483_v2, %s9896_s23 }
 0x66c   : > { %3009 = vrot.lane.b32.xlu1 %v8459_v22, %s9894_s29 }
 0x66e   : > { %3007 = vrot.lane.b32.xlu0 %v8455_v42, %s9894_s29 }
 0x670   : > { %3005 = vrot.lane.b32.xlu1 %v8485_v15, %s9894_s29 }
 0x672   : > { %3003 = vrot.lane.b32.xlu0 %v8483_v2, %s9894_s29  ;;  %s9939_s29 = smov 120  }
 0x674   : > { %2946 = vrot.lane.b32.xlu1 %v8459_v22, %s9930_s25 }
 0x676   : > { %2944 = vrot.lane.b32.xlu0 %v8455_v42, %s9930_s25 }
 0x678   : > { %2942 = vrot.lane.b32.xlu1 %v8485_v15, %s9930_s25 }
 0x67a   : > { %2940 = vrot.lane.b32.xlu0 %v8483_v2, %s9930_s25 }
 0x67c   : > { %3135 = vrot.lane.b32.xlu1 %v8459_v22, %s9904_s0 }
 0x67e   : > { %3133 = vrot.lane.b32.xlu0 %v8455_v42, %s9904_s0 }
 0x680   : > { %3131 = vrot.lane.b32.xlu1 %v8485_v15, %s9904_s0 }
 0x682   : > { %3129 = vrot.lane.b32.xlu0 %v8483_v2, %s9904_s0  ;;  %s9933_s0 = smov 32  }
 0x684   : > { %3200 = vperm.xlu1 %7134, %v3196_v53  }
 0x686   : > { %3205 = vperm.xlu0 %7133, %v3197_v56  }
 0x6ba   : > { %v2836_v13 = vpop.permute.xlu1 %2835 }
 0x6bb   : > { %v2849_v59 = vsel %vm1458_vm6, 0, %v2836_v13 }
 0x6bc   : > { %v2838_v61 = vpop.permute.xlu0 %2837  ;;  %v2893_v62 = vmul.bf16 %v8474_v38, %v2849_v59  ;;  %v6290_v38 = vld.sshfl [vmem:[%s9867_s14 + $0xe] sm:$0x11 pattern:$0x75316420] }
 0x6bd   : > { %v2844_v27 = vsel %vm1458_vm6, %v2836_v13, %v2838_v61  ;;  %v3096_v18 = vcombine.high %v6290_v38, %v6290_v38  ;;  %v3103_v51 = vrot.slane %v6290_v38, %v8469_v7  ;;  %v3033_v13 = vcombine.high %v6288_v16, %v6288_v16 }
 0x6be   : > { %v2894_v1 = vmul.bf16 %v8477_v8, %v2844_v27  ;;  %v2777_v58 = vpop.permute.xlu1 %2776 }
 0x6bf   : > { %v2790_v63 = vsel %vm2780_vm12, 0, %v2777_v58  ;;  %v3110_v60 = vrot.slane %v3096_v18, %v8469_v7  ;;  %v3112_v27 = vpack.i.b16 %v3103_v51, %v3103_v51 }
 0x6c0   : > { %v2779_v36 = vpop.permute.xlu0 %2778  ;;  %3228 = vmatprep.subr.bf16.mxu0 %v2894_v1  ;;  %v2833_v49 = vmul.bf16 %v2823_v24, %v2790_v63 }
 0x6c1   : > { %v2782_v31 = vsel %vm2780_vm12, %v2777_v58, %v2779_v36  ;;  %3229 = vmatpush1.bf16.msra.mxu0 %v2893_v62  ;;  %v3119_v39 = vpack.i.b16 %v3110_v60, %v3110_v60  ;;  %v3047_v58 = vrot.slane %v3033_v13, %v8469_v7  ;;  %v3117_v57 = vrot.slane %v3112_v27, %v9929_v9 }
 0x6c2   : > { %v2834_v21 = vmul.bf16 %v2830_v3, %v2782_v31  ;;  %v2773_v45 = vpop.permute.xlu1 %2772  ;;  %v3040_v36 = vrot.slane %v6288_v16, %v8469_v7 }
 0x6c3   : > { %v2787_v6 = vsel %vm2780_vm12, 0, %v2773_v45  ;;  %v3124_v1 = vrot.slane %v3119_v39, %v9929_v9 }
 0x6c4   : > { %v2775_v28 = vpop.permute.xlu0 %2774  ;;  %3230 = vmatprep.subr.bf16.mxu0 %v2834_v21  ;;  %v2831_v20 = vmul.bf16 %v2823_v24, %v2787_v6 }
 0x6c5   : > { %v2781_v34 = vsel %vm2780_vm12, %v2773_v45, %v2775_v28  ;;  %3231 = vmatpush1.bf16.msra.mxu0 %v2833_v49  ;;  %v3056_v45 = vpack.i.b16 %v3047_v58, %v3047_v58 }
 0x6c6   : > { %v2832_v8 = vmul.bf16 %v2830_v3, %v2781_v34  ;;  %v2715_v43 = vpop.permute.xlu1 %2714  ;;  %v3049_v34 = vpack.i.b16 %v3040_v36, %v3040_v36 }
 0x6c7   : > { %v2727_v23 = vsel %vm1031_vm1, 0, %v2715_v43 }
 0x6c8   : > { %v2717_v26 = vpop.permute.xlu0 %2716  ;;  %3232 = vmatprep.subr.bf16.mxu0 %v2832_v8  ;;  %v2770_v37 = vmul.bf16 %v2760_v30, %v2727_v23  ;;  %v3061_v8 = vrot.slane %v3056_v45, %v9929_v9  ;;  %v3054_v18 = vrot.slane %v3049_v34, %v9929_v9 }
 0x6c9   : > { %v2720_v33 = vsel %vm1031_vm1, %v2715_v43, %v2717_v26  ;;  %3233 = vmatpush1.bf16.msra.mxu0 %v2831_v20  ;;  %v2984_v43 = vrot.slane %v2970_v48, %v8469_v7  ;;  %v6292_v20 = vld.sshfl [vmem:[%s9867_s14 + $0x10] sm:$0x11 pattern:$0x75316420] }
 0x6ca   : > { %v2771_v54 = vmul.bf16 %v2767_v41, %v2720_v33  ;;  %v2711_v12 = vpop.permute.xlu1 %2710 }
 0x6cb   : > { %v2724_v29 = vsel %vm1031_vm1, 0, %v2711_v12  ;;  %v2993_v32 = vpack.i.b16 %v2984_v43, %v2984_v43 }
 0x6cc   : > { %v2713_v14 = vpop.permute.xlu0 %2712  ;;  %3234 = vmatprep.subr.bf16.mxu0 %v2771_v54  ;;  %v2768_v0 = vmul.bf16 %v2760_v30, %v2724_v29  ;;  %v3159_v29 = vcombine.high %v6292_v20, %v6292_v20 }
 0x6cd   : > { %v2719_v52 = vsel %vm1031_vm1, %v2711_v12, %v2713_v14  ;;  %3235 = vmatpush1.bf16.msra.mxu0 %v2770_v37  ;;  %v2977_v37 = vrot.slane %v6286_v10, %v8469_v7  ;;  %v2998_v51 = vrot.slane %v2993_v32, %v9929_v9 }
 0x6ce   : > { %v2769_v53 = vmul.bf16 %v2767_v41, %v2719_v52  ;;  %v2653_v56 = vpop.permute.xlu1 %2652  ;;  %v6284_v41 = vld.sshfl [vmem:[%s9867_s14 + $0x8] sm:$0x11 pattern:$0x75316420] }
 0x6cf   : > { %v2666_v50 = vsel %vm2656_vm13, 0, %v2653_v56  ;;  %v2907_v11 = vcombine.high %v6284_v41, %v6284_v41 }
 0x6d0   : > { %v2655_v17 = vpop.permute.xlu0 %2654  ;;  %3236 = vmatprep.subr.bf16.mxu0 %v2769_v53  ;;  %v2708_v35 = vmul.bf16 %v2698_v46, %v2666_v50 }
 0x6d1   : > { %v2658_v44 = vsel %vm2656_vm13, %v2653_v56, %v2655_v17  ;;  %3237 = vmatpush1.bf16.msra.mxu0 %v2768_v0  ;;  %v2921_v53 = vrot.slane %v2907_v11, %v8469_v7  ;;  %v3173_v0 = vrot.slane %v3159_v29, %v8469_v7 }
 0x6d2   : > { %v2709_v59 = vmul.bf16 %v2705_v55, %v2658_v44  ;;  %v2649_v61 = vpop.permute.xlu1 %2648 }
 0x6d3   : > { %v2663_v24 = vsel %vm2656_vm13, 0, %v2649_v61 }
 0x6d4   : > { %v2651_v40 = vpop.permute.xlu0 %2650  ;;  %3238 = vmatprep.subr.bf16.mxu0 %v2709_v59  ;;  %v2706_v49 = vmul.bf16 %v2698_v46, %v2663_v24  ;;  %v2986_v46 = vpack.i.b16 %v2977_v37, %v2977_v37  ;;  %v2914_v59 = vrot.slane %v6284_v41, %v8469_v7  ;;  %v3182_v24 = vpack.i.b16 %v3173_v0, %v3173_v0  ;;  %v7227_v37 = vld [vmem:[%s9865_s12] ss:$12 sps:$4 sm:$0xff]  }
 0x6d5   : > { %v2657_v3 = vsel %vm2656_vm13, %v2649_v61, %v2651_v40  ;;  %3239 = vmatpush1.bf16.msra.mxu0 %v2708_v35  ;;  %v3166_v35 = vrot.slane %v6292_v20, %v8469_v7  ;;  %v2930_v40 = vpack.i.b16 %v2921_v53, %v2921_v53 }
 0x6d6   : > { %v2707_v62 = vmul.bf16 %v2705_v55, %v2657_v3  ;;  %v3073_v63 = vpop.permute.xlu1 %3072  ;;  %v2991_v13 = vrot.slane %v2986_v46, %v9929_v9 }
 0x6d7   : > { %v3084_v31 = vsel %vm9902_vm14, %v3073_v63, 0  ;;  %v3175_v10 = vpack.i.b16 %v3166_v35, %v3166_v35 }
 0x6d8   : > { %v3071_v19 = vpop.permute.xlu0 %3070  ;;  %3240 = vmatprep.subr.bf16.mxu0 %v2707_v62  ;;  %v3128_v21 = vmul.bf16 %v3124_v1, %v3084_v31  ;;  %v2935_v31 = vrot.slane %v2930_v40, %v9929_v9  ;;  %v6312_v40 = vld [vmem:[%s7444_s1 + $0xe8] sm:$0xff] }
 0x6d9   : > { %v3076_v5 = vsel %vm9902_vm14, %v3071_v19, %v3073_v63  ;;  %3241 = vmatpush1.bf16.msra.mxu0 %v2706_v49  ;;  %v2923_v63 = vpack.i.b16 %v2914_v59, %v2914_v59  ;;  %v3187_v49 = vrot.slane %v3182_v24, %v9929_v9  ;;  %v3180_v48 = vrot.slane %v3175_v10, %v9929_v9  ;;  %v6311_v24 = vld [vmem:[%s7444_s1 + $0xe0] sm:$0xff]  ;;  %v6309_v10 = vld [vmem:[%s7444_s1 + $0xd0] sm:$0xff] }
 0x6da   : > { %v3127_v6 = vmul.bf16 %v3117_v57, %v3076_v5  ;;  %v3069_v28 = vpop.permute.xlu1 %3068  ;;  %3242 = vmatprep.subr.bf16.mxu0 %v3128_v21  ;;  %v2939_v5 = vmul.bf16 %v2935_v31, %v8459_v22  ;;  %v2937_v22 = vmul.bf16 %v2935_v31, %v8485_v15  ;;  %v6305_v31 = vld [vmem:[%s7444_s1 + $0xb0] sm:$0xff] }
 0x6db   : > { %v3081_v30 = vsel %vm9902_vm14, %v3069_v28, 0 }
 0x6dc   : > { %v3067_v25 = vpop.permute.xlu0 %3066  ;;  %v3126_v38 = vmul.bf16 %v3124_v1, %v3081_v30 }
 0x6dd   : > { %v3075_v47 = vsel %vm9902_vm14, %v3067_v25, %v3069_v28  ;;  %3243 = vmatpush2.bf16.msra.mxu0 %v3127_v6  ;;  %vm2948_vm14 = vcmask 1039360   ;;  %v2928_v28 = vrot.slane %v2923_v63, %v9929_v9 }
 0x6de   : > { %v3125_v23 = vmul.bf16 %v3117_v57, %v3075_v47  ;;  %3244 = vmatprep.subr.bf16.mxu0 %v3126_v38  ;;  %v3010_v26 = vpop.permute.xlu1 %3009 }
 0x6df   : > { %v3021_v33 = vsel %vm9903_vm15, %v3010_v26, 0  ;;  %v2938_v38 = vmul.bf16 %v2928_v28, %v8455_v42  ;;  %v7230_v42 = vld [vmem:[%s9865_s12 + $0x8] ss:$12 sps:$4 sm:$0xff]  }
 0x6e0   : > { %v3008_v54 = vpop.permute.xlu0 %3007  ;;  %v3065_v12 = vmul.bf16 %v3061_v8, %v3021_v33 }
 0x6e1   : > { %v3013_v14 = vsel %vm9903_vm15, %v3008_v54, %v3010_v26  ;;  %3245 = vmatpush2.bf16.msra.mxu0 %v3125_v23 }
 0x6e2   : > { %v3064_v60 = vmul.bf16 %v3054_v18, %v3013_v14  ;;  %v3006_v52 = vpop.permute.xlu1 %3005  ;;  %3246 = vmatprep.subr.bf16.mxu0 %v3065_v12 }
 0x6e3   : > { %v3018_v16 = vsel %vm9903_vm15, %v3006_v52, 0 }
 0x6e4   : > { %v3004_v56 = vpop.permute.xlu0 %3003  ;;  %v3063_v55 = vmul.bf16 %v3061_v8, %v3018_v16 }
 0x6e5   : > { %v3012_v50 = vsel %vm9903_vm15, %v3004_v56, %v3006_v52  ;;  %3247 = vmatpush2.bf16.msra.mxu0 %v3064_v60  ;;  %vm3137_vm15 = vcmask 908288  }
 0x6e6   : > { %v3062_v17 = vmul.bf16 %v3054_v18, %v3012_v50  ;;  %3248 = vmatprep.subr.bf16.mxu0 %v3063_v55  ;;  %v2947_v39 = vpop.permute.xlu1 %2946  ;;  %v2936_v18 = vmul.bf16 %v2928_v28, %v8483_v2  ;;  %v6302_v28 = vld [vmem:[%s7444_s1 + $0x98] sm:$0xff] }
 0x6e7   : > { %v2958_v44 = vsel %vm2948_vm14, %v2947_v39, 0 }
 0x6e8   : > { %v2945_v61 = vpop.permute.xlu0 %2944  ;;  %v3002_v27 = vmul.bf16 %v2998_v51, %v2958_v44 }
 0x6e9   : > { %v2950_v1 = vsel %vm2948_vm14, %v2945_v61, %v2947_v39  ;;  %3249 = vmatpush2.bf16.msra.mxu0 %v3062_v17  ;;  %v6313_v17 = vld [vmem:[%s7444_s1 + $0xf0] sm:$0xff]  ;;  %v6314_v39 = vld [vmem:[%s7444_s1 + $0xf8] sm:$0xff] }
 0x6ea   : > { %v3001_v58 = vmul.bf16 %v2991_v13, %v2950_v1  ;;  %v2943_v3 = vpop.permute.xlu1 %2942  ;;  %3250 = vmatprep.subr.bf16.mxu0 %v3002_v27  ;;  %v3445_v61 = vpack.c.bf16 %v6314_v39, %v6313_v17  ;;  %v3316_v1 = vld [vmem:[%s9868_s15] sm:$0xf] }
 0x6eb   : > { %v2955_v62 = vsel %vm2948_vm14, %v2943_v3, 0 }
 0x6ec   : > { %v2941_v57 = vpop.permute.xlu0 %2940  ;;  %v3000_v36 = vmul.bf16 %v2998_v51, %v2955_v62  ;;  %v6310_v62 = vld [vmem:[%s7444_s1 + $0xd8] sm:$0xff] }
 0x6ed   : > { %v2949_v19 = vsel %vm2948_vm14, %v2941_v57, %v2943_v3  ;;  %3251 = vmatpush2.bf16.msra.mxu0 %v3001_v58  ;;  %v7231_v58 = vld [vmem:[%s9856_s3] sm:$0xff]   ;;  %v3444_v3 = vpack.c.bf16 %v6312_v40, %v6311_v24  ;;  %v3443_v63 = vpack.c.bf16 %v6310_v62, %v6309_v10  ;;  %v3828_v24 = vld [vmem:[%s9858_s5 + $0x28] sm:$0xff]  ;;  %v3825_v62 = vld [vmem:[%s9858_s5 + $0x10] sm:$0xff] }
 0x6ee   : > { %v2999_v21 = vmul.bf16 %v2991_v13, %v2949_v19  ;;  %3252 = vmatprep.subr.bf16.mxu0 %v3000_v36  ;;  %v3136_v45 = vpop.permute.xlu1 %3135  ;;  %v6307_v57 = vld [vmem:[%s7444_s1 + $0xc0] sm:$0xff]  ;;  %v6308_v36 = vld [vmem:[%s7444_s1 + $0xc8] sm:$0xff]  ;;  %v6306_v19 = vld [vmem:[%s7444_s1 + $0xb8] sm:$0xff] }
 0x6ef   : > { %v3147_v6 = vsel %vm3137_vm15, %v3136_v45, 0 }
 0x6f0   : > { %v3134_v34 = vpop.permute.xlu0 %3133  ;;  %v3191_v30 = vmul.bf16 %v3187_v49, %v3147_v6  ;;  %v6301_v6 = vld [vmem:[%s7444_s1 + $0x90] sm:$0xff] }
 0x6f1   : > { %v3139_v25 = vsel %vm3137_vm15, %v3134_v34, %v3136_v45  ;;  %3253 = vmatpush2.bf16.msra.mxu0 %v2999_v21  ;;  %v3441_v21 = vpack.c.bf16 %v6306_v19, %v6305_v31  ;;  %v6303_v45 = vld [vmem:[%s7444_s1 + $0xa0] sm:$0xff]  ;;  %v3439_v34 = vpack.c.bf16 %v6302_v28, %v6301_v6 }
 0x6f2   : > { %v3190_v8 = vmul.bf16 %v3180_v48, %v3139_v25  ;;  %v3132_v43 = vpop.permute.xlu1 %3131  ;;  %3281 = vmatprep.subr.bf16.mxu1 %v3191_v30  ;;  %3254 = vmatprep.subr.bf16.mxu0 %v2939_v5  ;;  %v6299_v30 = vld [vmem:[%s7444_s1 + $0x80] sm:$0xff]  ;;  %v6300_v25 = vld [vmem:[%s7444_s1 + $0x88] sm:$0xff] }
 0x6f3   : > { %v3144_v41 = vsel %vm3137_vm15, %v3132_v43, 0 }
 0x6f4   : > { %v3130_v47 = vpop.permute.xlu0 %3129  ;;  %3282 = vmatpush1.bf16.msra.mxu1 %v3190_v8  ;;  %v3189_v20 = vmul.bf16 %v3187_v49, %v3144_v41  ;;  %v3442_v49 = vpack.c.bf16 %v6308_v36, %v6307_v57  ;;  %v7232_v8 = vld [vmem:[%s9856_s3 + $0x8] sm:$0xff]   ;;  %v7234_v41 = vld [vmem:[%s9856_s3 + $0x18] sm:$0xff]  }
 0x6f5   : > { %v3138_v23 = vsel %vm3137_vm15, %v3130_v47, %v3132_v43  ;;  %3255 = vmatpush2.bf16.msra.mxu0 %v2938_v38  ;;  %v3438_v38 = vpack.c.bf16 %v6300_v25, %v6299_v30  ;;  %v7233_v43 = vld [vmem:[%s9856_s3 + $0x10] sm:$0xff]   ;;  %v7235_v47 = vld [vmem:[%s9856_s3 + $0x20] sm:$0xff]   ;;  %v3824_v57 = vld [vmem:[%s9858_s5 + $0x8] sm:$0xff] }
 0x6f6   : > { %v3188_v26 = vmul.bf16 %v3180_v48, %v3138_v23  ;;  %3256 = vmatprep.subr.bf16.mxu0 %v2937_v22  ;;  %3283 = vmatprep.subr.bf16.mxu1 %v3189_v20  ;;  %v6304_v48 = vld [vmem:[%s7444_s1 + $0xa8] sm:$0xff]  ;;  %v7237_v20 = vld [vmem:[%s9856_s3 + $0x30] sm:$0xff]   ;;  %v7238_v23 = vld [vmem:[%s9856_s3 + $0x38] sm:$0xff]   ;;  %s9937_s1 = smov 1  }
 0x6f7   : > { %v3440_v5 = vpack.c.bf16 %v6304_v48, %v6303_v45  ;;  %v7236_v22 = vld [vmem:[%s9856_s3 + $0x28] sm:$0xff]   ;;  %v3837_v25 = vld [vmem:[%s9857_s4 + $0x30] sm:$0xff] }
 0x6f8   : > { %3284 = vmatpush1.bf16.msra.mxu1 %v3188_v26  ;;  %v7239_v26 = vld [vmem:[%s9856_s3 + $0x40] sm:$0xff]  }
 0x6f9   : > { %3257 = vmatpush2.bf16.msra.mxu0 %v2936_v18  ;;  %v7240_v18 = vld [vmem:[%s9856_s3 + $0x48] sm:$0xff]  }
 0x6fb   : > { %6296 = vmatmul.mubr.msk.bf16.vlgmr.msra.gmra.mxu1 %vm1040_vm0, %v7230_v42  ;;  %v7241_v42 = vld [vmem:[%s9856_s3 + $0x50] sm:$0xff]  }
 0x6fc   : > { %3259 = vmatmul.mubr.bf16.vlgmr.msra.gmra.mxu0 %v7227_v37  ;;  %3364 = vmatprep.mubr.bf16.mxu1 %v9926_v4  ;;  %v7242_v37 = vld [vmem:[%s9856_s3 + $0x58] sm:$0xff]  }
 0x6ff   : > { %v3201_v54 = vpop.permute.xlu1 %3200 }
 0x701   : > { %v3206_v12 = vpop.permute.xlu0 %3205 }
 0x7bb   : > { %v3303_v15 = vpop.f32.mrf.mxu1 }
 0x7bc   : > { %v3260_v33 = vpop.f32.mrf.mxu0 }
 0x7bd   : > { %v3305_v11 = vpop.f32.mrf.mxu1  ;;  %v3261_v29 = vadd.f32 %v3260_v33, %v3201_v54  ;;  %v7244_v33 = vld [vmem:[%s9856_s3 + $0x68] sm:$0xff]  }
 0x7be   : > { %v3262_v2 = vpop.f32.mrf.mxu0 }
 0x7bf   : > { %v3263_v32 = vadd.f32 %v3262_v2, %v3201_v54  ;;  %v3307_v14 = vpop.f32.mrf.mxu1  ;;  %v3304_v55 = vadd.f32 %v3303_v15, %v3261_v29  ;;  %v7243_v15 = vld [vmem:[%s9856_s3 + $0x60] sm:$0xff]   ;;  %v7246_v54 = vld [vmem:[%s9856_s3 + $0x78] sm:$0xff]  }
 0x7c0   : > { %v3264_v60 = vpop.f32.mrf.mxu0 }
 0x7c1   : > { %v3265_v52 = vadd.f32 %v3264_v60, %v3206_v12  ;;  %v3306_v16 = vadd.f32 %v3305_v11, %v3263_v32  ;;  %v3309_v51 = vpop.f32.mrf.mxu1  ;;  %v3312_v44 = vmax.f32 %v3304_v55, 0.0  ;;  %v7245_v11 = vld [vmem:[%s9856_s3 + $0x70] sm:$0xff]  }
 0x7c2   : > { %v3266_v46 = vpop.f32.mrf.mxu0 }
 0x7c3   : > { %v3308_v53 = vadd.f32 %v3307_v14, %v3265_v52  ;;  %v3267_v56 = vadd.f32 %v3266_v46, %v3206_v12  ;;  %v3313_v13 = vmax.f32 %v3306_v16, 0.0 }
 0x7c5   : > { %v3310_v0 = vadd.f32 %v3309_v51, %v3267_v56  ;;  %v3314_v50 = vmax.f32 %v3308_v53, 0.0 }
 0x7c7   : > { %v3315_v35 = vmax.f32 %v3310_v0, 0.0  ;;  %v3317_v27 = vpack.c.bf16 %v3314_v50, %v3312_v44  ;;  %v3830_v44 = vld [vmem:[%s9858_s5 + $0x38] sm:$0xff] }
 0x7c8   : > { %7038 = vmatprep.subr.mxu0 %v3830_v44 }
 0x7c9   : > { %v3318_v59 = vpack.c.bf16 %v3315_v35, %v3313_v13  ;;  %7039 = vmatpush3.msra.mxu0 %v3830_v44 }
 0x7cb   : > { %3346 = vmatprep.subr.bf16.mxu1 %v3318_v59 }
 0x7cc   : > { %3347 = vmatpush1.bf16.msra.mxu1 %v3317_v27 }
 0x7cd   : > { %6990 = vmatprep.subr.bf16.mxu1 %v3445_v61 }
 0x7cf   : > { %6298 = vmatmul.mubr.msk.bf16.vlgmr.msra.gmra.mxu1 %vm1031_vm1, %v3316_v1  ;;  %v3827_v1 = vld [vmem:[%s9858_s5 + $0x20] sm:$0xff] }
 0x7d0   : > { %6991 = vmatpush3.bf16.msra.mxu1 %v3445_v61  ;;  %7006 = vmatprep.mubr.bf16.mxu1 %v7231_v58  ;;  %v3829_v61 = vld [vmem:[%s9858_s5 + $0x30] sm:$0xff] }
 0x7d1   : > { %6992 = vmatprep.subr.bf16.mxu1 %v3444_v3  ;;  %7040 = vmatprep.subr.mxu0 %v3829_v61 }
 0x7d2   : > { %7041 = vmatpush3.msra.mxu0 %v3829_v61 }
 0x7d3   : > { %7042 = vmatprep.subr.mxu0 %v3828_v24 }
 0x7d4   : > { %6993 = vmatpush3.bf16.msra.mxu1 %v3444_v3  ;;  %7043 = vmatpush3.msra.mxu0 %v3828_v24  ;;  %v3826_v3 = vld [vmem:[%s9858_s5 + $0x18] sm:$0xff] }
 0x7d5   : > { %6994 = vmatprep.subr.bf16.mxu1 %v3443_v63  ;;  %7044 = vmatprep.subr.mxu0 %v3827_v1 }
 0x7d6   : > { %7045 = vmatpush3.msra.mxu0 %v3827_v1 }
 0x7d7   : > { %7046 = vmatprep.subr.mxu0 %v3826_v3 }
 0x7d8   : > { %6995 = vmatpush3.bf16.msra.mxu1 %v3443_v63  ;;  %7047 = vmatpush3.msra.mxu0 %v3826_v3 }
 0x7d9   : > { %6996 = vmatprep.subr.bf16.mxu1 %v3442_v49  ;;  %7048 = vmatprep.subr.mxu0 %v3825_v62 }
 0x7da   : > { %7049 = vmatpush3.msra.mxu0 %v3825_v62 }
 0x7db   : > { %7050 = vmatprep.subr.mxu0 %v3824_v57 }
 0x7dc   : > { %6997 = vmatpush3.bf16.msra.mxu1 %v3442_v49  ;;  %v3823_v49 = vld [vmem:[%s9858_s5] sm:$0xff]  ;;  %7051 = vmatpush3.msra.mxu0 %v3824_v57 }
 0x7dd   : > { %6998 = vmatprep.subr.bf16.mxu1 %v3441_v21  ;;  %7052 = vmatprep.subr.mxu0 %v3823_v49 }
 0x7de   : > { %7053 = vmatpush3.msra.mxu0 %v3823_v49 }
 0x7e0   : > { %6999 = vmatpush3.bf16.msra.mxu1 %v3441_v21 }
 0x7e1   : > { %7000 = vmatprep.subr.bf16.mxu1 %v3440_v5 }
 0x7e4   : > { %7001 = vmatpush3.bf16.msra.mxu1 %v3440_v5 }
 0x7e5   : > { %7002 = vmatprep.subr.bf16.mxu1 %v3439_v34 }
 0x7e8   : > { %7003 = vmatpush3.bf16.msra.mxu1 %v3439_v34 }
 0x7e9   : > { %7004 = vmatprep.subr.bf16.mxu1 %v3438_v38 }
 0x7ec   : > { %7005 = vmatpush3.bf16.msra.mxu1 %v3438_v38  ;;  %v3835_v38 = vld [vmem:[%s9857_s4 + $0x20] sm:$0xff] }
 0x7ef   : > { %7007 = vmatmul.mubr.bf16.vlgmr.msra.gmra.mxu1 %v7232_v8  ;;  %v3838_v8 = vld [vmem:[%s9857_s4 + $0x38] sm:$0xff] }
 0x7f0   : > { %7010 = vmatprep.mubr.bf16.mxu1 %v7233_v43  ;;  %v3833_v43 = vld [vmem:[%s9857_s4 + $0x10] sm:$0xff] }
 0x7f7   : > { %7011 = vmatmul.mubr.bf16.gmra.mxu1 %v7234_v41  ;;  %v3836_v41 = vld [vmem:[%s9857_s4 + $0x28] sm:$0xff] }
 0x7f8   : > { %7014 = vmatprep.mubr.bf16.mxu1 %v7235_v47  ;;  %v3831_v47 = vld [vmem:[%s9857_s4] sm:$0xff] }
 0x7ff   : > { %7015 = vmatmul.mubr.bf16.gmra.mxu1 %v7236_v22  ;;  %v3834_v22 = vld [vmem:[%s9857_s4 + $0x18] sm:$0xff] }
 0x800   : > { %7018 = vmatprep.mubr.bf16.mxu1 %v7237_v20  ;;  %v6321_v20 = vld [vmem:[%s7592_s21 + $0x70] sm:$0xff] }
 0x807   : > { %7019 = vmatmul.mubr.bf16.gmra.mxu1 %v7238_v23  ;;  %v6322_v23 = vld [vmem:[%s7592_s21 + $0x78] sm:$0xff] }
 0x808   : > { %7022 = vmatprep.mubr.bf16.mxu1 %v7239_v26  ;;  %v8815_v26 = vpack.c.bf16 %v6322_v23, %v6321_v20 }
 0x80f   : > { %7023 = vmatmul.mubr.bf16.gmra.mxu1 %v7240_v18  ;;  %v3832_v18 = vld [vmem:[%s9857_s4 + $0x8] sm:$0xff] }
 0x810   : > { %7026 = vmatprep.mubr.bf16.mxu1 %v7241_v42  ;;  %v6319_v42 = vld [vmem:[%s7592_s21 + $0x60] sm:$0xff] }
 0x817   : > { %7027 = vmatmul.mubr.bf16.gmra.mxu1 %v7242_v37  ;;  %v6320_v37 = vld [vmem:[%s7592_s21 + $0x68] sm:$0xff] }
 0x818   : > { %7030 = vmatprep.mubr.bf16.mxu1 %v7243_v15  ;;  %v8824_v15 = vpack.c.bf16 %v6320_v37, %v6319_v42 }
 0x81f   : > { %7031 = vmatmul.mubr.bf16.gmra.mxu1 %v7244_v33  ;;  %v6317_v33 = vld [vmem:[%s7592_s21 + $0x50] sm:$0xff] }
 0x820   : > { %7034 = vmatprep.mubr.bf16.mxu1 %v7245_v11  ;;  %v6318_v11 = vld [vmem:[%s7592_s21 + $0x58] sm:$0xff] }
 0x827   : > { %7035 = vmatmul.mubr.bf16.gmra.mxu1 %v7246_v54  ;;  %v8832_v54 = vpack.c.bf16 %v6318_v11, %v6317_v33 }
 0x88f   : > { %v8724_v2 = vpop.f32.mrf.mxu1 }
 0x890   : > { %9931 = vst [vmem:[#allocation6_spill] sm:$0xff] %v8724_v2 }
 0x891   : > { %v8726_v12 = vpop.f32.mrf.mxu1 }
 0x892   : > { %9932 = vst [vmem:[#allocation7_spill] sm:$0xff] %v8726_v12 }
 0x893   : > { %v3370_v32 = vpop.f32.mrf.mxu1 }
 0x894   : > { %v6315_v32 = vld [vmem:[%s7592_s21 + $0x40] sm:$0xff] }
 0x895   : > { %v3371_v29 = vpop.f32.mrf.mxu1 }
 0x896   : > { %v6316_v29 = vld [vmem:[%s7592_s21 + $0x48] sm:$0xff]  ;;  %s9938_s21 = smov 7  }
 0x8af   : > { %v8728_v14 = vpop.f32.mrf.mxu1 }
 0x8b1   : > { %v8730_v60 = vpop.f32.mrf.mxu1 }
 0x8b3   : > { %v8732_v52 = vpop.f32.mrf.mxu1 }
 0x8b5   : > { %v8734_v46 = vpop.f32.mrf.mxu1 }
 0x8b7   : > { %v8736_v16 = vpop.f32.mrf.mxu1 }
 0x8b9   : > { %v8738_v53 = vpop.f32.mrf.mxu1 }
 0x8bb   : > { %v8740_v56 = vpop.f32.mrf.mxu1 }
 0x8bd   : > { %v8742_v55 = vpop.f32.mrf.mxu1 }
 0x8bf   : > { %v7016_v51 = vpop.f32.mrf.mxu1 }
 0x8c0   : > { %3715 = vrot.lane.b32.xlu1 %v7016_v51, %s7315_s24  ;;  %v8840_v51 = vpack.c.bf16 %v6316_v29, %v6315_v32 }
 0x8c1   : > { %v3608_v0 = vpop.f32.mrf.mxu1 }
 0x8c3   : > { %v7017_v50 = vpop.f32.mrf.mxu1 }
 0x8c4   : > { %3711 = vrot.lane.b32.xlu1 %v3608_v0, %s7315_s24  ;;  %3717 = vrot.lane.b32.xlu0 %v7017_v50, %s7315_s24 }
 0x8c5   : > { %v3611_v17 = vpop.f32.mrf.mxu1 }
 0x8c7   : > { %v7020_v39 = vpop.f32.mrf.mxu1 }
 0x8c8   : > { %3713 = vrot.lane.b32.xlu0 %v3611_v17, %s7315_s24  ;;  %3723 = vrot.lane.b32.xlu1 %v7020_v39, %s7315_s24 }
 0x8c9   : > { %v3624_v13 = vpop.f32.mrf.mxu1 }
 0x8cb   : > { %v7021_v35 = vpop.f32.mrf.mxu1 }
 0x8cc   : > { %3719 = vrot.lane.b32.xlu1 %v3624_v13, %s7315_s24  ;;  %3725 = vrot.lane.b32.xlu0 %v7021_v35, %s7315_s24 }
 0x8cd   : > { %v3627_v59 = vpop.f32.mrf.mxu1 }
 0x8cf   : > { %v7024_v27 = vpop.f32.mrf.mxu1 }
 0x8d0   : > { %3721 = vrot.lane.b32.xlu0 %v3627_v59, %s7315_s24  ;;  %3747 = vrot.lane.b32.xlu1 %v7024_v27, %s9933_s0 }
 0x8d1   : > { %v3640_v40 = vpop.f32.mrf.mxu1 }
 0x8d3   : > { %v7025_v58 = vpop.f32.mrf.mxu1 }
 0x8d4   : > { %3743 = vrot.lane.b32.xlu1 %v3640_v40, %s9933_s0  ;;  %3749 = vrot.lane.b32.xlu0 %v7025_v58, %s9933_s0 }
 0x8d5   : > { %v3643_v10 = vpop.f32.mrf.mxu1 }
 0x8d7   : > { %v7028_v63 = vpop.f32.mrf.mxu1 }
 0x8d8   : > { %3745 = vrot.lane.b32.xlu0 %v3643_v10, %s9933_s0 }
 0x8d9   : > { %v3656_v36 = vpop.f32.mrf.mxu1 }
 0x8da   : > { %3751 = vrot.lane.b32.xlu1 %v3656_v36, %s9933_s0 }
 0x8db   : > { %v7029_v31 = vpop.f32.mrf.mxu1 }
 0x8dd   : > { %v3659_v19 = vpop.f32.mrf.mxu1 }
 0x8de   : > { %3753 = vrot.lane.b32.xlu0 %v3659_v19, %s9933_s0 }
 0x8df   : > { %v7032_v21 = vpop.f32.mrf.mxu1 }
 0x8e0   : > { %3779 = vrot.lane.b32.xlu1 %v7032_v21, %s9934_s27 }
 0x8e1   : > { %v3672_v45 = vpop.f32.mrf.mxu1 }
 0x8e3   : > { %v7033_v48 = vpop.f32.mrf.mxu1 }
 0x8e4   : > { %3775 = vrot.lane.b32.xlu1 %v3672_v45, %s9934_s27  ;;  %3781 = vrot.lane.b32.xlu0 %v7033_v48, %s9934_s27 }
 0x8e5   : > { %v3675_v5 = vpop.f32.mrf.mxu1 }
 0x8e7   : > { %v7036_v6 = vpop.f32.mrf.mxu1 }
 0x8e8   : > { %3755 = vrot.lane.b32.xlu1 %v7028_v63, %s9933_s0  ;;  %3777 = vrot.lane.b32.xlu0 %v3675_v5, %s9934_s27 }
 0x8e9   : > { %v3688_v28 = vpop.f32.mrf.mxu1 }
 0x8eb   : > { %v7037_v34 = vpop.f32.mrf.mxu1 }
 0x8ec   : > { %3757 = vrot.lane.b32.xlu0 %v7029_v31, %s9933_s0  ;;  %3783 = vrot.lane.b32.xlu1 %v3688_v28, %s9934_s27  ;;  %s9948_s0 = smov 64  }
 0x8ed   : > { %v3691_v30 = vpop.f32.mrf.mxu1 }
 0x8f0   : > { %3787 = vrot.lane.b32.xlu1 %v7036_v6, %s9934_s27  ;;  %3785 = vrot.lane.b32.xlu0 %v3691_v30, %s9934_s27 }
 0x8f4   : > { %3871 = vperm.xlu1 %7134, %v3837_v25   ;;  %3789 = vrot.lane.b32.xlu0 %v7037_v34, %s9934_s27 }
 0x8f8   : > { %3861 = vperm.xlu1 %7134, %v3835_v38   ;;  %3876 = vperm.xlu0 %7133, %v3838_v8  }
 0x8fc   : > { %3851 = vperm.xlu1 %7134, %v3833_v43   ;;  %3866 = vperm.xlu0 %7133, %v3836_v41  }
 0x900   : > { %3841 = vperm.xlu1 %7134, %v3831_v47   ;;  %3856 = vperm.xlu0 %7133, %v3834_v22  }
 0x904   : > { %3846 = vperm.xlu0 %7133, %v3832_v18   ;;  %4102 = vrot.lane.b32.xlu1 %v8815_v26, %s9935_s22 }
 0x908   : > { %4046 = vrot.lane.b32.xlu0 %v8815_v26, %s9936_s20  ;;  %4100 = vrot.lane.b32.xlu1 %v8824_v15, %s9935_s22 }
 0x90c   : > { %4044 = vrot.lane.b32.xlu0 %v8824_v15, %s9936_s20  ;;  %4098 = vrot.lane.b32.xlu1 %v8832_v54, %s9935_s22 }
 0x910   : > { %4042 = vrot.lane.b32.xlu0 %v8832_v54, %s9936_s20  ;;  %4096 = vrot.lane.b32.xlu1 %v8840_v51, %s9935_s22 }
 0x914   : > { %4040 = vrot.lane.b32.xlu0 %v8840_v51, %s9936_s20  ;;  %4214 = vrot.lane.b32.xlu1 %v8815_v26, %s9937_s1 }
 0x918   : > { %4158 = vrot.lane.b32.xlu0 %v8815_v26, %s9938_s21  ;;  %4212 = vrot.lane.b32.xlu1 %v8824_v15, %s9937_s1 }
 0x91c   : > { %4156 = vrot.lane.b32.xlu0 %v8824_v15, %s9938_s21 }
 0x932   : > { %v3716_v0 = vpop.permute.xlu1 %3715 }
 0x933   : > { %v3801_v31 = vsel %vm1031_vm1, %v8728_v14, %v3716_v0 }
 0x936   : > { %v3712_v50 = vpop.permute.xlu1 %3711  ;;  %v3718_v17 = vpop.permute.xlu0 %3717 }
 0x937   : > { %v3799_v10 = vsel %vm1031_vm1, %v8730_v60, %v3712_v50  ;;  %v3802_v6 = vsel %vm1031_vm1, %v8732_v52, %v3718_v17  ;;  %v6351_v50 = vld [vmem:[%s9861_s8 + $0x1] sm:$0x1] }
 0x938   : > { %v4130_v17 = vpack.i.b16 %v6351_v50, %v6351_v50 }
 0x93a   : > { %v3714_v39 = vpop.permute.xlu0 %3713  ;;  %v3724_v13 = vpop.permute.xlu1 %3723 }
 0x93b   : > { %v3800_v49 = vsel %vm1031_vm1, %v8734_v46, %v3714_v39  ;;  %v3805_v52 = vsel %vm1031_vm1, %v8736_v16, %v3724_v13  ;;  %v4072_v13 = vld [vmem:[%s9861_s8] sm:$0x1] }
 0x93e   : > { %v3720_v35 = vpop.permute.xlu1 %3719  ;;  %v3726_v44 = vpop.permute.xlu0 %3725 }
 0x93f   : > { %v3803_v46 = vsel %vm1031_vm1, %v8738_v53, %v3720_v35  ;;  %v3806_v16 = vsel %vm1031_vm1, %v8740_v56, %v3726_v44 }
 0x942   : > { %v3722_v59 = vpop.permute.xlu0 %3721  ;;  %v3748_v61 = vpop.permute.xlu1 %3747 }
 0x943   : > { %v3809_v60 = vsel %vm1040_vm0, %v3801_v31, %v3748_v61  ;;  %v3804_v53 = vsel %vm1031_vm1, %v8742_v55, %v3722_v59  ;;  %v4074_v59 = vpack.i.b16 %v4072_v13, %v4072_v13  ;;  %v8910_v61 = vrot.slane %v4130_v17, %v9929_v9 }
 0x946   : > { %v3750_v27 = vpop.permute.xlu0 %3749  ;;  %v3744_v24 = vpop.permute.xlu1 %3743 }
 0x947   : > { %v3807_v62 = vsel %vm1040_vm0, %v3799_v10, %v3744_v24  ;;  %v3810_v14 = vsel %vm1040_vm0, %v3802_v6, %v3750_v27  ;;  %v8914_v24 = vrot.slane %v4074_v59, %v9929_v9  ;;  %v4542_v59 = vld [vmem:[%s9860_s7 + $0x30] sm:$0xff] }
 0x94a   : > { %v3746_v40 = vpop.permute.xlu0 %3745 }
 0x94b   : > { %v3808_v19 = vsel %vm1040_vm0, %v3800_v49, %v3746_v40 }
 0x94c   : > { %v3752_v1 = vpop.permute.xlu1 %3751 }
 0x94d   : > { %v3811_v28 = vsel %vm1040_vm0, %v3803_v46, %v3752_v1 }
 0x950   : > { %v3754_v58 = vpop.permute.xlu0 %3753 }
 0x951   : > { %v3812_v8 = vsel %vm1040_vm0, %v3804_v53, %v3754_v58 }
 0x952   : > { %v3780_v3 = vpop.permute.xlu1 %3779 }
 0x953   : > { %v3817_v5 = vsel %vm1049_vm3, %v3809_v60, %v3780_v3 }
 0x956   : > { %v3776_v63 = vpop.permute.xlu1 %3775  ;;  %v3782_v57 = vpop.permute.xlu0 %3781 }
 0x957   : > { %v3815_v36 = vsel %vm1049_vm3, %v3807_v62, %v3776_v63  ;;  %v3818_v25 = vsel %vm1049_vm3, %v3810_v14, %v3782_v57 }
 0x958   : > { %7054 = vmatprep.mubr.msk.f32.mxu0 %vm1114_vm2, %v3815_v36 }
 0x95a   : > { %v3756_v21 = vpop.permute.xlu1 %3755  ;;  %v3778_v45 = vpop.permute.xlu0 %3777 }
 0x95b   : > { %v3816_v48 = vsel %vm1049_vm3, %v3808_v19, %v3778_v45  ;;  %v3813_v43 = vsel %vm1040_vm0, %v3805_v52, %v3756_v21 }
 0x95c   : > { %7055 = vmatmul.mubr.msk.f32.vlgmr.msra.gmra.mxu0 %vm1114_vm2, %v3816_v48 }
 0x95d   : > { %7057 = vmatprep.mubr.msk.f32.mxu0 %vm1114_vm2, %v3817_v5 }
 0x95e   : > { %v3758_v34 = vpop.permute.xlu0 %3757  ;;  %v3784_v30 = vpop.permute.xlu1 %3783 }
 0x95f   : > { %v3819_v38 = vsel %vm1049_vm3, %v3811_v28, %v3784_v30  ;;  %v3814_v55 = vsel %vm1040_vm0, %v3806_v16, %v3758_v34 }
 0x960   : > { %7058 = vmatmul.mubr.msk.f32.gmra.mxu0 %vm1114_vm2, %v3818_v25 }
 0x961   : > { %7060 = vmatprep.mubr.msk.f32.mxu0 %vm1114_vm2, %v3819_v38 }
 0x962   : > { %v3788_v41 = vpop.permute.xlu1 %3787  ;;  %v3786_v47 = vpop.permute.xlu0 %3785 }
 0x963   : > { %v3821_v22 = vsel %vm1049_vm3, %v3813_v43, %v3788_v41  ;;  %v3820_v20 = vsel %vm1049_vm3, %v3812_v8, %v3786_v47 }
 0x964   : > { %7061 = vmatmul.mubr.msk.f32.gmra.mxu0 %vm1114_vm2, %v3820_v20 }
 0x965   : > { %7063 = vmatprep.mubr.msk.f32.mxu0 %vm1114_vm2, %v3821_v22 }
 0x966   : > { %v3790_v23 = vpop.permute.xlu0 %3789 }
 0x967   : > { %v3822_v18 = vsel %vm1049_vm3, %v3814_v55, %v3790_v23 }
 0x968   : > { %7064 = vmatmul.mubr.msk.f32.gmra.mxu0 %vm1114_vm2, %v3822_v18 }
 0x96f   : > { %v8896_v42 = vpop.permute.xlu1 %3871 }
 0x973   : > { %v8898_v37 = vpop.permute.xlu0 %3876  ;;  %v8900_v33 = vpop.permute.xlu1 %3861 }
 0x977   : > { %v3867_v11 = vpop.permute.xlu0 %3866  ;;  %v3852_v32 = vpop.permute.xlu1 %3851 }
 0x97b   : > { %v3857_v29 = vpop.permute.xlu0 %3856  ;;  %v3842_v0 = vpop.permute.xlu1 %3841 }
 0x97f   : > { %v3847_v56 = vpop.permute.xlu0 %3846  ;;  %v4103_v39 = vpop.permute.xlu1 %4102 }
 0x980   : > { %v4126_v44 = vsel %vm1342_vm5, 0, %v4103_v39 }
 0x981   : > { %v4143_v40 = vmul.bf16 %v8910_v61, %v4126_v44  ;;  %v4543_v44 = vld [vmem:[%s9860_s7 + $0x38] sm:$0xff] }
 0x983   : > { %v4047_v35 = vpop.permute.xlu0 %4046  ;;  %v4101_v1 = vpop.permute.xlu1 %4100  ;;  %6694 = vmatprep.subr.bf16.mxu0 %v4143_v40 }
 0x984   : > { %v4070_v27 = vsel %vm1284_vm4, 0, %v4047_v35  ;;  %v4123_v10 = vsel %vm1342_vm5, 0, %v4101_v1  ;;  %v4541_v1 = vld [vmem:[%s9860_s7 + $0x28] sm:$0xff] }
 0x985   : > { %v4087_v3 = vmul.bf16 %v8914_v24, %v4070_v27  ;;  %v4142_v63 = vmul.bf16 %v8910_v61, %v4123_v10 }
 0x987   : > { %v4045_v58 = vpop.permute.xlu0 %4044  ;;  %6695 = vmatpush3.bf16.msra.mxu0 %v4087_v3  ;;  %v4099_v36 = vpop.permute.xlu1 %4098 }
 0x988   : > { %v4067_v62 = vsel %vm1284_vm4, 0, %v4045_v58  ;;  %6696 = vmatprep.subr.bf16.mxu0 %v4142_v63  ;;  %v4120_v31 = vsel %vm1342_vm5, 0, %v4099_v36  ;;  %v4540_v58 = vld [vmem:[%s9860_s7 + $0x20] sm:$0xff]  ;;  %v4538_v63 = vld [vmem:[%s9860_s7 + $0x10] sm:$0xff] }
 0x989   : > { %v4086_v57 = vmul.bf16 %v8914_v24, %v4067_v62  ;;  %v4141_v21 = vmul.bf16 %v8910_v61, %v4120_v31  ;;  %v4539_v62 = vld [vmem:[%s9860_s7 + $0x18] sm:$0xff]  ;;  %v4536_v36 = vld [vmem:[%s9860_s7] sm:$0xff] }
 0x98b   : > { %v4043_v49 = vpop.permute.xlu0 %4042  ;;  %6697 = vmatpush3.bf16.msra.mxu0 %v4086_v57  ;;  %v4097_v60 = vpop.permute.xlu1 %4096  ;;  %v4537_v57 = vld [vmem:[%s9860_s7 + $0x8] sm:$0xff] }
 0x98c   : > { %v4064_v19 = vsel %vm1284_vm4, 0, %v4043_v49  ;;  %6698 = vmatprep.subr.bf16.mxu0 %v4141_v21  ;;  %v4117_v5 = vsel %vm1342_vm5, 0, %v4097_v60 }
 0x98d   : > { %v4085_v45 = vmul.bf16 %v8914_v24, %v4064_v19  ;;  %v4140_v46 = vmul.bf16 %v8910_v61, %v4117_v5 }
 0x98f   : > { %v4041_v48 = vpop.permute.xlu0 %4040  ;;  %6699 = vmatpush3.bf16.msra.mxu0 %v4085_v45  ;;  %v4215_v27 = vpop.permute.xlu1 %4214 }
 0x990   : > { %v4061_v6 = vsel %vm1284_vm4, 0, %v4041_v48  ;;  %6700 = vmatprep.subr.bf16.mxu0 %v4140_v46 }
 0x991   : > { %v4084_v14 = vmul.bf16 %v8914_v24, %v4061_v6 }
 0x993   : > { %6701 = vmatpush3.bf16.msra.mxu0 %v4084_v14  ;;  %v9057_v40 = vpop.permute.xlu0 %4158  ;;  %v9065_v3 = vpop.permute.xlu1 %4212 }
 0x997   : > { %v9067_v10 = vpop.permute.xlu0 %4156 }
 0xa1c   : > { %v7056_v28 = vpop.f32.mrf.mxu0 }
 0xa1d   : > { %v3975_v34 = vadd.f32 %v7056_v28, %v3847_v56 }
 0xa1e   : > { %v3969_v30 = vpop.f32.mrf.mxu0 }
 0xa1f   : > { %v3970_v25 = vadd.f32 %v3969_v30, %v3842_v0  ;;  %v4009_v52 = vmax.f32 %v3975_v34, 0.0 }
 0xa20   : > { %v7059_v38 = vpop.f32.mrf.mxu0 }
 0xa21   : > { %v4008_v53 = vmax.f32 %v3970_v25, 0.0  ;;  %v3985_v8 = vadd.f32 %v7059_v38, %v3857_v29 }
 0xa22   : > { %v3979_v43 = vpop.f32.mrf.mxu0 }
 0xa23   : > { %v8930_v41 = vpack.c.bf16 %v4009_v52, %v4008_v53  ;;  %v3980_v47 = vadd.f32 %v3979_v43, %v3852_v32  ;;  %v4011_v20 = vmax.f32 %v3985_v8, 0.0  ;;  %v6353_v53 = vld [vmem:[%s9861_s8 + $0x3] sm:$0x1] }
 0xa24   : > { %v7062_v22 = vpop.f32.mrf.mxu0 }
 0xa25   : > { %v4010_v16 = vmax.f32 %v3980_v47, 0.0  ;;  %v3995_v55 = vadd.f32 %v7062_v22, %v3867_v11  ;;  %4032 = vrot.lane.b32.xlu0 %v8930_v41, %s9936_s20  ;;  %4088 = vrot.lane.b32.xlu1 %v8930_v41, %s9935_s22  ;;  %v6355_v47 = vld [vmem:[%s9861_s8 + $0x5] sm:$0x1]  ;;  %v4242_v22 = vpack.i.b16 %v6353_v53, %v6353_v53 }
 0xa26   : > { %v3989_v23 = vpop.f32.mrf.mxu0 }
 0xa27   : > { %v8936_v18 = vpack.c.bf16 %v4011_v20, %v4010_v16  ;;  %v3990_v0 = vadd.f32 %v3989_v23, %v8900_v33  ;;  %v4013_v56 = vmax.f32 %v3995_v55, 0.0  ;;  %v7272_v33 = vld [vmem:[%s9859_s6 + $0x14] ss:$36 sps:$4 sm:$0xff]   ;;  %v6352_v20 = vld [vmem:[%s9861_s8 + $0x2] sm:$0x1] }
 0xa28   : > { %v7065_v29 = vpop.f32.mrf.mxu0  ;;  %4930 = vmatprep.mubr.bf16.mxu1 %v7272_v33 }
 0xa29   : > { %v4012_v50 = vmax.f32 %v3990_v0, 0.0  ;;  %v4005_v32 = vadd.f32 %v7065_v29, %v8898_v37  ;;  %4034 = vrot.lane.b32.xlu0 %v8936_v18, %s9936_s20  ;;  %4090 = vrot.lane.b32.xlu1 %v8936_v18, %s9935_s22 }
 0xa2a   : > { %v3999_v11 = vpop.f32.mrf.mxu0 }
 0xa2b   : > { %v8944_v17 = vpack.c.bf16 %v4013_v56, %v4012_v50  ;;  %v4000_v39 = vadd.f32 %v3999_v11, %v8896_v42  ;;  %v4015_v13 = vmax.f32 %v4005_v32, 0.0  ;;  %v7249_v42 = vld [vmem:[%s9859_s6 + $0x4] ss:$36 sps:$4 sm:$0xff]   ;;  %v4314_v50 = vpack.i.b16 %v6355_v47, %v6355_v47 }
 0xa2c   : > { %4800 = vmatprep.mubr.bf16.mxu0 %v7249_v42  ;;  %v6354_v56 = vld [vmem:[%s9861_s8 + $0x4] sm:$0x1]  ;;  %v4186_v32 = vpack.i.b16 %v6352_v20, %v6352_v20 }
 0xa2d   : > { %v4014_v35 = vmax.f32 %v4000_v39, 0.0  ;;  %4036 = vrot.lane.b32.xlu0 %v8944_v17, %s9936_s20  ;;  %4092 = vrot.lane.b32.xlu1 %v8944_v17, %s9935_s22  ;;  %v9107_v39 = vrot.slane %v4242_v22, %v9929_v9 }
 0xa2f   : > { %v8951_v37 = vpack.c.bf16 %v4015_v13, %v4014_v35 }
 0xa31   : > { %4038 = vrot.lane.b32.xlu0 %v8951_v37, %s9936_s20  ;;  %4094 = vrot.lane.b32.xlu1 %v8951_v37, %s9935_s22  ;;  %s9940_s22 = smov 121  }
 0xa35   : > { %4154 = vrot.lane.b32.xlu0 %v8832_v54, %s9938_s21  ;;  %4210 = vrot.lane.b32.xlu1 %v8832_v54, %s9937_s1 }
 0xa39   : > { %4152 = vrot.lane.b32.xlu0 %v8840_v51, %s9938_s21  ;;  %4208 = vrot.lane.b32.xlu1 %v8840_v51, %s9937_s1 }
 0xa3d   : > { %4148 = vrot.lane.b32.xlu0 %v8944_v17, %s9938_s21  ;;  %4204 = vrot.lane.b32.xlu1 %v8944_v17, %s9937_s1 }
 0xa41   : > { %4202 = vrot.lane.b32.xlu0 %v8936_v18, %s9937_s1  ;;  %4286 = vrot.lane.b32.xlu1 %v8815_v26, %s9930_s25 }
 0xa45   : > { %4284 = vrot.lane.b32.xlu0 %v8824_v15, %s9930_s25  ;;  %4146 = vrot.lane.b32.xlu1 %v8936_v18, %s9938_s21 }
 0xa49   : > { %4144 = vrot.lane.b32.xlu0 %v8930_v41, %s9938_s21  ;;  %4200 = vrot.lane.b32.xlu1 %v8930_v41, %s9937_s1 }
 0xa4d   : > { %4398 = vrot.lane.b32.xlu0 %v8815_v26, %s9939_s29  ;;  %4282 = vrot.lane.b32.xlu1 %v8832_v54, %s9930_s25 }
 0xa51   : > { %4150 = vrot.lane.b32.xlu0 %v8951_v37, %s9938_s21  ;;  %4206 = vrot.lane.b32.xlu1 %v8951_v37, %s9937_s1 }
 0xa55   : > { %4280 = vrot.lane.b32.xlu0 %v8840_v51, %s9930_s25  ;;  %4342 = vrot.lane.b32.xlu1 %v8815_v26, %s9940_s22 }
 0xa59   : > { %4340 = vrot.lane.b32.xlu0 %v8824_v15, %s9940_s22  ;;  %4396 = vrot.lane.b32.xlu1 %v8824_v15, %s9939_s29 }
 0xa5d   : > { %4394 = vrot.lane.b32.xlu0 %v8832_v54, %s9939_s29  ;;  %4338 = vrot.lane.b32.xlu1 %v8832_v54, %s9940_s22 }
 0xa61   : > { %4276 = vrot.lane.b32.xlu0 %v8944_v17, %s9930_s25  ;;  %4392 = vrot.lane.b32.xlu1 %v8840_v51, %s9939_s29 }
 0xa65   : > { %4336 = vrot.lane.b32.xlu0 %v8840_v51, %s9940_s22  ;;  %4274 = vrot.lane.b32.xlu1 %v8936_v18, %s9930_s25 }
 0xa69   : > { %4272 = vrot.lane.b32.xlu0 %v8930_v41, %s9930_s25  ;;  %4278 = vrot.lane.b32.xlu1 %v8951_v37, %s9930_s25 }
 0xa6d   : > { %4390 = vrot.lane.b32.xlu0 %v8951_v37, %s9939_s29  ;;  %4388 = vrot.lane.b32.xlu1 %v8944_v17, %s9939_s29 }
 0xa71   : > { %4332 = vrot.lane.b32.xlu0 %v8944_v17, %s9940_s22  ;;  %4334 = vrot.lane.b32.xlu1 %v8951_v37, %s9940_s22 }
 0xa75   : > { %4386 = vrot.lane.b32.xlu0 %v8936_v18, %s9939_s29  ;;  %4454 = vrot.lane.b32.xlu1 %v8815_v26, %s9941_s16 }
 0xa79   : > { %4452 = vrot.lane.b32.xlu0 %v8824_v15, %s9941_s16  ;;  %4330 = vrot.lane.b32.xlu1 %v8936_v18, %s9940_s22 }
 0xa7d   : > { %4328 = vrot.lane.b32.xlu0 %v8930_v41, %s9940_s22  ;;  %4384 = vrot.lane.b32.xlu1 %v8930_v41, %s9939_s29 }
 0xa81   : > { %4448 = vrot.lane.b32.xlu0 %v8840_v51, %s9941_s16  ;;  %4450 = vrot.lane.b32.xlu1 %v8832_v54, %s9941_s16 }
 0xa85   : > { %4444 = vrot.lane.b32.xlu0 %v8944_v17, %s9941_s16  ;;  %4446 = vrot.lane.b32.xlu1 %v8951_v37, %s9941_s16 }
 0xa89   : > { %4440 = vrot.lane.b32.xlu0 %v8930_v41, %s9941_s16  ;;  %4442 = vrot.lane.b32.xlu1 %v8936_v18, %s9941_s16 }
 0xa8d   : > { %4581 = vperm.xlu0 %7133, %v4543_v44   ;;  %4576 = vperm.xlu1 %7134, %v4542_v59   ;;  %v4258_v44 = vpack.i.b16 %v6354_v56, %v6354_v56  ;;  %v4238_v59 = vsel %vm1458_vm6, 0, %v4215_v27  ;;  %v7247_v27 = vld [vmem:[%s9859_s6] ss:$36 sps:$4 sm:$0xff]  }
 0xa91   : > { %4571 = vperm.xlu0 %7133, %v4541_v1   ;;  %4566 = vperm.xlu1 %7134, %v4540_v58   ;;  %v9117_v1 = vrot.slane %v4314_v50, %v9929_v9  ;;  %v9120_v58 = vrot.slane %v4186_v32, %v9929_v9 }
 0xa95   : > { %4561 = vperm.xlu0 %7133, %v4539_v62   ;;  %4556 = vperm.xlu1 %7134, %v4538_v63   ;;  %v4182_v63 = vsel %vm1400_vm7, 0, %v9057_v40  ;;  %v7250_v40 = vld [vmem:[%s9859_s6 + $0x4c] ss:$36 sps:$4 sm:$0xff]  }
 0xa97   : > { %v4089_v49 = vpop.permute.xlu1 %4088  ;;  %v4033_v31 = vpop.permute.xlu0 %4032 }
 0xa98   : > { %v4105_v29 = vsel %vm1342_vm5, 0, %v4089_v49  ;;  %v4049_v35 = vsel %vm1284_vm4, 0, %v4033_v31  ;;  %v9132_v49 = vrot.slane %v4258_v44, %v9929_v9  ;;  %v4235_v31 = vsel %vm1458_vm6, 0, %v9065_v3 }
 0xa99   : > { %4551 = vperm.xlu0 %7133, %v4537_v57   ;;  %4546 = vperm.xlu1 %7134, %v4536_v36   ;;  %v4136_v13 = vmul.bf16 %v8910_v61, %v4105_v29  ;;  %v4080_v62 = vmul.bf16 %v8914_v24, %v4049_v35  ;;  %v4179_v3 = vsel %vm1400_vm7, 0, %v9067_v10 }
 0xa9a   : > { %v4198_v10 = vmul.bf16 %v9120_v58, %v4179_v3  ;;  %v7261_v3 = vld [vmem:[%s9859_s6 + $0xc] ss:$36 sps:$4 sm:$0xff]  }
 0xa9b   : > { %v4091_v19 = vpop.permute.xlu1 %4090  ;;  %v4035_v21 = vpop.permute.xlu0 %4034 }
 0xa9c   : > { %v4108_v8 = vsel %vm1342_vm5, 0, %v4091_v19  ;;  %v4052_v55 = vsel %vm1284_vm4, 0, %v4035_v21  ;;  %v4271_v21 = vmul.bf16 %v9132_v49, %v8815_v26 }
 0xa9d   : > { %v4137_v16 = vmul.bf16 %v8910_v61, %v4108_v8  ;;  %v4081_v11 = vmul.bf16 %v8914_v24, %v4052_v55 }
 0xa9f   : > { %v4093_v45 = vpop.permute.xlu1 %4092  ;;  %v4037_v60 = vpop.permute.xlu0 %4036 }
 0xaa0   : > { %v4111_v6 = vsel %vm1342_vm5, 0, %v4093_v45  ;;  %v4055_v25 = vsel %vm1284_vm4, 0, %v4037_v60  ;;  %v4199_v45 = vmul.bf16 %v9120_v58, %v4182_v63  ;;  %v4254_v60 = vmul.bf16 %v9107_v39, %v4235_v31  ;;  %v6357_v63 = vld [vmem:[%s9861_s8 + $0x7] sm:$0x1] }
 0xaa1   : > { %v4138_v30 = vmul.bf16 %v8910_v61, %v4111_v6  ;;  %v4082_v43 = vmul.bf16 %v8914_v24, %v4055_v25 }
 0xaa3   : > { %v4095_v48 = vpop.permute.xlu1 %4094  ;;  %v4039_v5 = vpop.permute.xlu0 %4038 }
 0xaa4   : > { %v4114_v46 = vsel %vm1342_vm5, 0, %v4095_v48  ;;  %v4058_v14 = vsel %vm1284_vm4, 0, %v4039_v5 }
 0xaa5   : > { %v4139_v28 = vmul.bf16 %v8910_v61, %v4114_v46  ;;  %v4083_v34 = vmul.bf16 %v8914_v24, %v4058_v14  ;;  %v4255_v61 = vmul.bf16 %v9107_v39, %v4238_v59  ;;  %v4270_v14 = vmul.bf16 %v9132_v49, %v8824_v15  ;;  %v7253_v15 = vld [vmem:[%s9859_s6 + $0x94] ss:$36 sps:$4 sm:$0xff]  }
 0xaa7   : > { %v4211_v38 = vpop.permute.xlu1 %4210  ;;  %6702 = vmatprep.subr.bf16.mxu0 %v4139_v28  ;;  %v4155_v52 = vpop.permute.xlu0 %4154 }
 0xaa8   : > { %6703 = vmatpush3.bf16.msra.mxu0 %v4083_v34  ;;  %v4232_v6 = vsel %vm1458_vm6, 0, %v4211_v38  ;;  %v4176_v34 = vsel %vm1400_vm7, 0, %v4155_v52  ;;  %v7252_v38 = vld [vmem:[%s9859_s6 + $0x48] ss:$36 sps:$4 sm:$0xff]  }
 0xaa9   : > { %6704 = vmatprep.subr.bf16.mxu0 %v4138_v30  ;;  %v4253_v28 = vmul.bf16 %v9107_v39, %v4232_v6  ;;  %v4197_v8 = vmul.bf16 %v9120_v58, %v4176_v34 }
 0xaab   : > { %v4209_v23 = vpop.permute.xlu1 %4208  ;;  %v4153_v0 = vpop.permute.xlu0 %4152 }
 0xaac   : > { %6705 = vmatpush3.bf16.msra.mxu0 %v4082_v43  ;;  %v4229_v53 = vsel %vm1458_vm6, 0, %v4209_v23  ;;  %v4173_v43 = vsel %vm1400_vm7, 0, %v4153_v0  ;;  %v7255_v0 = vld [vmem:[%s9859_s6 + $0x90] ss:$36 sps:$4 sm:$0xff]  }
 0xaad   : > { %6706 = vmatprep.subr.bf16.mxu0 %v4137_v16  ;;  %v4252_v52 = vmul.bf16 %v9107_v39, %v4229_v53  ;;  %v4269_v16 = vmul.bf16 %v9132_v49, %v8832_v54  ;;  %v4196_v23 = vmul.bf16 %v9120_v58, %v4173_v43  ;;  %v7256_v54 = vld [vmem:[%s9859_s6 + $0xdc] ss:$36 sps:$4 sm:$0xff]  }
 0xaaf   : > { %v9111_v42 = vpop.permute.xlu1 %4204  ;;  %v9113_v33 = vpop.permute.xlu0 %4148 }
 0xab0   : > { %6707 = vmatpush3.bf16.msra.mxu0 %v4081_v11  ;;  %v4223_v50 = vsel %vm1458_vm6, 0, %v9111_v42  ;;  %v4167_v59 = vsel %vm1400_vm7, 0, %v9113_v33 }
 0xab1   : > { %6708 = vmatprep.subr.bf16.mxu0 %v4136_v13  ;;  %v4250_v44 = vmul.bf16 %v9107_v39, %v4223_v50  ;;  %v4194_v31 = vmul.bf16 %v9120_v58, %v4167_v59  ;;  %v7264_v50 = vld [vmem:[%s9859_s6 + $0x50] ss:$36 sps:$4 sm:$0xff]   ;;  %v7265_v59 = vld [vmem:[%s9859_s6 + $0x9c] ss:$36 sps:$4 sm:$0xff]  }
 0xab3   : > { %v4287_v57 = vpop.permute.xlu1 %4286  ;;  %v9126_v36 = vpop.permute.xlu0 %4202 }
 0xab4   : > { %v4310_v24 = vsel %vm1533_vm8, %v4287_v57, 0  ;;  %6709 = vmatpush3.bf16.msra.mxu0 %v4080_v62 }
 0xab5   : > { %v4327_v19 = vmul.bf16 %v9117_v1, %v4310_v24  ;;  %6734 = vmatprep.subr.bf16.mxu0 %v4255_v61  ;;  %v4220_v61 = vsel %vm1458_vm6, 0, %v9126_v36 }
 0xab6   : > { %v4249_v24 = vmul.bf16 %v9107_v39, %v4220_v61 }
 0xab7   : > { %6774 = vmatprep.subr.bf16.mxu1 %v4327_v19  ;;  %v9147_v48 = vpop.permute.xlu1 %4146  ;;  %4801 = vmatmul.mubr.bf16.vlgmr.msra.gmra.mxu0 %v7247_v27  ;;  %v4285_v5 = vpop.permute.xlu0 %4284  ;;  %v4268_v27 = vmul.bf16 %v9132_v49, %v8840_v51  ;;  %v6356_v19 = vld [vmem:[%s9861_s8 + $0x6] sm:$0x1]  ;;  %v7258_v51 = vld [vmem:[%s9859_s6 + $0xd8] ss:$36 sps:$4 sm:$0xff]  }
 0xab8   : > { %v4307_v46 = vsel %vm1533_vm8, %v4285_v5, 0  ;;  %6735 = vmatpush3.bf16.msra.mxu0 %v4199_v45  ;;  %4808 = vmatprep.mubr.bf16.mxu0 %v7250_v40  ;;  %v4164_v36 = vsel %vm1400_vm7, 0, %v9147_v48  ;;  %v4426_v40 = vpack.i.b16 %v6357_v63, %v6357_v63  ;;  %v4370_v5 = vpack.i.b16 %v6356_v19, %v6356_v19 }
 0xab9   : > { %v4326_v26 = vmul.bf16 %v9117_v1, %v4307_v46  ;;  %6736 = vmatprep.subr.bf16.mxu0 %v4254_v60  ;;  %6775 = vmatpush3.bf16.msra.mxu1 %v4271_v21  ;;  %v4193_v48 = vmul.bf16 %v9120_v58, %v4164_v36 }
 0xabb   : > { %v4201_v30 = vpop.permute.xlu1 %4200  ;;  %v9157_v25 = vpop.permute.xlu0 %4144  ;;  %6776 = vmatprep.subr.bf16.mxu1 %v4326_v26  ;;  %v9217_v26 = vrot.slane %v4426_v40, %v9929_v9 }
 0xabc   : > { %6737 = vmatpush3.bf16.msra.mxu0 %v4198_v10  ;;  %v4217_v60 = vsel %vm1458_vm6, 0, %v4201_v30  ;;  %v4161_v46 = vsel %vm1400_vm7, 0, %v9157_v25  ;;  %v9222_v30 = vrot.slane %v4370_v5, %v9929_v9  ;;  %v4265_v5 = vmul.bf16 %v9132_v49, %v8936_v18 }
 0xabd   : > { %6738 = vmatprep.subr.bf16.mxu0 %v4253_v28  ;;  %6777 = vmatpush3.bf16.msra.mxu1 %v4270_v14  ;;  %v4248_v6 = vmul.bf16 %v9107_v39, %v4217_v60  ;;  %v4192_v34 = vmul.bf16 %v9120_v58, %v4161_v46 }
 0xabf   : > { %v4283_v47 = vpop.permute.xlu1 %4282  ;;  %4809 = vmatmul.mubr.bf16.gmra.mxu0 %v7252_v38  ;;  %v4399_v22 = vpop.permute.xlu0 %4398 }
 0xac0   : > { %v4304_v20 = vsel %vm1533_vm8, %v4283_v47, 0  ;;  %6739 = vmatpush3.bf16.msra.mxu0 %v4197_v8  ;;  %4816 = vmatprep.mubr.bf16.mxu0 %v7253_v15  ;;  %v4422_v28 = vsel %vm1649_vm9, %v4399_v22, 0  ;;  %v7259_v15 = vld [vmem:[%s9859_s6 + $0x8] ss:$36 sps:$4 sm:$0xff]  }
 0xac1   : > { %v4325_v55 = vmul.bf16 %v9117_v1, %v4304_v20  ;;  %6740 = vmatprep.subr.bf16.mxu0 %v4252_v52 }
 0xac3   : > { %v4207_v29 = vpop.permute.xlu1 %4206  ;;  %6778 = vmatprep.subr.bf16.mxu1 %v4325_v55  ;;  %v4151_v56 = vpop.permute.xlu0 %4150 }
 0xac4   : > { %v4226_v32 = vsel %vm1458_vm6, 0, %v4207_v29  ;;  %v4170_v11 = vsel %vm1400_vm7, 0, %v4151_v56  ;;  %6741 = vmatpush3.bf16.msra.mxu0 %v4196_v23  ;;  %6779 = vmatpush3.bf16.msra.mxu1 %v4269_v16 }
 0xac5   : > { %v4251_v13 = vmul.bf16 %v9107_v39, %v4226_v32  ;;  %v4195_v35 = vmul.bf16 %v9120_v58, %v4170_v11  ;;  %v4439_v39 = vmul.bf16 %v9217_v26, %v4422_v28  ;;  %v7262_v58 = vld [vmem:[%s9859_s6 + $0x54] ss:$36 sps:$4 sm:$0xff]  }
 0xac7   : > { %v4343_v42 = vpop.permute.xlu1 %4342  ;;  %4817 = vmatmul.mubr.bf16.gmra.mxu0 %v7255_v0  ;;  %6742 = vmatprep.subr.bf16.mxu0 %v4251_v13  ;;  %v4281_v62 = vpop.permute.xlu0 %4280 }
 0xac8   : > { %v4301_v57 = vsel %vm1533_vm8, %v4281_v62, 0  ;;  %6743 = vmatpush3.bf16.msra.mxu0 %v4195_v35  ;;  %4824 = vmatprep.mubr.bf16.mxu0 %v7256_v54  ;;  %v4366_v25 = vsel %vm1591_vm10, %v4343_v42, 0 }
 0xac9   : > { %v4324_v33 = vmul.bf16 %v9117_v1, %v4301_v57  ;;  %6744 = vmatprep.subr.bf16.mxu0 %v4250_v44  ;;  %v4383_v52 = vmul.bf16 %v9222_v30, %v4366_v25  ;;  %v4267_v44 = vmul.bf16 %v9132_v49, %v8951_v37  ;;  %v6358_v37 = vld [vmem:[%s9861_s8 + $0x8] sm:$0x1] }
 0xacb   : > { %v4397_v21 = vpop.permute.xlu1 %4396  ;;  %v4341_v45 = vpop.permute.xlu0 %4340  ;;  %6780 = vmatprep.subr.bf16.mxu1 %v4324_v33 }
 0xacc   : > { %6745 = vmatpush3.bf16.msra.mxu0 %v4194_v31  ;;  %6781 = vmatpush3.bf16.msra.mxu1 %v4268_v27  ;;  %v4419_v8 = vsel %vm1649_vm9, %v4397_v21, 0  ;;  %v4363_v47 = vsel %vm1591_vm10, %v4341_v45, 0  ;;  %v4482_v45 = vpack.i.b16 %v6358_v37, %v6358_v37  ;;  %v7288_v37 = vld [vmem:[%s9859_s6 + $0xec] ss:$36 sps:$4 sm:$0xff]  }
 0xacd   : > { %6746 = vmatprep.subr.bf16.mxu0 %v4249_v24  ;;  %v4438_v43 = vmul.bf16 %v9217_v26, %v4419_v8  ;;  %v4382_v55 = vmul.bf16 %v9222_v30, %v4363_v47  ;;  %v4266_v24 = vmul.bf16 %v9132_v49, %v8944_v17 }
 0xace   : > { %v9282_v28 = vrot.slane %v4482_v45, %v9929_v9  ;;  %v7286_v45 = vld [vmem:[%s9859_s6 + $0xe8] ss:$36 sps:$4 sm:$0xff]  }
 0xacf   : > { %v4339_v14 = vpop.permute.xlu1 %4338  ;;  %4825 = vmatmul.mubr.bf16.gmra.mxu0 %v7258_v51  ;;  %v4395_v10 = vpop.permute.xlu0 %4394  ;;  %v7267_v51 = vld [vmem:[%s9859_s6 + $0x98] ss:$36 sps:$4 sm:$0xff]  }
 0xad0   : > { %6747 = vmatpush3.bf16.msra.mxu0 %v4193_v48  ;;  %4865 = vmatprep.mubr.bf16.mxu0 %v7261_v3  ;;  %v4416_v16 = vsel %vm1649_vm9, %v4395_v10, 0  ;;  %v4360_v23 = vsel %vm1591_vm10, %v4339_v14, 0 }
 0xad1   : > { %6748 = vmatprep.subr.bf16.mxu0 %v4248_v6  ;;  %v4437_v29 = vmul.bf16 %v9217_v26, %v4416_v16  ;;  %v4381_v35 = vmul.bf16 %v9222_v30, %v4360_v23  ;;  %v7268_v6 = vld [vmem:[%s9859_s6 + $0xe4] ss:$36 sps:$4 sm:$0xff]   ;;  %v7278_v16 = vld [vmem:[%s9859_s6 + $0x1c] ss:$36 sps:$4 sm:$0xff]  }
 0xad3   : > { %v4393_v38 = vpop.permute.xlu1 %4392  ;;  %v4277_v53 = vpop.permute.xlu0 %4276 }
 0xad4   : > { %6749 = vmatpush3.bf16.msra.mxu0 %v4192_v34  ;;  %v4413_v32 = vsel %vm1649_vm9, %v4393_v38, 0  ;;  %v4295_v11 = vsel %vm1533_vm8, %v4277_v53, 0  ;;  %v4264_v38 = vmul.bf16 %v9132_v49, %v8930_v41 }
 0xad5   : > { %6814 = vmatprep.subr.bf16.mxu0 %v4439_v39  ;;  %v4436_v42 = vmul.bf16 %v9217_v26, %v4413_v32  ;;  %v4322_v62 = vmul.bf16 %v9117_v1, %v4295_v11 }
 0xad7   : > { %v4275_v22 = vpop.permute.xlu1 %4274  ;;  %4866 = vmatmul.mubr.bf16.vlgmr.msra.gmra.mxu0 %v7259_v15  ;;  %v4337_v20 = vpop.permute.xlu0 %4336 }
 0xad8   : > { %6815 = vmatpush3.bf16.msra.mxu0 %v4383_v52  ;;  %4873 = vmatprep.mubr.bf16.mxu0 %v7262_v58  ;;  %v4357_v61 = vsel %vm1591_vm10, %v4337_v20, 0  ;;  %v4292_v27 = vsel %vm1533_vm8, %v4275_v22, 0  ;;  %v7270_v52 = vld [vmem:[%s9859_s6 + $0x10] ss:$36 sps:$4 sm:$0xff]   ;;  %v7274_v20 = vld [vmem:[%s9859_s6 + $0x5c] ss:$36 sps:$4 sm:$0xff]  }
 0xad9   : > { %6816 = vmatprep.subr.bf16.mxu0 %v4438_v43  ;;  %v4380_v31 = vmul.bf16 %v9222_v30, %v4357_v61  ;;  %v4321_v36 = vmul.bf16 %v9117_v1, %v4292_v27  ;;  %v7273_v43 = vld [vmem:[%s9859_s6 + $0xe0] ss:$36 sps:$4 sm:$0xff]  }
 0xada   : > { %v7285_v27 = vld [vmem:[%s9859_s6 + $0xa0] ss:$36 sps:$4 sm:$0xff]  }
 0xadb   : > { %v4279_v56 = vpop.permute.xlu1 %4278  ;;  %v4273_v0 = vpop.permute.xlu0 %4272 }
 0xadc   : > { %v4298_v54 = vsel %vm1533_vm8, %v4279_v56, 0  ;;  %6817 = vmatpush3.bf16.msra.mxu0 %v4382_v55  ;;  %v4289_v60 = vsel %vm1533_vm8, %v4273_v0, 0 }
 0xadd   : > { %v4323_v13 = vmul.bf16 %v9117_v1, %v4298_v54  ;;  %6818 = vmatprep.subr.bf16.mxu0 %v4437_v29  ;;  %v4320_v46 = vmul.bf16 %v9117_v1, %v4289_v60  ;;  %v7276_v54 = vld [vmem:[%s9859_s6 + $0x18] ss:$36 sps:$4 sm:$0xff]  }
 0xadf   : > { %v4389_v63 = vpop.permute.xlu1 %4388  ;;  %4874 = vmatmul.mubr.bf16.gmra.mxu0 %v7264_v50  ;;  %6782 = vmatprep.subr.bf16.mxu1 %v4323_v13  ;;  %v4391_v57 = vpop.permute.xlu0 %4390  ;;  %v7279_v13 = vld [vmem:[%s9859_s6 + $0x58] ss:$36 sps:$4 sm:$0xff]  }
 0xae0   : > { %v4410_v33 = vsel %vm1649_vm9, %v4391_v57, 0  ;;  %6783 = vmatpush3.bf16.msra.mxu1 %v4267_v44  ;;  %6819 = vmatpush3.bf16.msra.mxu0 %v4381_v35  ;;  %v4407_v3 = vsel %vm1649_vm9, %v4389_v63, 0  ;;  %v7282_v57 = vld [vmem:[%s9859_s6 + $0x60] ss:$36 sps:$4 sm:$0xff]  }
 0xae1   : > { %6784 = vmatprep.subr.bf16.mxu1 %v4322_v62  ;;  %6820 = vmatprep.subr.bf16.mxu0 %v4436_v42  ;;  %v4435_v40 = vmul.bf16 %v9217_v26, %v4410_v33  ;;  %v4434_v14 = vmul.bf16 %v9217_v26, %v4407_v3  ;;  %v7294_v3 = vld [vmem:[%s9859_s6 + $0xf4] ss:$36 sps:$4 sm:$0xff]  }
 0xae2   : > { %4881 = vmatprep.mubr.bf16.mxu0 %v7265_v59  ;;  %v7284_v59 = vld [vmem:[%s9859_s6 + $0x64] ss:$36 sps:$4 sm:$0xff]  }
 0xae3   : > { %v4335_v19 = vpop.permute.xlu1 %4334  ;;  %v4333_v21 = vpop.permute.xlu0 %4332 }
 0xae4   : > { %v4354_v48 = vsel %vm1591_vm10, %v4335_v19, 0  ;;  %6785 = vmatpush3.bf16.msra.mxu1 %v4266_v24  ;;  %6821 = vmatpush3.bf16.msra.mxu0 %v4380_v31  ;;  %v4351_v10 = vsel %vm1591_vm10, %v4333_v21, 0  ;;  %v7291_v31 = vld [vmem:[%s9859_s6 + $0xac] ss:$36 sps:$4 sm:$0xff]  }
 0xae5   : > { %v4379_v17 = vmul.bf16 %v9222_v30, %v4354_v48  ;;  %6786 = vmatprep.subr.bf16.mxu1 %v4321_v36  ;;  %6822 = vmatprep.subr.bf16.mxu0 %v4435_v40  ;;  %v4378_v1 = vmul.bf16 %v9222_v30, %v4351_v10  ;;  %v7295_v48 = vld [vmem:[%s9859_s6 + $0x20] ss:$36 sps:$4 sm:$0xff]   ;;  %v7298_v10 = vld [vmem:[%s9859_s6 + $0xf8] ss:$36 sps:$4 sm:$0xff]  }
 0xae7   : > { %v4455_v34 = vpop.permute.xlu1 %4454  ;;  %4882 = vmatmul.mubr.bf16.gmra.mxu0 %v7267_v51  ;;  %v4387_v39 = vpop.permute.xlu0 %4386  ;;  %v7289_v51 = vld [vmem:[%s9859_s6 + $0xa8] ss:$36 sps:$4 sm:$0xff]  }
 0xae8   : > { %v4478_v25 = vsel %vm1707_vm11, %v4455_v34, 0  ;;  %v4404_v18 = vsel %vm1649_vm9, %v4387_v39, 0  ;;  %6787 = vmatpush3.bf16.msra.mxu1 %v4265_v5  ;;  %6823 = vmatpush3.bf16.msra.mxu0 %v4379_v17 }
 0xae9   : > { %6788 = vmatprep.subr.bf16.mxu1 %v4320_v46  ;;  %6824 = vmatprep.subr.bf16.mxu0 %v4434_v14  ;;  %v4495_v53 = vmul.bf16 %v9282_v28, %v4478_v25  ;;  %v4433_v15 = vmul.bf16 %v9217_v26, %v4404_v18  ;;  %v7296_v46 = vld [vmem:[%s9859_s6 + $0x68] ss:$36 sps:$4 sm:$0xff]   ;;  %v7297_v14 = vld [vmem:[%s9859_s6 + $0xb0] ss:$36 sps:$4 sm:$0xff]  }
 0xaea   : > { %4889 = vmatprep.mubr.bf16.mxu0 %v7268_v6  ;;  %v7292_v6 = vld [vmem:[%s9859_s6 + $0xf0] ss:$36 sps:$4 sm:$0xff]  }
 0xaeb   : > { %v4331_v8 = vpop.permute.xlu1 %4330  ;;  %v4453_v58 = vpop.permute.xlu0 %4452 }
 0xaec   : > { %v4348_v47 = vsel %vm1591_vm10, %v4331_v8, 0  ;;  %v4475_v22 = vsel %vm1707_vm11, %v4453_v58, 0  ;;  %6789 = vmatpush3.bf16.msra.mxu1 %v4264_v38  ;;  %6825 = vmatpush3.bf16.msra.mxu0 %v4378_v1 }
 0xaed   : > { %v4377_v41 = vmul.bf16 %v9222_v30, %v4348_v47  ;;  %v4494_v49 = vmul.bf16 %v9282_v28, %v4475_v22  ;;  %6826 = vmatprep.subr.bf16.mxu0 %v4433_v15  ;;  %7066 = vmatprep.subr.bf16.mxu1 %v4495_v53 }
 0xaef   : > { %v4385_v55 = vpop.permute.xlu1 %4384  ;;  %4890 = vmatmul.mubr.bf16.gmra.mxu0 %v7273_v43  ;;  %4931 = vmatmul.mubr.bf16.vlgmr.msra.gmra.mxu1 %v7270_v52  ;;  %v4329_v23 = vpop.permute.xlu0 %4328 }
 0xaf0   : > { %v4401_v29 = vsel %vm1649_vm9, %v4385_v55, 0  ;;  %v4345_v56 = vsel %vm1591_vm10, %v4329_v23, 0  ;;  %6827 = vmatpush3.bf16.msra.mxu0 %v4377_v41  ;;  %7067 = vmatpush3.bf16.msra.mxu1 %v4495_v53 }
 0xaf1   : > { %v4432_v0 = vmul.bf16 %v9217_v26, %v4401_v29  ;;  %v4376_v50 = vmul.bf16 %v9222_v30, %v4345_v56  ;;  %7068 = vmatprep.subr.bf16.mxu1 %v4494_v49  ;;  %4938 = vmatprep.mubr.bf16.mxu1 %v7274_v20  ;;  %v7280_v30 = vld [vmem:[%s9859_s6 + $0xa4] ss:$36 sps:$4 sm:$0xff]  }
 0xaf2   : > { %4995 = vmatprep.mubr.bf16.mxu0 %v7278_v16 }
 0xaf3   : > { %v4451_v32 = vpop.permute.xlu1 %4450  ;;  %6828 = vmatprep.subr.bf16.mxu0 %v4432_v0  ;;  %v4449_v11 = vpop.permute.xlu0 %4448 }
 0xaf4   : > { %v4472_v35 = vsel %vm1707_vm11, %v4451_v32, 0  ;;  %v4469_v26 = vsel %vm1707_vm11, %v4449_v11, 0  ;;  %6829 = vmatpush3.bf16.msra.mxu0 %v4376_v50  ;;  %7069 = vmatpush3.bf16.msra.mxu1 %v4494_v49 }
 0xaf5   : > { %v4493_v44 = vmul.bf16 %v9282_v28, %v4472_v35  ;;  %v4492_v42 = vmul.bf16 %v9282_v28, %v4469_v26 }
 0xaf7   : > { %v4447_v62 = vpop.permute.xlu1 %4446  ;;  %4939 = vmatmul.mubr.bf16.gmra.mxu1 %v7279_v13  ;;  %4996 = vmatmul.mubr.bf16.vlgmr.msra.gmra.mxu0 %v7276_v54  ;;  %v4445_v63 = vpop.permute.xlu0 %4444 }
 0xaf8   : > { %7070 = vmatprep.subr.bf16.mxu1 %v4493_v44  ;;  %4946 = vmatprep.mubr.bf16.mxu1 %v7280_v30  ;;  %v4466_v61 = vsel %vm1707_vm11, %v4447_v62, 0  ;;  %v4463_v24 = vsel %vm1707_vm11, %v4445_v63, 0 }
 0xaf9   : > { %7071 = vmatpush3.bf16.msra.mxu1 %v4493_v44  ;;  %5003 = vmatprep.mubr.bf16.mxu0 %v7284_v59  ;;  %v4491_v33 = vmul.bf16 %v9282_v28, %v4466_v61  ;;  %v4490_v40 = vmul.bf16 %v9282_v28, %v4463_v24 }
 0xafa   : > { %7072 = vmatprep.subr.bf16.mxu1 %v4492_v42 }
 0xafb   : > { %v4443_v36 = vpop.permute.xlu1 %4442  ;;  %v4441_v21 = vpop.permute.xlu0 %4440 }
 0xafc   : > { %v4460_v19 = vsel %vm1707_vm11, %v4443_v36, 0  ;;  %v4457_v17 = vsel %vm1707_vm11, %v4441_v21, 0 }
 0xafd   : > { %7073 = vmatpush3.bf16.msra.mxu1 %v4492_v42  ;;  %v4489_v60 = vmul.bf16 %v9282_v28, %v4460_v19  ;;  %v4488_v5 = vmul.bf16 %v9282_v28, %v4457_v17  ;;  %v7299_v28 = vld [vmem:[%s9862_s9] sm:$0xff]  }
 0xafe   : > { %7074 = vmatprep.subr.bf16.mxu1 %v4491_v33 }
 0xaff   : > { %4947 = vmatmul.mubr.bf16.gmra.mxu1 %v7285_v27  ;;  %5004 = vmatmul.mubr.bf16.gmra.mxu0 %v7282_v57 }
 0xb00   : > { %4954 = vmatprep.mubr.bf16.mxu1 %v7288_v37  ;;  %5011 = vmatprep.mubr.bf16.mxu0 %v7291_v31 }
 0xb01   : > { %7075 = vmatpush3.bf16.msra.mxu1 %v4491_v33 }
 0xb02   : > { %7076 = vmatprep.subr.bf16.mxu1 %v4490_v40 }
 0xb05   : > { %7077 = vmatpush3.bf16.msra.mxu1 %v4490_v40 }
 0xb06   : > { %7078 = vmatprep.subr.bf16.mxu1 %v4489_v60 }
 0xb07   : > { %4955 = vmatmul.mubr.bf16.gmra.mxu1 %v7286_v45  ;;  %5012 = vmatmul.mubr.bf16.gmra.mxu0 %v7289_v51 }
 0xb08   : > { %5019 = vmatprep.mubr.bf16.mxu0 %v7294_v3  ;;  %7082 = vmatprep.mubr.bf16.mxu1 %v7295_v48  ;;  %v9379_v47 = vpop.permute.xlu1 %4576  ;;  %v9383_v20 = vpop.permute.xlu0 %4581 }
 0xb09   : > { %7079 = vmatpush3.bf16.msra.mxu1 %v4489_v60 }
 0xb0a   : > { %7080 = vmatprep.subr.bf16.mxu1 %v4488_v5 }
 0xb0c   : > { %v9385_v55 = vpop.permute.xlu1 %4566  ;;  %v9389_v0 = vpop.permute.xlu0 %4571 }
 0xb0d   : > { %7081 = vmatpush3.bf16.msra.mxu1 %v4488_v5 }
 0xb0f   : > { %5020 = vmatmul.mubr.bf16.gmra.mxu0 %v7292_v6 }
 0xb10   : > { %7083 = vmatmul.mubr.bf16.vlgmr.msra.gmra.mxu1 %v7296_v46  ;;  %v4557_v32 = vpop.permute.xlu1 %4556  ;;  %v4562_v13 = vpop.permute.xlu0 %4561 }
 0xb11   : > { %7086 = vmatprep.mubr.bf16.mxu1 %v7297_v14 }
 0xb14   : > { %v4547_v26 = vpop.permute.xlu1 %4546  ;;  %v4552_v61 = vpop.permute.xlu0 %4551 }
 0xb18   : > { %7087 = vmatmul.mubr.bf16.gmra.mxu1 %v7298_v10 }
 0xb19   : > { %7098 = vmatprep.mubr.msk.bf16.mxu1 %vm1114_vm2, %v7299_v28 }
 0xb77   : > { %v6710_v34 = vpop.f32.mrf.mxu0 }
 0xb79   : > { %v6711_v39 = vpop.f32.mrf.mxu0 }
 0xb7a   : > { %v6712_v25 = vadd.f32 %v6711_v39, %v6710_v34 }
 0xb7b   : > { %v6713_v18 = vpop.f32.mrf.mxu0 }
 0xb7c   : > { %v4803_v44 = vadd.f32 %v6712_v25, %v4547_v26 }
 0xb7d   : > { %v6714_v1 = vpop.f32.mrf.mxu0 }
 0xb7e   : > { %v6715_v38 = vadd.f32 %v6714_v1, %v6713_v18 }
 0xb7f   : > { %v6716_v53 = vpop.f32.mrf.mxu0 }
 0xb80   : > { %v4806_v57 = vadd.f32 %v6715_v38, %v4552_v61 }
 0xb81   : > { %v6717_v15 = vpop.f32.mrf.mxu0 }
 0xb82   : > { %v9375_v8 = vadd.f32 %v6717_v15, %v6716_v53 }
 0xb83   : > { %v6719_v58 = vpop.f32.mrf.mxu0 }
 0xb85   : > { %v6720_v52 = vpop.f32.mrf.mxu0 }
 0xb86   : > { %v9377_v43 = vadd.f32 %v6720_v52, %v6719_v58 }
 0xb87   : > { %v6722_v22 = vpop.f32.mrf.mxu0 }
 0xb89   : > { %v6723_v41 = vpop.f32.mrf.mxu0 }
 0xb8a   : > { %v9381_v49 = vadd.f32 %v6723_v41, %v6722_v22 }
 0xb8b   : > { %v6725_v16 = vpop.f32.mrf.mxu0 }
 0xb8d   : > { %v6726_v23 = vpop.f32.mrf.mxu0 }
 0xb8e   : > { %v9387_v29 = vadd.f32 %v6726_v23, %v6725_v16 }
 0xb8f   : > { %v6728_v56 = vpop.f32.mrf.mxu0 }
 0xb91   : > { %v6729_v50 = vpop.f32.mrf.mxu0 }
 0xb92   : > { %v6730_v12 = vadd.f32 %v6729_v50, %v6728_v56  ;;  %v4822_v56 = vadd.f32 %v9387_v29, %v9389_v0 }
 0xb93   : > { %v9391_v11 = vpop.f32.mrf.mxu0 }
 0xb94   : > { %v4827_v50 = vadd.f32 %v6730_v12, %v9379_v47 }
 0xb95   : > { %v9393_v54 = vpop.f32.mrf.mxu0 }
 0xb97   : > { %v6750_v35 = vpop.f32.mrf.mxu0 }
 0xb99   : > { %v6751_v30 = vpop.f32.mrf.mxu0 }
 0xb9a   : > { %v6752_v59 = vadd.f32 %v6751_v30, %v6750_v35 }
 0xb9b   : > { %v6753_v42 = vpop.f32.mrf.mxu0 }
 0xb9c   : > { %v9395_v62 = vadd.f32 %v6752_v59, %v4803_v44 }
 0xb9d   : > { %v6754_v63 = vpop.f32.mrf.mxu0 }
 0xb9e   : > { %v6755_v27 = vadd.f32 %v6754_v63, %v6753_v42  ;;  %v4811_v42 = vadd.f32 %v9375_v8, %v4557_v32 }
 0xb9f   : > { %v6756_v33 = vpop.f32.mrf.mxu0 }
 0xba0   : > { %v9397_v37 = vadd.f32 %v6755_v27, %v4806_v57  ;;  %v4814_v27 = vadd.f32 %v9377_v43, %v4562_v13  ;;  %v4819_v43 = vadd.f32 %v9381_v49, %v9385_v55 }
 0xba1   : > { %v6757_v31 = vpop.f32.mrf.mxu0 }
 0xba2   : > { %9942 = vst [vmem:[#allocation3_spill] sm:$0xff] %v9397_v37  ;;  %v6758_v26 = vadd.f32 %v6757_v31, %v6756_v33  ;;  %v6733_v33 = vadd.f32 %v9393_v54, %v9391_v11 }
 0xba3   : > { %v6759_v24 = vpop.f32.mrf.mxu0 }
 0xba4   : > { %v4876_v2 = vadd.f32 %v6758_v26, %v4811_v42 }
 0xba5   : > { %v6760_v36 = vpop.f32.mrf.mxu0 }
 0xba6   : > { %v6761_v59 = vadd.f32 %v6760_v36, %v6759_v24 }
 0xba7   : > { %v6762_v40 = vpop.f32.mrf.mxu0 }
 0xba8   : > { %v4879_v31 = vadd.f32 %v6761_v59, %v4814_v27 }
 0xba9   : > { %v6763_v19 = vpop.f32.mrf.mxu0  ;;  %v9945_v49 = vld [vmem:[#allocation3_spill] sm:$0xff] }
 0xbaa   : > { %v6764_v37 = vadd.f32 %v6763_v19, %v6762_v40 }
 0xbab   : > { %v9399_v21 = vpop.f32.mrf.mxu0 }
 0xbac   : > { %9943 = vst [vmem:[#allocation8_spill] sm:$0xff] %v9399_v21 }
 0xbad   : > { %v9401_v45 = vpop.f32.mrf.mxu0 }
 0xbae   : > { %9944 = vst [vmem:[#allocation9_spill] sm:$0xff] %v9401_v45 }
 0xbaf   : > { %v6768_v51 = vpop.f32.mrf.mxu0  ;;  %v6790_v60 = vpop.f32.mrf.mxu1 }
 0xbb1   : > { %v6769_v3 = vpop.f32.mrf.mxu0  ;;  %v6791_v48 = vpop.f32.mrf.mxu1 }
 0xbb2   : > { %v6792_v9 = vadd.f32 %v6791_v48, %v6790_v60  ;;  %v6770_v13 = vadd.f32 %v6769_v3, %v6768_v51 }
 0xbb3   : > { %v6771_v17 = vpop.f32.mrf.mxu0  ;;  %v6793_v5 = vpop.f32.mrf.mxu1  ;;  %v9946_v47 = vld [vmem:[#allocation8_spill] sm:$0xff] }
 0xbb4   : > { %v4933_v48 = vadd.f32 %v6792_v9, %v9395_v62  ;;  %v4892_v9 = vadd.f32 %v6770_v13, %v4827_v50 }
 0xbb5   : > { %v6772_v6 = vpop.f32.mrf.mxu0  ;;  %v6794_v46 = vpop.f32.mrf.mxu1  ;;  %v9947_v51 = vld [vmem:[#allocation9_spill] sm:$0xff] }
 0xbb6   : > { %v6795_v24 = vadd.f32 %v6794_v46, %v6793_v5  ;;  %v4884_v5 = vadd.f32 %v6764_v37, %v4819_v43  ;;  %v6773_v46 = vadd.f32 %v6772_v6, %v6771_v17  ;;  %v6767_v3 = vadd.f32 %v9947_v51, %v9946_v47  ;;  %v5248_v47 = vld [vmem:[%s9864_s11 + $0x90] sm:$0xff]  ;;  %v5247_v51 = vld [vmem:[%s9864_s11 + $0x88] sm:$0xff] }
 0xbb7   : > { %v6796_v14 = vpop.f32.mrf.mxu1  ;;  %v6830_v10 = vpop.f32.mrf.mxu0 }
 0xbb8   : > { %v4936_v55 = vadd.f32 %v6795_v24, %v9945_v49  ;;  %v5254_v49 = vld [vmem:[%s9864_s11 + $0xc0] sm:$0xff] }
 0xbb9   : > { %v6797_v28 = vpop.f32.mrf.mxu1  ;;  %v6831_v34 = vpop.f32.mrf.mxu0 }
 0xbba   : > { %v6798_v61 = vadd.f32 %v6797_v28, %v6796_v14  ;;  %v6832_v8 = vadd.f32 %v6831_v34, %v6830_v10 }
 0xbbb   : > { %v6799_v39 = vpop.f32.mrf.mxu1  ;;  %v6833_v25 = vpop.f32.mrf.mxu0 }
 0xbbc   : > { %v4941_v36 = vadd.f32 %v6798_v61, %v4876_v2  ;;  %v4830_v2 = vadd.f32 %v6733_v33, %v9383_v20  ;;  %v4998_v29 = vadd.f32 %v6832_v8, %v4933_v48  ;;  %v7300_v48 = vld [vmem:[%s9862_s9 + $0x8] sm:$0xff]  }
 0xbbd   : > { %v6800_v18 = vpop.f32.mrf.mxu1  ;;  %v6834_v1 = vpop.f32.mrf.mxu0 }
 0xbbe   : > { %v6801_v7 = vadd.f32 %v6800_v18, %v6799_v39  ;;  %v6835_v54 = vadd.f32 %v6834_v1, %v6833_v25  ;;  %v4895_v6 = vadd.f32 %v6773_v46, %v4830_v2  ;;  %v5259_v2 = vld [vmem:[%s9864_s11 + $0xe8] sm:$0xff]  ;;  %v5257_v46 = vld [vmem:[%s9864_s11 + $0xd8] sm:$0xff] }
 0xbbf   : > { %v6802_v38 = vpop.f32.mrf.mxu1  ;;  %v6836_v53 = vpop.f32.mrf.mxu0 }
 0xbc0   : > { %v4944_v11 = vadd.f32 %v6801_v7, %v4879_v31  ;;  %v5001_v17 = vadd.f32 %v6835_v54, %v4936_v55  ;;  %v7302_v54 = vld [vmem:[%s9862_s9 + $0x18] sm:$0xff]  }
 0xbc1   : > { %v6803_v15 = vpop.f32.mrf.mxu1  ;;  %v6837_v58 = vpop.f32.mrf.mxu0  ;;  %v5253_v55 = vld [vmem:[%s9864_s11 + $0xb8] sm:$0xff] }
 0xbc2   : > { %v6838_v4 = vadd.f32 %v6837_v58, %v6836_v53  ;;  %v6804_v7 = vadd.f32 %v6803_v15, %v6802_v38 }
 0xbc3   : > { %v6805_v52 = vpop.f32.mrf.mxu1  ;;  %v6839_v22 = vpop.f32.mrf.mxu0 }
 0xbc4   : > { %v5006_v40 = vadd.f32 %v6838_v4, %v4941_v36  ;;  %v4949_v59 = vadd.f32 %v6804_v7, %v4884_v5  ;;  %v5258_v5 = vld [vmem:[%s9864_s11 + $0xe0] sm:$0xff]  ;;  %v5244_v7 = vld [vmem:[%s9864_s11 + $0x70] sm:$0xff] }
 0xbc5   : > { %v6806_v41 = vpop.f32.mrf.mxu1  ;;  %v6840_v16 = vpop.f32.mrf.mxu0 }
 0xbc6   : > { %v6841_v32 = vadd.f32 %v6840_v16, %v6839_v22  ;;  %v6807_v18 = vadd.f32 %v6806_v41, %v6805_v52 }
 0xbc7   : > { %v6808_v23 = vpop.f32.mrf.mxu1  ;;  %v6842_v35 = vpop.f32.mrf.mxu0 }
 0xbc8   : > { %v5009_v12 = vadd.f32 %v6841_v32, %v4944_v11  ;;  %v7301_v11 = vld [vmem:[%s9862_s9 + $0x10] sm:$0xff]  }
 0xbc9   : > { %v6809_v30 = vpop.f32.mrf.mxu1  ;;  %v6843_v44 = vpop.f32.mrf.mxu0 }
 0xbca   : > { %v6810_v10 = vadd.f32 %v6809_v30, %v6808_v23  ;;  %v6844_v53 = vadd.f32 %v6843_v44, %v6842_v35  ;;  %v4887_v30 = vadd.f32 %v6767_v3, %v4822_v56  ;;  %v5246_v3 = vld [vmem:[%s9864_s11 + $0x80] sm:$0xff] }
 0xbcb   : > { %v6811_v63 = vpop.f32.mrf.mxu1  ;;  %v6845_v57 = vpop.f32.mrf.mxu0 }
 0xbcc   : > { %v4957_v1 = vadd.f32 %v6810_v10, %v4892_v9  ;;  %v4952_v33 = vadd.f32 %v6807_v18, %v4887_v30  ;;  %v5014_v41 = vadd.f32 %v6844_v53, %v4949_v59  ;;  %v5256_v10 = vld [vmem:[%s9864_s11 + $0xd0] sm:$0xff]  ;;  %v5245_v9 = vld [vmem:[%s9864_s11 + $0x78] sm:$0xff]  ;;  %v5235_v18 = vld [vmem:[%s9864_s11 + $0x28] sm:$0xff] }
 0xbcd   : > { %v6812_v45 = vpop.f32.mrf.mxu1  ;;  %v6846_v21 = vpop.f32.mrf.mxu0  ;;  %v5233_v53 = vld [vmem:[%s9864_s11 + $0x18] sm:$0xff]  ;;  %v5291_v30 = vld [vmem:[%s9864_s11 + $0x1e8] sm:$0xff]  ;;  %v5290_v59 = vld [vmem:[%s9864_s11 + $0x1e0] sm:$0xff] }
 0xbce   : > { %v6813_v62 = vadd.f32 %v6812_v45, %v6811_v63  ;;  %v6847_v38 = vadd.f32 %v6846_v21, %v6845_v57 }
 0xbcf   : > { %v6848_v14 = vpop.f32.mrf.mxu0 }
 0xbd0   : > { %v7084_v60 = vpop.f32.mrf.mxu1  ;;  %v4960_v42 = vadd.f32 %v6813_v62, %v4895_v6  ;;  %v5017_v32 = vadd.f32 %v6847_v38, %v4952_v33  ;;  %v5243_v62 = vld [vmem:[%s9864_s11 + $0x68] sm:$0xff]  ;;  %v5236_v6 = vld [vmem:[%s9864_s11 + $0x30] sm:$0xff]  ;;  %v5282_v33 = vld [vmem:[%s9864_s11 + $0x1a0] sm:$0xff] }
 0xbd1   : > { %v6849_v19 = vpop.f32.mrf.mxu0  ;;  %v5071_v34 = vadd.f32 %v7084_v60, %v5006_v40  ;;  %v5261_v40 = vld [vmem:[%s9864_s11 + $0xf8] sm:$0xff]  ;;  %v5288_v38 = vld [vmem:[%s9864_s11 + $0x1d0] sm:$0xff] }
 0xbd2   : > { %v5062_v28 = vpop.f32.mrf.mxu1  ;;  %v6850_v39 = vadd.f32 %v6849_v19, %v6848_v14  ;;  %v5260_v19 = vld [vmem:[%s9864_s11 + $0xf0] sm:$0xff]  ;;  %5306 = vmatprep.subr.mxu0 %v5261_v40  ;;  %v5262_v40 = vld [vmem:[%s9864_s11 + $0x100] sm:$0xff] }
 0xbd3   : > { %v6851_v0 = vpop.f32.mrf.mxu0  ;;  %v5063_v25 = vadd.f32 %v5062_v28, %v4998_v29  ;;  %v5095_v22 = vmax.f32 %v5071_v34, 0.0  ;;  %5307 = vmatpush1.msra.mxu0 %v5260_v19  ;;  %v5255_v28 = vld [vmem:[%s9864_s11 + $0xc8] sm:$0xff]  ;;  %v5252_v34 = vld [vmem:[%s9864_s11 + $0xb0] sm:$0xff] }
 0xbd4   : > { %v7085_v4 = vpop.f32.mrf.mxu1  ;;  %v5022_v27 = vadd.f32 %v6850_v39, %v4957_v1  ;;  %5308 = vmatprep.subr.mxu0 %v5259_v2  ;;  %v5251_v29 = vld [vmem:[%s9864_s11 + $0xa8] sm:$0xff]  ;;  %v5241_v39 = vld [vmem:[%s9864_s11 + $0x58] sm:$0xff]  ;;  %v5234_v1 = vld [vmem:[%s9864_s11 + $0x20] sm:$0xff] }
 0xbd5   : > { %v5074_v20 = vadd.f32 %v7085_v4, %v5009_v12  ;;  %v6852_v37 = vpop.f32.mrf.mxu0  ;;  %v5093_v15 = vmax.f32 %v5063_v25, 0.0  ;;  %5309 = vmatpush1.msra.mxu0 %v5258_v5  ;;  %v5249_v12 = vld [vmem:[%s9864_s11 + $0x98] sm:$0xff]  ;;  %v5242_v4 = vld [vmem:[%s9864_s11 + $0x60] sm:$0xff]  ;;  %v5240_v25 = vld [vmem:[%s9864_s11 + $0x50] sm:$0xff] }
 0xbd6   : > { %v5065_v58 = vpop.f32.mrf.mxu1  ;;  %v6853_v23 = vadd.f32 %v6852_v37, %v6851_v0  ;;  %5310 = vmatprep.subr.mxu0 %v5257_v46  ;;  %v5250_v0 = vld [vmem:[%s9864_s11 + $0xa0] sm:$0xff] }
 0xbd7   : > { %v5096_v16 = vmax.f32 %v5074_v20, 0.0  ;;  %v5066_v26 = vadd.f32 %v5065_v58, %v5001_v17  ;;  %5311 = vmatpush1.msra.mxu0 %v5256_v10  ;;  %v5239_v20 = vld [vmem:[%s9864_s11 + $0x48] sm:$0xff]  ;;  %v5238_v37 = vld [vmem:[%s9864_s11 + $0x40] sm:$0xff]  ;;  %v5237_v17 = vld [vmem:[%s9864_s11 + $0x38] sm:$0xff] }
 0xbd8   : > { %v7088_v45 = vpop.f32.mrf.mxu1  ;;  %v5025_v35 = vadd.f32 %v6853_v23, %v4960_v42  ;;  %5312 = vmatprep.subr.mxu0 %v5255_v28  ;;  %v5232_v58 = vld [vmem:[%s9864_s11 + $0x10] sm:$0xff]  ;;  %v5293_v23 = vld [vmem:[%s9864_s11 + $0x1f8] sm:$0xff] }
 0xbd9   : > { %v5110_v61 = vpack.c.bf16 %v5096_v16, %v5095_v22  ;;  %v5094_v63 = vmax.f32 %v5066_v26, 0.0  ;;  %v5087_v52 = vadd.f32 %v7088_v45, %v5022_v27  ;;  %5313 = vmatpush1.msra.mxu0 %v5254_v49  ;;  %v5231_v22 = vld [vmem:[%s9864_s11 + $0x8] sm:$0xff]  ;;  %v5230_v16 = vld [vmem:[%s9864_s11] sm:$0xff]  ;;  %v5292_v26 = vld [vmem:[%s9864_s11 + $0x1f0] sm:$0xff] }
 0xbda   : > { %v5078_v31 = vpop.f32.mrf.mxu1  ;;  %5314 = vmatprep.subr.mxu0 %v5253_v55  ;;  %v5289_v42 = vld [vmem:[%s9864_s11 + $0x1d8] sm:$0xff]  ;;  %v5287_v45 = vld [vmem:[%s9864_s11 + $0x1c8] sm:$0xff]  ;;  %v5294_v55 = vld [vmem:[%s9863_s10] sm:$0xff] }
 0xbdb   : > { %v5109_v24 = vpack.c.bf16 %v5094_v63, %v5093_v15  ;;  %v5079_v36 = vadd.f32 %v5078_v31, %v5014_v41  ;;  %v5099_v43 = vmax.f32 %v5087_v52, 0.0  ;;  %5315 = vmatpush1.msra.mxu0 %v5252_v34  ;;  %v5286_v15 = vld [vmem:[%s9864_s11 + $0x1c0] sm:$0xff]  ;;  %v5284_v63 = vld [vmem:[%s9864_s11 + $0x1b0] sm:$0xff]  ;;  %v5283_v27 = vld [vmem:[%s9864_s11 + $0x1a8] sm:$0xff] }
 0xbdc   : > { %v7089_v44 = vpop.f32.mrf.mxu1  ;;  %5316 = vmatprep.subr.mxu0 %v5251_v29  ;;  %v5281_v31 = vld [vmem:[%s9864_s11 + $0x198] sm:$0xff]  ;;  %v5279_v52 = vld [vmem:[%s9864_s11 + $0x188] sm:$0xff]  ;;  %v5278_v41 = vld [vmem:[%s9864_s11 + $0x180] sm:$0xff] }
 0xbdd   : > { %v5090_v8 = vadd.f32 %v7089_v44, %v5025_v35  ;;  %v5097_v21 = vmax.f32 %v5079_v36, 0.0  ;;  %5317 = vmatpush1.msra.mxu0 %v5250_v0  ;;  %v5277_v35 = vld [vmem:[%s9864_s11 + $0x178] sm:$0xff]  ;;  %v5276_v44 = vld [vmem:[%s9864_s11 + $0x170] sm:$0xff]  ;;  %v5275_v36 = vld [vmem:[%s9864_s11 + $0x168] sm:$0xff] }
 0xbde   : > { %v5081_v14 = vpop.f32.mrf.mxu1  ;;  %5318 = vmatprep.subr.mxu0 %v5249_v12  ;;  %v5295_v29 = vld [vmem:[%s9863_s10 + $0x8] sm:$0xff] }
 0xbdf   : > { %v5100_v56 = vmax.f32 %v5090_v8, 0.0  ;;  %v5082_v50 = vadd.f32 %v5081_v14, %v5017_v32  ;;  %5319 = vmatpush1.msra.mxu0 %v5248_v47  ;;  %v5274_v8 = vld [vmem:[%s9864_s11 + $0x160] sm:$0xff]  ;;  %v5273_v32 = vld [vmem:[%s9864_s11 + $0x158] sm:$0xff]  ;;  %v5272_v14 = vld [vmem:[%s9864_s11 + $0x150] sm:$0xff] }
 0xbe0   : > { %5320 = vmatprep.subr.mxu0 %v5247_v51 }
 0xbe1   : > { %v5112_v57 = vpack.c.bf16 %v5100_v56, %v5099_v43  ;;  %v5098_v13 = vmax.f32 %v5082_v50, 0.0  ;;  %5321 = vmatpush1.msra.mxu0 %v5246_v3  ;;  %v5271_v43 = vld [vmem:[%s9864_s11 + $0x148] sm:$0xff]  ;;  %v5270_v56 = vld [vmem:[%s9864_s11 + $0x140] sm:$0xff]  ;;  %v5269_v50 = vld [vmem:[%s9864_s11 + $0x138] sm:$0xff] }
 0xbe2   : > { %5322 = vmatprep.subr.mxu0 %v5245_v9 }
 0xbe3   : > { %v5111_v60 = vpack.c.bf16 %v5098_v13, %v5097_v21  ;;  %7090 = vmatprep.subr.bf16.mxu1 %v5112_v57  ;;  %5323 = vmatpush1.msra.mxu0 %v5244_v7  ;;  %v5268_v21 = vld [vmem:[%s9864_s11 + $0x130] sm:$0xff]  ;;  %v5266_v13 = vld [vmem:[%s9864_s11 + $0x120] sm:$0xff] }
 0xbe4   : > { %7091 = vmatpush3.bf16.msra.mxu1 %v5112_v57  ;;  %5324 = vmatprep.subr.mxu0 %v5243_v62  ;;  %v5267_v57 = vld [vmem:[%s9864_s11 + $0x128] sm:$0xff] }
 0xbe5   : > { %7092 = vmatprep.subr.bf16.mxu1 %v5111_v60  ;;  %5325 = vmatpush1.msra.mxu0 %v5242_v4 }
 0xbe6   : > { %5326 = vmatprep.subr.mxu0 %v5241_v39 }
 0xbe7   : > { %5327 = vmatpush1.msra.mxu0 %v5240_v25 }
 0xbe8   : > { %7093 = vmatpush3.bf16.msra.mxu1 %v5111_v60  ;;  %5328 = vmatprep.subr.mxu0 %v5239_v20  ;;  %v5265_v60 = vld [vmem:[%s9864_s11 + $0x118] sm:$0xff]  ;;  %v9949_v20 = vmov 0  }
 0xbe9   : > { %7094 = vmatprep.subr.bf16.mxu1 %v5110_v61  ;;  %5329 = vmatpush1.msra.mxu0 %v5238_v37  ;;  %v6323_v37 = vld [vmem:[%s8451_s30 + $0x20] sm:$0xff] }
 0xbea   : > { %5330 = vmatprep.subr.mxu0 %v5237_v17  ;;  %v6325_v17 = vld [vmem:[%s8451_s30 + $0x30] sm:$0xff] }
 0xbeb   : > { %5331 = vmatpush1.msra.mxu0 %v5236_v6  ;;  %v9636_v6 = vpack.c.bf16 %v6325_v17, %v6323_v37 }
 0xbec   : > { %7095 = vmatpush3.bf16.msra.mxu1 %v5110_v61  ;;  %5332 = vmatprep.subr.mxu0 %v5235_v18  ;;  %v5285_v61 = vld [vmem:[%s9864_s11 + $0x1b8] sm:$0xff]  ;;  %v6324_v18 = vld [vmem:[%s8451_s30 + $0x28] sm:$0xff] }
 0xbed   : > { %7096 = vmatprep.subr.bf16.mxu1 %v5109_v24  ;;  %5333 = vmatpush1.msra.mxu0 %v5234_v1  ;;  %v6326_v1 = vld [vmem:[%s8451_s30 + $0x38] sm:$0xff]  ;;  %s9952_s30 = smov 15  }
 0xbee   : > { %5334 = vmatprep.subr.mxu0 %v5233_v53  ;;  %v9640_v53 = vpack.c.bf16 %v6326_v1, %v6324_v18 }
 0xbef   : > { %5335 = vmatpush1.msra.mxu0 %v5232_v58  ;;  %v6409_v58 = vld.sshfl [vmem:[%s9867_s14 + $0x6] sm:$0x11 pattern:$0x75316420] }
 0xbf0   : > { %7097 = vmatpush3.bf16.msra.mxu1 %v5109_v24  ;;  %5336 = vmatprep.subr.mxu0 %v5231_v22  ;;  %v5280_v24 = vld [vmem:[%s9864_s11 + $0x190] sm:$0xff]  ;;  %v5602_v22 = vcombine.high %v6409_v58, %v6409_v58 }
 0xbf1   : > { %5337 = vmatpush1.msra.mxu0 %v5230_v16  ;;  %v9950_v16 = vld [vmem:[#allocation5_spill] sm:$0xff] }
 0xbf2   : > { %5338 = vmatprep.subr.mxu0 %v5293_v23  ;;  %v5609_v23 = vrot.slane %v6409_v58, %v9950_v16 }
 0xbf3   : > { %7099 = vmatmul.mubr.msk.bf16.vlgmr.msra.gmra.mxu1 %vm1114_vm2, %v7300_v48  ;;  %5339 = vmatpush2.msra.mxu0 %v5292_v26  ;;  %v5264_v48 = vld [vmem:[%s9864_s11 + $0x110] sm:$0xff]  ;;  %v5616_v26 = vrot.slane %v5602_v22, %v9950_v16 }
 0xbf4   : > { %7102 = vmatprep.mubr.msk.bf16.mxu1 %vm1114_vm2, %v7301_v11  ;;  %5340 = vmatprep.subr.mxu0 %v5291_v30  ;;  %v5263_v11 = vld [vmem:[%s9864_s11 + $0x108] sm:$0xff]  ;;  %v5618_v30 = vpack.i.b16 %v5609_v23, %v5609_v23 }
 0xbf5   : > { %5341 = vmatpush2.msra.mxu0 %v5290_v59  ;;  %v5625_v59 = vpack.i.b16 %v5616_v26, %v5616_v26 }
 0xbf6   : > { %5342 = vmatprep.subr.mxu0 %v5289_v42 }
 0xbf7   : > { %5343 = vmatpush2.msra.mxu0 %v5288_v38 }
 0xbf8   : > { %5344 = vmatprep.subr.mxu0 %v5287_v45  ;;  %v9951_v45 = vld [vmem:[#allocation4_spill] sm:$0xff] }
 0xbf9   : > { %5345 = vmatpush2.msra.mxu0 %v5286_v15  ;;  %v9652_v15 = vrot.slane %v5618_v30, %v9951_v45 }
 0xbfa   : > { %5346 = vmatprep.subr.mxu0 %v5285_v61  ;;  %v9655_v61 = vrot.slane %v5625_v59, %v9951_v45 }
 0xbfb   : > { %7103 = vmatmul.mubr.msk.bf16.gmra.mxu1 %vm1114_vm2, %v7302_v54  ;;  %5347 = vmatpush2.msra.mxu0 %v5284_v63 }
 0xbfc   : > { %5348 = vmatprep.subr.mxu0 %v5283_v27 }
 0xbfd   : > { %5349 = vmatpush2.msra.mxu0 %v5282_v33 }
 0xbfe   : > { %5350 = vmatprep.subr.mxu0 %v5281_v31 }
 0xbff   : > { %5351 = vmatpush2.msra.mxu0 %v5280_v24 }
 0xc00   : > { %5352 = vmatprep.subr.mxu0 %v5279_v52 }
 0xc01   : > { %5353 = vmatpush2.msra.mxu0 %v5278_v41 }
 0xc02   : > { %5354 = vmatprep.subr.mxu0 %v5277_v35 }
 0xc03   : > { %5355 = vmatpush2.msra.mxu0 %v5276_v44 }
 0xc04   : > { %5356 = vmatprep.subr.mxu0 %v5275_v36 }
 0xc05   : > { %5357 = vmatpush2.msra.mxu0 %v5274_v8 }
 0xc06   : > { %5358 = vmatprep.subr.mxu0 %v5273_v32 }
 0xc07   : > { %5359 = vmatpush2.msra.mxu0 %v5272_v14 }
 0xc08   : > { %5360 = vmatprep.subr.mxu0 %v5271_v43 }
 0xc09   : > { %5361 = vmatpush2.msra.mxu0 %v5270_v56 }
 0xc0a   : > { %5362 = vmatprep.subr.mxu0 %v5269_v50 }
 0xc0b   : > { %5363 = vmatpush2.msra.mxu0 %v5268_v21 }
 0xc0c   : > { %5364 = vmatprep.subr.mxu0 %v5267_v57 }
 0xc0d   : > { %5365 = vmatpush2.msra.mxu0 %v5266_v13 }
 0xc0e   : > { %5366 = vmatprep.subr.mxu0 %v5265_v60 }
 0xc0f   : > { %5367 = vmatpush2.msra.mxu0 %v5264_v48  ;;  %v7305_v48 = vld [vmem:[%s9865_s12 + $0x4] ss:$12 sps:$4 sm:$0xff]  }
 0xc10   : > { %5368 = vmatprep.subr.mxu0 %v5263_v11  ;;  %5983 = vmatprep.mubr.bf16.mxu1 %v7305_v48  ;;  %v5921_v11 = vld [vmem:[%s9866_s13] sm:$0xff] }
 0xc11   : > { %5369 = vmatpush2.msra.mxu0 %v5262_v40  ;;  %v6297_v40 = vld [vmem:[#allocation2] ss:$0 sm:$0xff] }
 0xcb3   : > { %v7100_v54 = vpop.f32.mrf.mxu1 }
 0xcb5   : > { %v5179_v19 = vpop.f32.mrf.mxu1 }
 0xcb7   : > { %v7101_v2 = vpop.f32.mrf.mxu1 }
 0xcb9   : > { %v5182_v5 = vpop.f32.mrf.mxu1 }
 0xcbb   : > { %v7104_v46 = vpop.f32.mrf.mxu1 }
 0xcbc   : > { %v7145_v10 = vpack.i.bf16 %v7100_v54, %v7104_v46  ;;  %v5922_v54 = vld [vmem:[%s9866_s13 + $0x8] sm:$0xff] }
 0xcbd   : > { %v5195_v28 = vpop.f32.mrf.mxu1 }
 0xcbe   : > { %7146 = vrot.lane.b32.xlu1 %v7145_v10, %s9948_s0  ;;  %v6405_v10 = vld.sshfl [vmem:[%s9867_s14 + $0x2] sm:$0x11 pattern:$0x75316420] }
 0xcbf   : > { %v7105_v49 = vpop.f32.mrf.mxu1 }
 0xcc0   : > { %v7150_v34 = vpack.i.bf16 %v7101_v2, %v7105_v49 }
 0xcc1   : > { %v5198_v4 = vpop.f32.mrf.mxu1 }
 0xcc2   : > { %5298 = vperm.xlu1 %7134, %v5294_v55   ;;  %7151 = vrot.lane.b32.xlu0 %v7150_v34, %s9948_s0  ;;  %s9956_s0 = smov 111   ;;  %v5482_v34 = vcombine.high %v6405_v10, %v6405_v10 }
 0xcc6   : > { %5303 = vperm.xlu0 %7133, %v5295_v29   ;;  %5579 = vrot.lane.b32.xlu1 %v9636_v6, %s9937_s1 }
 0xcca   : > { %5581 = vrot.lane.b32.xlu0 %v9640_v53, %s9937_s1 }
 0xd30   : > { %v7147_v0 = vpop.permute.xlu1 %7146 }
 0xd31   : > { %v7149_v12 = vunpack.i.h.bf16 %v7147_v0  ;;  %v7148_v47 = vunpack.i.l.bf16 %v7147_v0 }
 0xd33   : > { %v5226_v51 = vsel %vm1114_vm2, %v5179_v19, %v7149_v12  ;;  %v5228_v3 = vsel %vm1114_vm2, %v5195_v28, %v7148_v47  ;;  %v6407_v19 = vld.sshfl [vmem:[%s9867_s14 + $0x4] sm:$0x11 pattern:$0x75316420] }
 0xd34   : > { %5370 = vmatprep.mubr.f32.mxu0 %v5228_v3  ;;  %v7152_v9 = vpop.permute.xlu0 %7151  ;;  %v5542_v2 = vcombine.high %v6407_v19, %v6407_v19 }
 0xd35   : > { %v7154_v7 = vunpack.i.h.bf16 %v7152_v9  ;;  %v7153_v62 = vunpack.i.l.bf16 %v7152_v9  ;;  %5371 = vmatmul.mubr.f32.vlgmr.msra.gmra.mxu0 %v5226_v51  ;;  %v5489_v51 = vrot.slane %v6405_v10, %v9950_v16 }
 0xd36   : > { %v5556_v46 = vrot.slane %v5542_v2, %v9950_v16 }
 0xd37   : > { %v5229_v39 = vsel %vm1114_vm2, %v5198_v4, %v7153_v62  ;;  %v5227_v25 = vsel %vm1114_vm2, %v5182_v5, %v7154_v7  ;;  %v5549_v5 = vrot.slane %v6407_v19, %v9950_v16  ;;  %v5496_v62 = vrot.slane %v5482_v34, %v9950_v16 }
 0xd38   : > { %5376 = vmatprep.mubr.f32.mxu0 %v5229_v39  ;;  %v5565_v55 = vpack.i.b16 %v5556_v46, %v5556_v46  ;;  %v5498_v1 = vpack.i.b16 %v5489_v51, %v5489_v51  ;;  %vm9957_vm2 = vcmask 916480  }
 0xd39   : > { %5377 = vmatmul.mubr.f32.gmra.mxu0 %v5227_v25  ;;  %v5558_v28 = vpack.i.b16 %v5549_v5, %v5549_v5  ;;  %v6403_v25 = vld.sshfl [vmem:[%s9867_s14] sm:$0x11 pattern:$0x75316420]  ;;  %v5505_v23 = vpack.i.b16 %v5496_v62, %v5496_v62  ;;  %vm9958_vm3 = vmmov %vm9957_vm2 }
 0xd3a   : > { %6026 = vmatprep.mubr.bf16.mxu0 %v9949_v20  ;;  %v5570_v7 = vrot.slane %v5565_v55, %v9951_v45  ;;  %v5422_v26 = vcombine.high %v6403_v25, %v6403_v25  ;;  %v6413_v62 = vld.sshfl [vmem:[%s9867_s14 + $0xa] sm:$0x11 pattern:$0x75316420]  ;;  %vm9959_vm4 = vmmov %vm9957_vm2 }
 0xd3b   : > { %v5563_v47 = vrot.slane %v5558_v28, %v9951_v45  ;;  %vm9960_vm5 = vmmov %vm9957_vm2 }
 0xd3d   : > { %v5299_v42 = vpop.permute.xlu1 %5298 }
 0xd41   : > { %v5304_v38 = vpop.permute.xlu0 %5303  ;;  %v5580_v63 = vpop.permute.xlu1 %5579 }
 0xd42   : > { %v5591_v27 = vsel %vm1458_vm6, 0, %v5580_v63 }
 0xd43   : > { %v5633_v31 = vmul.bf16 %v9652_v15, %v5591_v27 }
 0xd45   : > { %v5582_v33 = vpop.permute.xlu0 %5581 }
 0xd46   : > { %v5584_v24 = vsel %vm1458_vm6, %v5580_v63, %v5582_v33  ;;  %v5510_v33 = vrot.slane %v5505_v23, %v9951_v45  ;;  %v5704_v23 = vcombine.high %v6413_v62, %v6413_v62 }
 0xd47   : > { %v5634_v52 = vmul.bf16 %v9655_v61, %v5584_v24 }
 0xd49   : > { %5951 = vmatprep.subr.bf16.mxu1 %v5634_v52 }
 0xd4a   : > { %5952 = vmatpush1.bf16.msra.mxu1 %v5633_v31  ;;  %v5436_v31 = vrot.slane %v5422_v26, %v9950_v16 }
 0xdf5   : > { %v5372_v41 = vpop.f32.mrf.mxu0 }
 0xdf6   : > { %v5373_v44 = vadd.f32 %v5372_v41, %v5299_v42 }
 0xdf7   : > { %v5374_v35 = vpop.f32.mrf.mxu0 }
 0xdf8   : > { %v5375_v8 = vadd.f32 %v5374_v35, %v5299_v42  ;;  %v5383_v43 = vmax.f32 %v5373_v44, 0.0 }
 0xdf9   : > { %v5378_v36 = vpop.f32.mrf.mxu0 }
 0xdfa   : > { %v5379_v32 = vadd.f32 %v5378_v36, %v5304_v38  ;;  %v5384_v21 = vmax.f32 %v5375_v8, 0.0 }
 0xdfb   : > { %v5380_v14 = vpop.f32.mrf.mxu0 }
 0xdfc   : > { %v5385_v56 = vmax.f32 %v5379_v32, 0.0  ;;  %v5381_v50 = vadd.f32 %v5380_v14, %v5304_v38  ;;  %v5503_v38 = vrot.slane %v5498_v1, %v9951_v45 }
 0xdfe   : > { %v9661_v57 = vpack.c.bf16 %v5385_v56, %v5383_v43  ;;  %v5386_v13 = vmax.f32 %v5381_v50, 0.0  ;;  %v5445_v43 = vpack.i.b16 %v5436_v31, %v5436_v31 }
 0xe00   : > { %v9663_v60 = vpack.c.bf16 %v5386_v13, %v5384_v21  ;;  %5575 = vrot.lane.b32.xlu1 %v9661_v57, %s9937_s1  ;;  %v5450_v19 = vrot.slane %v5445_v43, %v9951_v45 }
 0xe02   : > { %5577 = vrot.lane.b32.xlu0 %v9663_v60, %s9937_s1  ;;  %s9953_s1 = smov 17  }
 0xe04   : > { %5519 = vrot.lane.b32.xlu1 %v9636_v6, %s9952_s30 }
 0xe06   : > { %5521 = vrot.lane.b32.xlu0 %v9640_v53, %s9952_s30 }
 0xe08   : > { %5515 = vrot.lane.b32.xlu1 %v9661_v57, %s9952_s30 }
 0xe0a   : > { %5517 = vrot.lane.b32.xlu0 %v9663_v60, %s9952_s30 }
 0xe0c   : > { %5459 = vrot.lane.b32.xlu1 %v9636_v6, %s7315_s24 }
 0xe0e   : > { %5461 = vrot.lane.b32.xlu0 %v9640_v53, %s7315_s24 }
 0xe10   : > { %5455 = vrot.lane.b32.xlu1 %v9661_v57, %s7315_s24 }
 0xe12   : > { %5457 = vrot.lane.b32.xlu0 %v9663_v60, %s7315_s24  ;;  %s9955_s24 = smov 113  }
 0xe14   : > { %5399 = vrot.lane.b32.xlu1 %v9636_v6, %s9953_s1 }
 0xe16   : > { %5401 = vrot.lane.b32.xlu0 %v9640_v53, %s9953_s1 }
 0xe18   : > { %5395 = vrot.lane.b32.xlu1 %v9661_v57, %s9953_s1 }
 0xe1a   : > { %5397 = vrot.lane.b32.xlu0 %v9663_v60, %s9953_s1 }
 0xe1c   : > { %5803 = vrot.lane.b32.xlu1 %v9640_v53, %s9954_s18 }
 0xe1e   : > { %5801 = vrot.lane.b32.xlu0 %v9636_v6, %s9954_s18 }
 0xe20   : > { %5799 = vrot.lane.b32.xlu1 %v9663_v60, %s9954_s18 }
 0xe22   : > { %5797 = vrot.lane.b32.xlu0 %v9661_v57, %s9954_s18 }
 0xe24   : > { %5743 = vrot.lane.b32.xlu1 %v9640_v53, %s9955_s24 }
 0xe26   : > { %5741 = vrot.lane.b32.xlu0 %v9636_v6, %s9955_s24 }
 0xe28   : > { %5739 = vrot.lane.b32.xlu1 %v9663_v60, %s9955_s24 }
 0xe2a   : > { %5737 = vrot.lane.b32.xlu0 %v9661_v57, %s9955_s24  ;;  %s6433_s24 = sshll.u32 %s9968_s28, 4 }
 0xe2c   : > { %5683 = vrot.lane.b32.xlu1 %v9640_v53, %s9930_s25 }
 0xe2e   : > { %5681 = vrot.lane.b32.xlu0 %v9636_v6, %s9930_s25 }
 0xe30   : > { %5679 = vrot.lane.b32.xlu1 %v9663_v60, %s9930_s25 }
 0xe32   : > { %5677 = vrot.lane.b32.xlu0 %v9661_v57, %s9930_s25 }
 0xe34   : > { %5863 = vrot.lane.b32.xlu1 %v9640_v53, %s9956_s0 }
 0xe36   : > { %5861 = vrot.lane.b32.xlu0 %v9636_v6, %s9956_s0 }
 0xe38   : > { %5859 = vrot.lane.b32.xlu1 %v9663_v60, %s9956_s0 }
 0xe3a   : > { %5857 = vrot.lane.b32.xlu0 %v9661_v57, %s9956_s0  ;;  %s9838_s0 = scalar_lea.vmem %s9870_s17, %s6433_s24 }
 0xe3c   : > { %5925 = vperm.xlu1 %7134, %v5921_v11   ;;  %v6415_v11 = vld.sshfl [vmem:[%s9867_s14 + $0xc] sm:$0x11 pattern:$0x75316420] }
 0xe3e   : > { %5930 = vperm.xlu0 %7133, %v5922_v54  }
 0xe40   : > { %3326 = vperm.xlu1 %7134, %v6297_v40  }
 0xe42   : > { %6051 = vperm.xlu0 %7133, %v6297_v40  }
 0xe72   : > { %v5576_v49 = vpop.permute.xlu1 %5575 }
 0xe73   : > { %v5588_v29 = vsel %vm1458_vm6, 0, %v5576_v49 }
 0xe74   : > { %v5578_v0 = vpop.permute.xlu0 %5577  ;;  %v5631_v4 = vmul.bf16 %v9652_v15, %v5588_v29  ;;  %v5429_v15 = vrot.slane %v6403_v25, %v9950_v16 }
 0xe75   : > { %v5583_v12 = vsel %vm1458_vm6, %v5576_v49, %v5578_v0  ;;  %v5764_v49 = vcombine.high %v6415_v11, %v6415_v11  ;;  %vm9961_vm6 = vcmask 924672  }
 0xe76   : > { %v5632_v3 = vmul.bf16 %v9655_v61, %v5583_v12  ;;  %v5520_v9 = vpop.permute.xlu1 %5519  ;;  %v6417_v61 = vld.sshfl [vmem:[%s9867_s14 + $0xe] sm:$0x11 pattern:$0x75316420]  ;;  %v5438_v8 = vpack.i.b16 %v5429_v15, %v5429_v15  ;;  %vm9962_vm7 = vmmov %vm9961_vm6 }
 0xe77   : > { %v5531_v39 = vsel %vm2780_vm12, 0, %v5520_v9  ;;  %v5824_v35 = vcombine.high %v6417_v61, %v6417_v61  ;;  %v5831_v2 = vrot.slane %v6417_v61, %v9950_v16  ;;  %vm9963_vm8 = vmmov %vm9961_vm6 }
 0xe78   : > { %v5522_v37 = vpop.permute.xlu0 %5521  ;;  %5953 = vmatprep.subr.bf16.mxu1 %v5632_v3  ;;  %v5573_v17 = vmul.bf16 %v5563_v47, %v5531_v39  ;;  %v5443_v48 = vrot.slane %v5438_v8, %v9951_v45  ;;  %vm9964_vm9 = vmmov %vm9961_vm6 }
 0xe79   : > { %v5524_v18 = vsel %vm2780_vm12, %v5520_v9, %v5522_v37  ;;  %5954 = vmatpush1.bf16.msra.mxu1 %v5631_v4  ;;  %v5838_v21 = vrot.slane %v5824_v35, %v9950_v16  ;;  %v5840_v12 = vpack.i.b16 %v5831_v2, %v5831_v2  ;;  %v5778_v9 = vrot.slane %v5764_v49, %v9950_v16 }
 0xe7a   : > { %v5574_v58 = vmul.bf16 %v5570_v7, %v5524_v18  ;;  %v5516_v22 = vpop.permute.xlu1 %5515  ;;  %v5771_v37 = vrot.slane %v6415_v11, %v9950_v16 }
 0xe7b   : > { %v5528_v30 = vsel %vm2780_vm12, 0, %v5516_v22  ;;  %v5847_v28 = vpack.i.b16 %v5838_v21, %v5838_v21  ;;  %v5845_v25 = vrot.slane %v5840_v12, %v9951_v45 }
 0xe7c   : > { %v5518_v59 = vpop.permute.xlu0 %5517  ;;  %5955 = vmatprep.subr.bf16.mxu1 %v5574_v58  ;;  %v5571_v24 = vmul.bf16 %v5563_v47, %v5528_v30 }
 0xe7d   : > { %v5523_v42 = vsel %vm2780_vm12, %v5516_v22, %v5518_v59  ;;  %5956 = vmatpush1.bf16.msra.mxu1 %v5573_v17  ;;  %v5852_v3 = vrot.slane %v5847_v28, %v9951_v45  ;;  %v5787_v22 = vpack.i.b16 %v5778_v9, %v5778_v9 }
 0xe7e   : > { %v5572_v63 = vmul.bf16 %v5570_v7, %v5523_v42  ;;  %v5460_v27 = vpop.permute.xlu1 %5459  ;;  %v5780_v42 = vpack.i.b16 %v5771_v37, %v5771_v37 }
 0xe7f   : > { %v5471_v52 = vsel %vm1031_vm1, 0, %v5460_v27 }
 0xe80   : > { %v5462_v41 = vpop.permute.xlu0 %5461  ;;  %5957 = vmatprep.subr.bf16.mxu1 %v5572_v63  ;;  %v5513_v44 = vmul.bf16 %v5503_v38, %v5471_v52  ;;  %v5792_v63 = vrot.slane %v5787_v22, %v9951_v45  ;;  %v5785_v35 = vrot.slane %v5780_v42, %v9951_v45 }
 0xe81   : > { %v5464_v36 = vsel %vm1031_vm1, %v5460_v27, %v5462_v41  ;;  %5958 = vmatpush1.bf16.msra.mxu1 %v5571_v24  ;;  %v5718_v27 = vrot.slane %v5704_v23, %v9950_v16  ;;  %v6419_v24 = vld.sshfl [vmem:[%s9867_s14 + $0x10] sm:$0x11 pattern:$0x75316420] }
 0xe82   : > { %v5514_v32 = vmul.bf16 %v5510_v33, %v5464_v36  ;;  %v5456_v14 = vpop.permute.xlu1 %5455  ;;  %v5884_v43 = vcombine.high %v6419_v24, %v6419_v24 }
 0xe83   : > { %v5468_v56 = vsel %vm1031_vm1, 0, %v5456_v14 }
 0xe84   : > { %v5458_v50 = vpop.permute.xlu0 %5457  ;;  %5959 = vmatprep.subr.bf16.mxu1 %v5514_v32  ;;  %v5511_v5 = vmul.bf16 %v5503_v38, %v5468_v56  ;;  %v5898_v2 = vrot.slane %v5884_v43, %v9950_v16 }
 0xe85   : > { %v5463_v13 = vsel %vm1031_vm1, %v5456_v14, %v5458_v50  ;;  %5960 = vmatpush1.bf16.msra.mxu1 %v5513_v44  ;;  %v5711_v44 = vrot.slane %v6413_v62, %v9950_v16  ;;  %v5727_v14 = vpack.i.b16 %v5718_v27, %v5718_v27 }
 0xe86   : > { %v5512_v54 = vmul.bf16 %v5510_v33, %v5463_v13  ;;  %v5400_v40 = vpop.permute.xlu1 %5399  ;;  %v6411_v33 = vld.sshfl [vmem:[%s9867_s14 + $0x8] sm:$0x11 pattern:$0x75316420] }
 0xe87   : > { %v5411_v46 = vsel %vm2656_vm13, 0, %v5400_v40  ;;  %v5644_v56 = vcombine.high %v6411_v33, %v6411_v33 }
 0xe88   : > { %v5402_v10 = vpop.permute.xlu0 %5401  ;;  %5961 = vmatprep.subr.bf16.mxu1 %v5512_v54  ;;  %v5453_v55 = vmul.bf16 %v5443_v48, %v5411_v46 }
 0xe89   : > { %v5404_v34 = vsel %vm2656_vm13, %v5400_v40, %v5402_v10  ;;  %5962 = vmatpush1.bf16.msra.mxu1 %v5511_v5  ;;  %v5658_v5 = vrot.slane %v5644_v56, %v9950_v16 }
 0xe8a   : > { %v5454_v29 = vmul.bf16 %v5450_v19, %v5404_v34  ;;  %v5396_v0 = vpop.permute.xlu1 %5395 }
 0xe8b   : > { %v5408_v47 = vsel %vm2656_vm13, 0, %v5396_v0 }
 0xe8c   : > { %v5398_v51 = vpop.permute.xlu0 %5397  ;;  %5963 = vmatprep.subr.bf16.mxu1 %v5454_v29  ;;  %v5451_v17 = vmul.bf16 %v5443_v48, %v5408_v47  ;;  %v5720_v48 = vpack.i.b16 %v5711_v44, %v5711_v44  ;;  %v5651_v29 = vrot.slane %v6411_v33, %v9950_v16  ;;  %v5907_v47 = vpack.i.b16 %v5898_v2, %v5898_v2 }
 0xe8d   : > { %v5403_v7 = vsel %vm2656_vm13, %v5396_v0, %v5398_v51  ;;  %5964 = vmatpush1.bf16.msra.mxu1 %v5453_v55  ;;  %v5891_v55 = vrot.slane %v6419_v24, %v9950_v16  ;;  %v5667_v51 = vpack.i.b16 %v5658_v5, %v5658_v5 }
 0xe8e   : > { %v5452_v4 = vmul.bf16 %v5450_v19, %v5403_v7  ;;  %v5804_v39 = vpop.permute.xlu1 %5803  ;;  %v5732_v19 = vrot.slane %v5727_v14, %v9951_v45  ;;  %v5725_v49 = vrot.slane %v5720_v48, %v9951_v45 }
 0xe8f   : > { %v5813_v18 = vsel %vm9957_vm2, %v5804_v39, 0  ;;  %v5900_v62 = vpack.i.b16 %v5891_v55, %v5891_v55  ;;  %v5672_v16 = vrot.slane %v5667_v51, %v9951_v45 }
 0xe90   : > { %v5856_v1 = vmul.bf16 %v5852_v3, %v5813_v18  ;;  %v5802_v58 = vpop.permute.xlu0 %5801  ;;  %5965 = vmatprep.subr.bf16.mxu1 %v5452_v4 }
 0xe91   : > { %v5806_v26 = vsel %vm9958_vm3, %v5802_v58, %v5804_v39  ;;  %5966 = vmatpush1.bf16.msra.mxu1 %v5451_v17  ;;  %v5660_v39 = vpack.i.b16 %v5651_v29, %v5651_v29  ;;  %v5912_v17 = vrot.slane %v5907_v47, %v9951_v45  ;;  %v5905_v22 = vrot.slane %v5900_v62, %v9951_v45 }
 0xe92   : > { %v5855_v30 = vmul.bf16 %v5845_v25, %v5806_v26  ;;  %v5800_v59 = vpop.permute.xlu1 %5799  ;;  %5967 = vmatprep.subr.bf16.mxu1 %v5856_v1  ;;  %v5676_v23 = vmul.bf16 %v5672_v16, %v9640_v53  ;;  %v5674_v53 = vmul.bf16 %v5672_v16, %v9663_v60 }
 0xe93   : > { %v5810_v38 = vsel %vm9959_vm4, %v5800_v59, 0 }
 0xe94   : > { %v5854_v15 = vmul.bf16 %v5852_v3, %v5810_v38  ;;  %v5798_v61 = vpop.permute.xlu0 %5797 }
 0xe95   : > { %v5805_v31 = vsel %vm9960_vm5, %v5798_v61, %v5800_v59  ;;  %5968 = vmatpush2.bf16.msra.mxu1 %v5855_v30  ;;  %v5665_v30 = vrot.slane %v5660_v39, %v9951_v45 }
 0xe96   : > { %v5853_v52 = vmul.bf16 %v5845_v25, %v5805_v31  ;;  %5969 = vmatprep.subr.bf16.mxu1 %v5854_v15  ;;  %v5744_v41 = vpop.permute.xlu1 %5743 }
 0xe97   : > { %v5753_v36 = vsel %vm9961_vm6, %v5744_v41, 0  ;;  %v5675_v15 = vmul.bf16 %v5665_v30, %v9636_v6  ;;  %v5673_v6 = vmul.bf16 %v5665_v30, %v9661_v57 }
 0xe98   : > { %v5796_v8 = vmul.bf16 %v5792_v63, %v5753_v36  ;;  %v5742_v32 = vpop.permute.xlu0 %5741  ;;  %v9966_v36 = vld [vmem:[#allocation7_spill] sm:$0xff] }
 0xe99   : > { %v5746_v50 = vsel %vm9962_vm7, %v5742_v32, %v5744_v41  ;;  %5970 = vmatpush2.bf16.msra.mxu1 %v5853_v52  ;;  %v7306_v52 = vld [vmem:[%s9865_s12 + $0x8] ss:$12 sps:$4 sm:$0xff]   ;;  %v7303_v41 = vld [vmem:[%s9865_s12] ss:$12 sps:$4 sm:$0xff]  }
 0xe9a   : > { %v5795_v21 = vmul.bf16 %v5785_v35, %v5746_v50  ;;  %v5740_v13 = vpop.permute.xlu1 %5739  ;;  %5971 = vmatprep.subr.bf16.mxu1 %v5796_v8 }
 0xe9b   : > { %v5750_v11 = vsel %vm9963_vm8, %v5740_v13, 0 }
 0xe9c   : > { %v5794_v54 = vmul.bf16 %v5792_v63, %v5750_v11  ;;  %v5738_v40 = vpop.permute.xlu0 %5737 }
 0xe9d   : > { %v5745_v46 = vsel %vm9964_vm9, %v5738_v40, %v5740_v13  ;;  %5972 = vmatpush2.bf16.msra.mxu1 %v5795_v21 }
 0xe9e   : > { %v5793_v10 = vmul.bf16 %v5785_v35, %v5745_v46  ;;  %5973 = vmatprep.subr.bf16.mxu1 %v5794_v54  ;;  %v5684_v28 = vpop.permute.xlu1 %5683  ;;  %v9965_v35 = vld [vmem:[#allocation6_spill] sm:$0xff] }
 0xe9f   : > { %v5693_v34 = vsel %vm2948_vm14, %v5684_v28, 0 }
 0xea0   : > { %v5736_v0 = vmul.bf16 %v5732_v19, %v5693_v34  ;;  %v5682_v12 = vpop.permute.xlu0 %5681 }
 0xea1   : > { %v5686_v3 = vsel %vm2948_vm14, %v5682_v12, %v5684_v28  ;;  %5974 = vmatpush2.bf16.msra.mxu1 %v5793_v10  ;;  %v6041_v12 = vld [vmem:[%s9868_s15] sm:$0xf] }
 0xea2   : > { %v5735_v9 = vmul.bf16 %v5725_v49, %v5686_v3  ;;  %v5680_v7 = vpop.permute.xlu1 %5679  ;;  %5975 = vmatprep.subr.bf16.mxu1 %v5736_v0 }
 0xea3   : > { %v5690_v4 = vsel %vm2948_vm14, %v5680_v7, 0 }
 0xea4   : > { %v5734_v25 = vmul.bf16 %v5732_v19, %v5690_v4  ;;  %v5678_v37 = vpop.permute.xlu0 %5677 }
 0xea5   : > { %v5685_v18 = vsel %vm2948_vm14, %v5678_v37, %v5680_v7  ;;  %5976 = vmatpush2.bf16.msra.mxu1 %v5735_v9 }
 0xea6   : > { %v5733_v1 = vmul.bf16 %v5725_v49, %v5685_v18  ;;  %5977 = vmatprep.subr.bf16.mxu1 %v5734_v25  ;;  %v5864_v58 = vpop.permute.xlu1 %5863 }
 0xea7   : > { %v5873_v26 = vsel %vm3137_vm15, %v5864_v58, 0 }
 0xea8   : > { %v5916_v59 = vmul.bf16 %v5912_v17, %v5873_v26  ;;  %v5862_v42 = vpop.permute.xlu0 %5861 }
 0xea9   : > { %v5866_v38 = vsel %vm3137_vm15, %v5862_v42, %v5864_v58  ;;  %5978 = vmatpush2.bf16.msra.mxu1 %v5733_v1 }
 0xeaa   : > { %v5915_v61 = vmul.bf16 %v5905_v22, %v5866_v38  ;;  %v5860_v63 = vpop.permute.xlu1 %5859  ;;  %6006 = vmatprep.subr.bf16.mxu0 %v5916_v59  ;;  %5979 = vmatprep.subr.bf16.mxu1 %v5676_v23 }
 0xeab   : > { %v5870_v27 = vsel %vm3137_vm15, %v5860_v63, 0 }
 0xeac   : > { %v5914_v33 = vmul.bf16 %v5912_v17, %v5870_v27  ;;  %v5858_v31 = vpop.permute.xlu0 %5857  ;;  %6007 = vmatpush1.bf16.msra.mxu0 %v5915_v61 }
 0xead   : > { %v5865_v45 = vsel %vm3137_vm15, %v5858_v31, %v5860_v63  ;;  %5980 = vmatpush2.bf16.msra.mxu1 %v5675_v15 }
 0xeae   : > { %v5913_v24 = vmul.bf16 %v5905_v22, %v5865_v45  ;;  %5981 = vmatprep.subr.bf16.mxu1 %v5674_v53  ;;  %6008 = vmatprep.subr.bf16.mxu0 %v5914_v33 }
 0xeb0   : > { %6009 = vmatpush1.bf16.msra.mxu0 %v5913_v24 }
 0xeb1   : > { %5982 = vmatpush2.bf16.msra.mxu1 %v5673_v6 }
 0xeb3   : > { %6423 = vmatmul.mubr.msk.bf16.vlgmr.msra.gmra.mxu0 %vm1040_vm0, %v7306_v52 }
 0xeb4   : > { %5984 = vmatmul.mubr.bf16.vlgmr.msra.gmra.mxu1 %v7303_v41  ;;  %6089 = vmatprep.mubr.bf16.mxu0 %v9949_v20 }
 0xeb7   : > { %v5926_v60 = vpop.permute.xlu1 %5925 }
 0xeb9   : > { %v5931_v56 = vpop.permute.xlu0 %5930 }
 0xebb   : > { %v3327_v57 = vpop.permute.xlu1 %3326 }
 0xebc   : > { %v3367_v44 = vadd.f32 %v9965_v35, %v3327_v57  ;;  %v3369_v8 = vadd.f32 %v9966_v36, %v3327_v57 }
 0xebd   : > { %v6052_v47 = vpop.permute.xlu0 %6051 }
 0xebe   : > { %3373 = vst [vmem:[%s9838_s0] sm:$0xff] %v3367_v44  ;;  %3374 = vst [vmem:[%s9838_s0 + $0x8] sm:$0xff] %v3369_v8 }
 0xf73   : > { %v6028_v32 = vpop.f32.mrf.mxu0 }
 0xf74   : > { %v5985_v14 = vpop.f32.mrf.mxu1 }
 0xf75   : > { %v6030_v43 = vpop.f32.mrf.mxu0  ;;  %v5986_v21 = vadd.f32 %v5985_v14, %v5926_v60 }
 0xf76   : > { %v5987_v20 = vpop.f32.mrf.mxu1 }
 0xf77   : > { %v5988_v50 = vadd.f32 %v5987_v20, %v5926_v60  ;;  %v6032_v48 = vpop.f32.mrf.mxu0  ;;  %v6029_v5 = vadd.f32 %v6028_v32, %v5986_v21 }
 0xf78   : > { %v5989_v13 = vpop.f32.mrf.mxu1 }
 0xf79   : > { %v5990_v11 = vadd.f32 %v5989_v13, %v5931_v56  ;;  %v6031_v40 = vadd.f32 %v6030_v43, %v5988_v50  ;;  %v6034_v46 = vpop.f32.mrf.mxu0  ;;  %v6037_v34 = vmax.f32 %v6029_v5, 0.0 }
 0xf7a   : > { %v5991_v54 = vpop.f32.mrf.mxu1 }
 0xf7b   : > { %v5992_v19 = vadd.f32 %v5991_v54, %v5931_v56  ;;  %v6033_v2 = vadd.f32 %v6032_v48, %v5990_v11  ;;  %v6038_v49 = vmax.f32 %v6031_v40, 0.0 }
 0xf7d   : > { %v6035_v10 = vadd.f32 %v6034_v46, %v5992_v19  ;;  %v6039_v28 = vmax.f32 %v6033_v2, 0.0 }
 0xf7f   : > { %v6040_v55 = vmax.f32 %v6035_v10, 0.0  ;;  %v6042_v0 = vpack.c.bf16 %v6039_v28, %v6037_v34 }
 0xf81   : > { %v6043_v29 = vpack.c.bf16 %v6040_v55, %v6038_v49 }
 0xf83   : > { %6071 = vmatprep.subr.bf16.mxu0 %v6043_v29 }
 0xf84   : > { %6072 = vmatpush1.bf16.msra.mxu0 %v6042_v0 }
 0xf87   : > { %6425 = vmatmul.mubr.msk.bf16.vlgmr.msra.gmra.mxu0 %vm1031_vm1, %v6041_v12 }
0x1047   : > { %v6091_v51 = vpop.f32.mrf.mxu0 }
0x1048   : > { %v6092_v3 = vadd.f32 %v6091_v51, %v6052_v47 }
0x1049   : > { %v6093_v9 = vpop.f32.mrf.mxu0 }
0x104a   : > { %6426 = vst [vmem:[%s9838_s0 + $0x10] sm:$0xff] %v6092_v3  ;;  %v6094_v7 = vadd.f32 %v6093_v9, %v6052_v47 }
0x104b   : > { %v6095_v62 = vpop.f32.mrf.mxu0 }
0x104c   : > { %6427 = vst [vmem:[%s9838_s0 + $0x18] sm:$0xff] %v6094_v7 }
0x104d   : > { %v6096_v4 = vpop.f32.mrf.mxu0 }
0x104e PF: > { %s29_s26 = sadd.s32 1, %s7313_s26  }
0x104f   : > { %p26_p4 = scmp.ge.s32.totalorder %s29_s26, 6  }
0x1051   :  { %28 = sbr.rel (!%p26_p4) target bundleno = 3 (0x3), region = 144 }

</bundles_post_ra>
